<compile_context>
chip_gen: v5e
topology: v5e:2x2
jax: 0.10.0
libtpu: 0.0.40
codegen_flags: <defaults>
</compile_context>

<pallas_src>
import functools

import jax
import jax.numpy as jnp
from jax.experimental import pallas as pl
from jax.experimental.pallas import tpu as pltpu

KERNEL_SIZE = 7
PAD = KERNEL_SIZE // 2


def _pick_tiles(B, C, HW, itemsize, budget_bytes=4 << 20):
    """Pick (batch_tile, channel_tile) dividing (B, C), ~budget_bytes per block."""
    per_image = C * HW * itemsize
    if per_image <= budget_bytes:
        # Whole channel axis fits per step.  Optionally pack several images per
        # step (amortize per-step overhead) but keep >= 2 batch grid steps so
        # both v7x TensorCores get work.
        bt = 1
        for cand in range(2, B + 1):
            if B % cand == 0 and cand * per_image <= budget_bytes and B // cand >= 2:
                bt = cand
        return bt, C
    # Channel tiling: largest multiple of 8 dividing C that fits the budget.
    tc = 0
    for cand in range(8, C, 8):
        if C % cand == 0 and cand * HW * itemsize <= budget_bytes:
            tc = cand
    if tc == 0:
        # TODO(synk): pad awkward channel counts; fall back to something legal.
        tc = 8 if C % 8 == 0 else C
    return 1, tc


def _sa_kernel(x_ref, w_ref, o_ref, sum_ref, max_ref, *, C, H, W):
    """x_ref: (Bt, Tc, H*W); w_ref: SMEM f32[2*K*K]; o_ref: (Bt, 1, H*W)."""
    K = KERNEL_SIZE
    HW = H * W
    PADLEN = PAD * W + PAD                      # worst-case flat offset (3*W+3)
    k = pl.program_id(1)

    # ---- init running accumulators on the first channel tile -----------------
    @pl.when(k == 0)
    def _():
        sum_ref[...] = jnp.zeros_like(sum_ref)
        max_ref[...] = jnp.full_like(max_ref, -jnp.inf)

    # ---- channel-pooling partial reduction (lane-dense (Bt, Tc, HW)) ---------
    xb = x_ref[...].astype(jnp.float32)                      # (Bt, Tc, HW)
    sum_ref[...] = sum_ref[...] + jnp.sum(xb, axis=1)        # (Bt, HW)
    max_ref[...] = jnp.maximum(max_ref[...], jnp.max(xb, axis=1))

    # ---- finalize: 7x7 "same" conv over [avg, max] + sigmoid -----------------
    @pl.when(k == pl.num_programs(1) - 1)
    def _():
        bt = o_ref.shape[0]
        avg = sum_ref[...] * (1.0 / C)                       # mean = sum * 1/C
        mx = max_ref[...]

        # Zero-pad the flat maps along lanes: covers all row under/overflow.
        zpad = jnp.zeros((bt, PADLEN), jnp.float32)
        avg_p = jnp.concatenate([zpad, avg, zpad], axis=1)   # (Bt, HW + 2*PADLEN)
        mx_p = jnp.concatenate([zpad, mx, zpad], axis=1)

        # Column index of every output position (for W-boundary masking).
        col = jax.lax.broadcasted_iota(jnp.int32, (1, HW), 1) % W

        acc = jnp.zeros((bt, HW), jnp.float32)
        for kj in range(K):                                  # 7 independent chains
            dj = kj - PAD
            part = jnp.zeros((bt, HW), jnp.float32)
            for ki in range(K):
                off = PADLEN + (ki - PAD) * W + dj           # static lane offset
                w_a = w_ref[ki * K + kj]                     # SMEM scalar taps
                w_m = w_ref[K * K + ki * K + kj]
                part = part + w_a * avg_p[:, off:off + HW] \
                            + w_m * mx_p[:, off:off + HW]
            cmask = jnp.logical_and(col + dj >= 0, col + dj < W)
            acc = acc + jnp.where(cmask, part, 0.0)

        out = jax.nn.sigmoid(acc)                            # (Bt, HW)
        o_ref[...] = out.reshape(bt, 1, HW).astype(o_ref.dtype)


@jax.jit
def spatial_attention(x, w):
    """x: (B, C, H, W); w: (1, 2, K, K) conv weight (out=1, in=2), no bias."""
    B, C, H, W = x.shape
    HW = H * W
    bt, tc = _pick_tiles(B, C, HW, x.dtype.itemsize)
    nb, nk = B // bt, C // tc

    x_r = x.reshape(B, C, HW)                                # lane-dense view
    w_flat = jnp.asarray(w, jnp.float32).reshape(-1)         # f32[2*K*K] -> SMEM

    kernel = functools.partial(_sa_kernel, C=C, H=H, W=W)

    out = pl.pallas_call(
        kernel,
        out_shape=jax.ShapeDtypeStruct((B, 1, HW), x.dtype),
        grid_spec=pltpu.PrefetchScalarGridSpec(
            num_scalar_prefetch=0,
            grid=(nb, nk),                                   # reduction axis last
            in_specs=[
                pl.BlockSpec((bt, tc, HW), lambda b, k: (b, k, 0)),
                pl.BlockSpec(memory_space=pltpu.MemorySpace.SMEM),
            ],
            out_specs=pl.BlockSpec((bt, 1, HW), lambda b, k: (b, 0, 0)),
            scratch_shapes=[
                pltpu.VMEM((bt, HW), jnp.float32),           # running sum
                pltpu.VMEM((bt, HW), jnp.float32),           # running max
            ],
        ),
        compiler_params=pltpu.CompilerParams(
            dimension_semantics=("parallel", "arbitrary"),
            vmem_limit_bytes=32 * 1024 * 1024,
        ),
    )(x_r, w_flat)

    return out.reshape(B, 1, H, W)


def _reference(x, w):
    """Pure-JAX reference mirroring the PyTorch module."""
    avg = jnp.mean(x, axis=1, keepdims=True)
    mx = jnp.max(x, axis=1, keepdims=True)
    xin = jnp.concatenate([avg, mx], axis=1)                 # (B, 2, H, W)
    y = jax.lax.conv_general_dilated(
        xin.astype(jnp.float32), w.astype(jnp.float32),
        window_strides=(1, 1), padding=[(PAD, PAD), (PAD, PAD)],
        dimension_numbers=("NCHW", "OIHW", "NCHW"),
    )
    return jax.nn.sigmoid(y).astype(x.dtype)


if __name__ == "__main__":
    key = jax.random.PRNGKey(0)
    kx, kw = jax.random.split(key)

    B, C, H, W = 2, 4, 16, 16
    x = jax.random.normal(kx, (B, C, H, W), dtype=jnp.float32)

    # Deterministic conv weight, shape (out=1, in=2, K, K), no bias (as nn.Conv2d).
    fan_in = 2 * KERNEL_SIZE * KERNEL_SIZE
    bound = 1.0 / (fan_in ** 0.5)
    w = jax.random.uniform(kw, (1, 2, KERNEL_SIZE, KERNEL_SIZE),
                           minval=-bound, maxval=bound, dtype=jnp.float32)

    out = spatial_attention(x, w)
    out = jax.block_until_ready(out)

    ref = _reference(x, w)
    assert out.shape == (B, 1, H, W)
    assert jnp.allclose(out, ref, atol=1e-5, rtol=1e-5), "mismatch vs reference"

    print("KERNEL_OK")
</pallas_src>

<mosaic_0001>
module attributes {stable_mosaic.version = 11 : i64} {
  func.func @_sa_kernel(%arg0: i32, %arg1: i32, %arg2: memref<1x4x256xf32, #tpu.memory_space<vmem>>, %arg3: memref<98xf32, #tpu.memory_space<smem>>, %arg4: memref<1x1x256xf32, #tpu.memory_space<vmem>>, %arg5: memref<1x256xf32, #tpu.memory_space<vmem>>, %arg6: memref<1x256xf32, #tpu.memory_space<vmem>>) attributes {dimension_semantics = [#tpu.dimension_semantics<parallel>, #tpu.dimension_semantics<arbitrary>], iteration_bounds = array<i64: 2, 1>, scalar_prefetch = 0 : i64, scratch_operands = 2 : i64, tpu.core_type = #tpu.core_type<tc>, window_params = [{transform_indices = @transform_0, window_bounds = array<i64: 1, 4, 256>}, {transform_indices = @transform_1, window_bounds = array<i64: 98>}, {transform_indices = @transform_2, window_bounds = array<i64: 1, 1, 256>}]} {
    %c0_i32 = arith.constant 0 : i32
    %0 = arith.cmpi eq, %arg1, %c0_i32 : i32
    %1 = arith.extui %0 : i1 to i32
    %c0_i32_0 = arith.constant 0 : i32
    %2 = arith.cmpi ne, %1, %c0_i32_0 : i32
    scf.if %2 {
      %cst_14 = arith.constant 0.000000e+00 : f32
      %15 = vector.broadcast %cst_14 : f32 to vector<1x256xf32>
      %c0_15 = arith.constant 0 : index
      %c0_16 = arith.constant 0 : index
      %16 = vector.load %arg5[%c0_15, %c0_16] : memref<1x256xf32, #tpu.memory_space<vmem>>, vector<1x256xf32>
      tpu.vector_store %arg5[%c0_15, %c0_16], %15 {strides = array<i32>} : memref<1x256xf32, #tpu.memory_space<vmem>>, vector<1x256xf32>,
      %cst_17 = arith.constant 0xFF800000 : f32
      %17 = vector.broadcast %cst_17 : f32 to vector<1x256xf32>
      %c0_18 = arith.constant 0 : index
      %c0_19 = arith.constant 0 : index
      %18 = vector.load %arg6[%c0_18, %c0_19] : memref<1x256xf32, #tpu.memory_space<vmem>>, vector<1x256xf32>
      tpu.vector_store %arg6[%c0_18, %c0_19], %17 {strides = array<i32>} : memref<1x256xf32, #tpu.memory_space<vmem>>, vector<1x256xf32>,
    } else {
    }
    %c0 = arith.constant 0 : index
    %c0_1 = arith.constant 0 : index
    %c0_2 = arith.constant 0 : index
    %3 = vector.load %arg2[%c0, %c0_1, %c0_2] : memref<1x4x256xf32, #tpu.memory_space<vmem>>, vector<1x4x256xf32>
    %c0_3 = arith.constant 0 : index
    %c0_4 = arith.constant 0 : index
    %4 = vector.load %arg5[%c0_3, %c0_4] : memref<1x256xf32, #tpu.memory_space<vmem>>, vector<1x256xf32>
    %cst = arith.constant dense<0.000000e+00> : vector<1x256xf32>
    %5 = vector.multi_reduction <add>, %3, %cst [1] : vector<1x4x256xf32> to vector<1x256xf32>
    %6 = arith.addf %4, %5 : vector<1x256xf32>
    %c0_5 = arith.constant 0 : index
    %c0_6 = arith.constant 0 : index
    %7 = vector.load %arg5[%c0_5, %c0_6] : memref<1x256xf32, #tpu.memory_space<vmem>>, vector<1x256xf32>
    tpu.vector_store %arg5[%c0_5, %c0_6], %6 {strides = array<i32>} : memref<1x256xf32, #tpu.memory_space<vmem>>, vector<1x256xf32>,
    %c0_7 = arith.constant 0 : index
    %c0_8 = arith.constant 0 : index
    %8 = vector.load %arg6[%c0_7, %c0_8] : memref<1x256xf32, #tpu.memory_space<vmem>>, vector<1x256xf32>
    %cst_9 = arith.constant dense<0xFF800000> : vector<1x256xf32>
    %9 = vector.multi_reduction <maximumf>, %3, %cst_9 [1] : vector<1x4x256xf32> to vector<1x256xf32>
    %10 = arith.maximumf %8, %9 : vector<1x256xf32>
    %c0_10 = arith.constant 0 : index
    %c0_11 = arith.constant 0 : index
    %11 = vector.load %arg6[%c0_10, %c0_11] : memref<1x256xf32, #tpu.memory_space<vmem>>, vector<1x256xf32>
    tpu.vector_store %arg6[%c0_10, %c0_11], %10 {strides = array<i32>} : memref<1x256xf32, #tpu.memory_space<vmem>>, vector<1x256xf32>,
    %c0_i32_12 = arith.constant 0 : i32
    %12 = arith.cmpi eq, %arg1, %c0_i32_12 : i32
    %13 = arith.extui %12 : i1 to i32
    %c0_i32_13 = arith.constant 0 : i32
    %14 = arith.cmpi ne, %13, %c0_i32_13 : i32
    scf.if %14 {
      %c0_14 = arith.constant 0 : index
      %c0_15 = arith.constant 0 : index
      %15 = vector.load %arg5[%c0_14, %c0_15] : memref<1x256xf32, #tpu.memory_space<vmem>>, vector<1x256xf32>
      %cst_16 = arith.constant 2.500000e-01 : f32
      %16 = vector.broadcast %cst_16 : f32 to vector<1x256xf32>
      %17 = arith.mulf %15, %16 : vector<1x256xf32>
      %c0_17 = arith.constant 0 : index
      %c0_18 = arith.constant 0 : index
      %18 = vector.load %arg6[%c0_17, %c0_18] : memref<1x256xf32, #tpu.memory_space<vmem>>, vector<1x256xf32>
      %cst_19 = arith.constant 0.000000e+00 : f32
      %19 = vector.broadcast %cst_19 : f32 to vector<1x51xf32>
      %20 = tpu.concatenate %19, %17, %19 in 1 : vector<1x51xf32>, vector<1x256xf32>, vector<1x51xf32> -> vector<1x358xf32>
      %21 = tpu.concatenate %19, %18, %19 in 1 : vector<1x51xf32>, vector<1x256xf32>, vector<1x51xf32> -> vector<1x358xf32>
      %22 = tpu.iota {dimensions = array<i32: 1>} : vector<1x256xi32>
      %c16_i32 = arith.constant 16 : i32
      %c0_i32_20 = arith.constant 0 : i32
      %23 = arith.cmpi eq, %c16_i32, %c0_i32_20 : i32
      %c1_i32 = arith.constant 1 : i32
      %24 = arith.select %23, %c1_i32, %c16_i32 : i32
      %25 = vector.broadcast %24 : i32 to vector<1x256xi32>
      %26 = arith.remsi %22, %25 : vector<1x256xi32>
      %c0_i32_21 = arith.constant 0 : i32
      %27 = vector.broadcast %c0_i32_21 : i32 to vector<1x256xi32>
      %28 = arith.cmpi ne, %26, %27 : vector<1x256xi32>
      %c0_i32_22 = arith.constant 0 : i32
      %29 = vector.broadcast %c0_i32_22 : i32 to vector<1x256xi32>
      %30 = arith.cmpi slt, %26, %29 : vector<1x256xi32>
      %c0_i32_23 = arith.constant 0 : i32
      %31 = arith.cmpi slt, %24, %c0_i32_23 : i32
      %32 = vector.broadcast %31 : i1 to vector<1x256xi1>
      %33 = vector.broadcast %32 : vector<1x256xi1> to vector<1x256xi1>
      %34 = arith.xori %30, %33 : vector<1x256xi1>
      %35 = arith.andi %34, %28 : vector<1x256xi1>
      %36 = vector.broadcast %24 : i32 to vector<1x256xi32>
      %37 = arith.addi %26, %36 : vector<1x256xi32>
      %38 = arith.select %35, %37, %26 : vector<1x256xi1>, vector<1x256xi32>
      %cst_24 = arith.constant 0.000000e+00 : f32
      %39 = vector.broadcast %cst_24 : f32 to vector<1x256xf32>
      %cst_25 = arith.constant 0.000000e+00 : f32
      %40 = vector.broadcast %cst_25 : f32 to vector<1x256xf32>
      %c0_26 = arith.constant 0 : index
      %41 = memref.load %arg3[%c0_26] : memref<98xf32, #tpu.memory_space<smem>>
      %c49 = arith.constant 49 : index
      %42 = memref.load %arg3[%c49] : memref<98xf32, #tpu.memory_space<smem>>
      %43 = vector.extract_strided_slice %20 {offsets = [0, 0], sizes = [1, 256], strides = [1, 1]} : vector<1x358xf32> to vector<1x256xf32>
      %44 = vector.broadcast %41 : f32 to vector<1x256xf32>
      %45 = arith.mulf %44, %43 : vector<1x256xf32>
      %46 = arith.addf %40, %45 : vector<1x256xf32>
      %47 = vector.extract_strided_slice %21 {offsets = [0, 0], sizes = [1, 256], strides = [1, 1]} : vector<1x358xf32> to vector<1x256xf32>
      %48 = vector.broadcast %42 : f32 to vector<1x256xf32>
      %49 = arith.mulf %48, %47 : vector<1x256xf32>
      %50 = arith.addf %46, %49 : vector<1x256xf32>
      %c7 = arith.constant 7 : index
      %51 = memref.load %arg3[%c7] : memref<98xf32, #tpu.memory_space<smem>>
      %c56 = arith.constant 56 : index
      %52 = memref.load %arg3[%c56] : memref<98xf32, #tpu.memory_space<smem>>
      %53 = vector.extract_strided_slice %20 {offsets = [0, 16], sizes = [1, 256], strides = [1, 1]} : vector<1x358xf32> to vector<1x256xf32>
      %54 = vector.broadcast %51 : f32 to vector<1x256xf32>
      %55 = arith.mulf %54, %53 : vector<1x256xf32>
      %56 = arith.addf %50, %55 : vector<1x256xf32>
      %57 = vector.extract_strided_slice %21 {offsets = [0, 16], sizes = [1, 256], strides = [1, 1]} : vector<1x358xf32> to vector<1x256xf32>
      %58 = vector.broadcast %52 : f32 to vector<1x256xf32>
      %59 = arith.mulf %58, %57 : vector<1x256xf32>
      %60 = arith.addf %56, %59 : vector<1x256xf32>
      %c14 = arith.constant 14 : index
      %61 = memref.load %arg3[%c14] : memref<98xf32, #tpu.memory_space<smem>>
      %c63 = arith.constant 63 : index
      %62 = memref.load %arg3[%c63] : memref<98xf32, #tpu.memory_space<smem>>
      %63 = vector.extract_strided_slice %20 {offsets = [0, 32], sizes = [1, 256], strides = [1, 1]} : vector<1x358xf32> to vector<1x256xf32>
      %64 = vector.broadcast %61 : f32 to vector<1x256xf32>
      %65 = arith.mulf %64, %63 : vector<1x256xf32>
      %66 = arith.addf %60, %65 : vector<1x256xf32>
      %67 = vector.extract_strided_slice %21 {offsets = [0, 32], sizes = [1, 256], strides = [1, 1]} : vector<1x358xf32> to vector<1x256xf32>
      %68 = vector.broadcast %62 : f32 to vector<1x256xf32>
      %69 = arith.mulf %68, %67 : vector<1x256xf32>
      %70 = arith.addf %66, %69 : vector<1x256xf32>
      %c21 = arith.constant 21 : index
      %71 = memref.load %arg3[%c21] : memref<98xf32, #tpu.memory_space<smem>>
      %c70 = arith.constant 70 : index
      %72 = memref.load %arg3[%c70] : memref<98xf32, #tpu.memory_space<smem>>
      %73 = vector.extract_strided_slice %20 {offsets = [0, 48], sizes = [1, 256], strides = [1, 1]} : vector<1x358xf32> to vector<1x256xf32>
      %74 = vector.broadcast %71 : f32 to vector<1x256xf32>
      %75 = arith.mulf %74, %73 : vector<1x256xf32>
      %76 = arith.addf %70, %75 : vector<1x256xf32>
      %77 = vector.extract_strided_slice %21 {offsets = [0, 48], sizes = [1, 256], strides = [1, 1]} : vector<1x358xf32> to vector<1x256xf32>
      %78 = vector.broadcast %72 : f32 to vector<1x256xf32>
      %79 = arith.mulf %78, %77 : vector<1x256xf32>
      %80 = arith.addf %76, %79 : vector<1x256xf32>
      %c28 = arith.constant 28 : index
      %81 = memref.load %arg3[%c28] : memref<98xf32, #tpu.memory_space<smem>>
      %c77 = arith.constant 77 : index
      %82 = memref.load %arg3[%c77] : memref<98xf32, #tpu.memory_space<smem>>
      %83 = vector.extract_strided_slice %20 {offsets = [0, 64], sizes = [1, 256], strides = [1, 1]} : vector<1x358xf32> to vector<1x256xf32>
      %84 = vector.broadcast %81 : f32 to vector<1x256xf32>
      %85 = arith.mulf %84, %83 : vector<1x256xf32>
      %86 = arith.addf %80, %85 : vector<1x256xf32>
      %87 = vector.extract_strided_slice %21 {offsets = [0, 64], sizes = [1, 256], strides = [1, 1]} : vector<1x358xf32> to vector<1x256xf32>
      %88 = vector.broadcast %82 : f32 to vector<1x256xf32>
      %89 = arith.mulf %88, %87 : vector<1x256xf32>
      %90 = arith.addf %86, %89 : vector<1x256xf32>
      %c35 = arith.constant 35 : index
      %91 = memref.load %arg3[%c35] : memref<98xf32, #tpu.memory_space<smem>>
      %c84 = arith.constant 84 : index
      %92 = memref.load %arg3[%c84] : memref<98xf32, #tpu.memory_space<smem>>
      %93 = vector.extract_strided_slice %20 {offsets = [0, 80], sizes = [1, 256], strides = [1, 1]} : vector<1x358xf32> to vector<1x256xf32>
      %94 = vector.broadcast %91 : f32 to vector<1x256xf32>
      %95 = arith.mulf %94, %93 : vector<1x256xf32>
      %96 = arith.addf %90, %95 : vector<1x256xf32>
      %97 = vector.extract_strided_slice %21 {offsets = [0, 80], sizes = [1, 256], strides = [1, 1]} : vector<1x358xf32> to vector<1x256xf32>
      %98 = vector.broadcast %92 : f32 to vector<1x256xf32>
      %99 = arith.mulf %98, %97 : vector<1x256xf32>
      %100 = arith.addf %96, %99 : vector<1x256xf32>
      %c42 = arith.constant 42 : index
      %101 = memref.load %arg3[%c42] : memref<98xf32, #tpu.memory_space<smem>>
      %c91 = arith.constant 91 : index
      %102 = memref.load %arg3[%c91] : memref<98xf32, #tpu.memory_space<smem>>
      %103 = vector.extract_strided_slice %20 {offsets = [0, 96], sizes = [1, 256], strides = [1, 1]} : vector<1x358xf32> to vector<1x256xf32>
      %104 = vector.broadcast %101 : f32 to vector<1x256xf32>
      %105 = arith.mulf %104, %103 : vector<1x256xf32>
      %106 = arith.addf %100, %105 : vector<1x256xf32>
      %107 = vector.extract_strided_slice %21 {offsets = [0, 96], sizes = [1, 256], strides = [1, 1]} : vector<1x358xf32> to vector<1x256xf32>
      %108 = vector.broadcast %102 : f32 to vector<1x256xf32>
      %109 = arith.mulf %108, %107 : vector<1x256xf32>
      %110 = arith.addf %106, %109 : vector<1x256xf32>
      %c-3_i32 = arith.constant -3 : i32
      %111 = vector.broadcast %c-3_i32 : i32 to vector<1x256xi32>
      %112 = arith.addi %38, %111 : vector<1x256xi32>
      %c0_i32_27 = arith.constant 0 : i32
      %113 = vector.broadcast %c0_i32_27 : i32 to vector<1x256xi32>
      %114 = arith.cmpi sge, %112, %113 : vector<1x256xi32>
      %c-3_i32_28 = arith.constant -3 : i32
      %115 = vector.broadcast %c-3_i32_28 : i32 to vector<1x256xi32>
      %116 = arith.addi %38, %115 : vector<1x256xi32>
      %c16_i32_29 = arith.constant 16 : i32
      %117 = vector.broadcast %c16_i32_29 : i32 to vector<1x256xi32>
      %118 = arith.cmpi slt, %116, %117 : vector<1x256xi32>
      %119 = arith.andi %114, %118 : vector<1x256xi1>
      %cst_30 = arith.constant 0.000000e+00 : f32
      %120 = vector.broadcast %cst_30 : f32 to vector<1x256xf32>
      %121 = arith.select %119, %110, %120 : vector<1x256xi1>, vector<1x256xf32>
      %122 = arith.addf %39, %121 : vector<1x256xf32>
      %cst_31 = arith.constant 0.000000e+00 : f32
      %123 = vector.broadcast %cst_31 : f32 to vector<1x256xf32>
      %c1 = arith.constant 1 : index
      %124 = memref.load %arg3[%c1] : memref<98xf32, #tpu.memory_space<smem>>
      %c50 = arith.constant 50 : index
      %125 = memref.load %arg3[%c50] : memref<98xf32, #tpu.memory_space<smem>>
      %126 = vector.extract_strided_slice %20 {offsets = [0, 1], sizes = [1, 256], strides = [1, 1]} : vector<1x358xf32> to vector<1x256xf32>
      %127 = vector.broadcast %124 : f32 to vector<1x256xf32>
      %128 = arith.mulf %127, %126 : vector<1x256xf32>
      %129 = arith.addf %123, %128 : vector<1x256xf32>
      %130 = vector.extract_strided_slice %21 {offsets = [0, 1], sizes = [1, 256], strides = [1, 1]} : vector<1x358xf32> to vector<1x256xf32>
      %131 = vector.broadcast %125 : f32 to vector<1x256xf32>
      %132 = arith.mulf %131, %130 : vector<1x256xf32>
      %133 = arith.addf %129, %132 : vector<1x256xf32>
      %c8 = arith.constant 8 : index
      %134 = memref.load %arg3[%c8] : memref<98xf32, #tpu.memory_space<smem>>
      %c57 = arith.constant 57 : index
      %135 = memref.load %arg3[%c57] : memref<98xf32, #tpu.memory_space<smem>>
      %136 = vector.extract_strided_slice %20 {offsets = [0, 17], sizes = [1, 256], strides = [1, 1]} : vector<1x358xf32> to vector<1x256xf32>
      %137 = vector.broadcast %134 : f32 to vector<1x256xf32>
      %138 = arith.mulf %137, %136 : vector<1x256xf32>
      %139 = arith.addf %133, %138 : vector<1x256xf32>
      %140 = vector.extract_strided_slice %21 {offsets = [0, 17], sizes = [1, 256], strides = [1, 1]} : vector<1x358xf32> to vector<1x256xf32>
      %141 = vector.broadcast %135 : f32 to vector<1x256xf32>
      %142 = arith.mulf %141, %140 : vector<1x256xf32>
      %143 = arith.addf %139, %142 : vector<1x256xf32>
      %c15 = arith.constant 15 : index
      %144 = memref.load %arg3[%c15] : memref<98xf32, #tpu.memory_space<smem>>
      %c64 = arith.constant 64 : index
      %145 = memref.load %arg3[%c64] : memref<98xf32, #tpu.memory_space<smem>>
      %146 = vector.extract_strided_slice %20 {offsets = [0, 33], sizes = [1, 256], strides = [1, 1]} : vector<1x358xf32> to vector<1x256xf32>
      %147 = vector.broadcast %144 : f32 to vector<1x256xf32>
      %148 = arith.mulf %147, %146 : vector<1x256xf32>
      %149 = arith.addf %143, %148 : vector<1x256xf32>
      %150 = vector.extract_strided_slice %21 {offsets = [0, 33], sizes = [1, 256], strides = [1, 1]} : vector<1x358xf32> to vector<1x256xf32>
      %151 = vector.broadcast %145 : f32 to vector<1x256xf32>
      %152 = arith.mulf %151, %150 : vector<1x256xf32>
      %153 = arith.addf %149, %152 : vector<1x256xf32>
      %c22 = arith.constant 22 : index
      %154 = memref.load %arg3[%c22] : memref<98xf32, #tpu.memory_space<smem>>
      %c71 = arith.constant 71 : index
      %155 = memref.load %arg3[%c71] : memref<98xf32, #tpu.memory_space<smem>>
      %156 = vector.extract_strided_slice %20 {offsets = [0, 49], sizes = [1, 256], strides = [1, 1]} : vector<1x358xf32> to vector<1x256xf32>
      %157 = vector.broadcast %154 : f32 to vector<1x256xf32>
      %158 = arith.mulf %157, %156 : vector<1x256xf32>
      %159 = arith.addf %153, %158 : vector<1x256xf32>
      %160 = vector.extract_strided_slice %21 {offsets = [0, 49], sizes = [1, 256], strides = [1, 1]} : vector<1x358xf32> to vector<1x256xf32>
      %161 = vector.broadcast %155 : f32 to vector<1x256xf32>
      %162 = arith.mulf %161, %160 : vector<1x256xf32>
      %163 = arith.addf %159, %162 : vector<1x256xf32>
      %c29 = arith.constant 29 : index
      %164 = memref.load %arg3[%c29] : memref<98xf32, #tpu.memory_space<smem>>
      %c78 = arith.constant 78 : index
      %165 = memref.load %arg3[%c78] : memref<98xf32, #tpu.memory_space<smem>>
      %166 = vector.extract_strided_slice %20 {offsets = [0, 65], sizes = [1, 256], strides = [1, 1]} : vector<1x358xf32> to vector<1x256xf32>
      %167 = vector.broadcast %164 : f32 to vector<1x256xf32>
      %168 = arith.mulf %167, %166 : vector<1x256xf32>
      %169 = arith.addf %163, %168 : vector<1x256xf32>
      %170 = vector.extract_strided_slice %21 {offsets = [0, 65], sizes = [1, 256], strides = [1, 1]} : vector<1x358xf32> to vector<1x256xf32>
      %171 = vector.broadcast %165 : f32 to vector<1x256xf32>
      %172 = arith.mulf %171, %170 : vector<1x256xf32>
      %173 = arith.addf %169, %172 : vector<1x256xf32>
      %c36 = arith.constant 36 : index
      %174 = memref.load %arg3[%c36] : memref<98xf32, #tpu.memory_space<smem>>
      %c85 = arith.constant 85 : index
      %175 = memref.load %arg3[%c85] : memref<98xf32, #tpu.memory_space<smem>>
      %176 = vector.extract_strided_slice %20 {offsets = [0, 81], sizes = [1, 256], strides = [1, 1]} : vector<1x358xf32> to vector<1x256xf32>
      %177 = vector.broadcast %174 : f32 to vector<1x256xf32>
      %178 = arith.mulf %177, %176 : vector<1x256xf32>
      %179 = arith.addf %173, %178 : vector<1x256xf32>
      %180 = vector.extract_strided_slice %21 {offsets = [0, 81], sizes = [1, 256], strides = [1, 1]} : vector<1x358xf32> to vector<1x256xf32>
      %181 = vector.broadcast %175 : f32 to vector<1x256xf32>
      %182 = arith.mulf %181, %180 : vector<1x256xf32>
      %183 = arith.addf %179, %182 : vector<1x256xf32>
      %c43 = arith.constant 43 : index
      %184 = memref.load %arg3[%c43] : memref<98xf32, #tpu.memory_space<smem>>
      %c92 = arith.constant 92 : index
      %185 = memref.load %arg3[%c92] : memref<98xf32, #tpu.memory_space<smem>>
      %186 = vector.extract_strided_slice %20 {offsets = [0, 97], sizes = [1, 256], strides = [1, 1]} : vector<1x358xf32> to vector<1x256xf32>
      %187 = vector.broadcast %184 : f32 to vector<1x256xf32>
      %188 = arith.mulf %187, %186 : vector<1x256xf32>
      %189 = arith.addf %183, %188 : vector<1x256xf32>
      %190 = vector.extract_strided_slice %21 {offsets = [0, 97], sizes = [1, 256], strides = [1, 1]} : vector<1x358xf32> to vector<1x256xf32>
      %191 = vector.broadcast %185 : f32 to vector<1x256xf32>
      %192 = arith.mulf %191, %190 : vector<1x256xf32>
      %193 = arith.addf %189, %192 : vector<1x256xf32>
      %c-2_i32 = arith.constant -2 : i32
      %194 = vector.broadcast %c-2_i32 : i32 to vector<1x256xi32>
      %195 = arith.addi %38, %194 : vector<1x256xi32>
      %c0_i32_32 = arith.constant 0 : i32
      %196 = vector.broadcast %c0_i32_32 : i32 to vector<1x256xi32>
      %197 = arith.cmpi sge, %195, %196 : vector<1x256xi32>
      %c-2_i32_33 = arith.constant -2 : i32
      %198 = vector.broadcast %c-2_i32_33 : i32 to vector<1x256xi32>
      %199 = arith.addi %38, %198 : vector<1x256xi32>
      %c16_i32_34 = arith.constant 16 : i32
      %200 = vector.broadcast %c16_i32_34 : i32 to vector<1x256xi32>
      %201 = arith.cmpi slt, %199, %200 : vector<1x256xi32>
      %202 = arith.andi %197, %201 : vector<1x256xi1>
      %cst_35 = arith.constant 0.000000e+00 : f32
      %203 = vector.broadcast %cst_35 : f32 to vector<1x256xf32>
      %204 = arith.select %202, %193, %203 : vector<1x256xi1>, vector<1x256xf32>
      %205 = arith.addf %122, %204 : vector<1x256xf32>
      %cst_36 = arith.constant 0.000000e+00 : f32
      %206 = vector.broadcast %cst_36 : f32 to vector<1x256xf32>
      %c2 = arith.constant 2 : index
      %207 = memref.load %arg3[%c2] : memref<98xf32, #tpu.memory_space<smem>>
      %c51 = arith.constant 51 : index
      %208 = memref.load %arg3[%c51] : memref<98xf32, #tpu.memory_space<smem>>
      %209 = vector.extract_strided_slice %20 {offsets = [0, 2], sizes = [1, 256], strides = [1, 1]} : vector<1x358xf32> to vector<1x256xf32>
      %210 = vector.broadcast %207 : f32 to vector<1x256xf32>
      %211 = arith.mulf %210, %209 : vector<1x256xf32>
      %212 = arith.addf %206, %211 : vector<1x256xf32>
      %213 = vector.extract_strided_slice %21 {offsets = [0, 2], sizes = [1, 256], strides = [1, 1]} : vector<1x358xf32> to vector<1x256xf32>
      %214 = vector.broadcast %208 : f32 to vector<1x256xf32>
      %215 = arith.mulf %214, %213 : vector<1x256xf32>
      %216 = arith.addf %212, %215 : vector<1x256xf32>
      %c9 = arith.constant 9 : index
      %217 = memref.load %arg3[%c9] : memref<98xf32, #tpu.memory_space<smem>>
      %c58 = arith.constant 58 : index
      %218 = memref.load %arg3[%c58] : memref<98xf32, #tpu.memory_space<smem>>
      %219 = vector.extract_strided_slice %20 {offsets = [0, 18], sizes = [1, 256], strides = [1, 1]} : vector<1x358xf32> to vector<1x256xf32>
      %220 = vector.broadcast %217 : f32 to vector<1x256xf32>
      %221 = arith.mulf %220, %219 : vector<1x256xf32>
      %222 = arith.addf %216, %221 : vector<1x256xf32>
      %223 = vector.extract_strided_slice %21 {offsets = [0, 18], sizes = [1, 256], strides = [1, 1]} : vector<1x358xf32> to vector<1x256xf32>
      %224 = vector.broadcast %218 : f32 to vector<1x256xf32>
      %225 = arith.mulf %224, %223 : vector<1x256xf32>
      %226 = arith.addf %222, %225 : vector<1x256xf32>
      %c16 = arith.constant 16 : index
      %227 = memref.load %arg3[%c16] : memref<98xf32, #tpu.memory_space<smem>>
      %c65 = arith.constant 65 : index
      %228 = memref.load %arg3[%c65] : memref<98xf32, #tpu.memory_space<smem>>
      %229 = vector.extract_strided_slice %20 {offsets = [0, 34], sizes = [1, 256], strides = [1, 1]} : vector<1x358xf32> to vector<1x256xf32>
      %230 = vector.broadcast %227 : f32 to vector<1x256xf32>
      %231 = arith.mulf %230, %229 : vector<1x256xf32>
      %232 = arith.addf %226, %231 : vector<1x256xf32>
      %233 = vector.extract_strided_slice %21 {offsets = [0, 34], sizes = [1, 256], strides = [1, 1]} : vector<1x358xf32> to vector<1x256xf32>
      %234 = vector.broadcast %228 : f32 to vector<1x256xf32>
      %235 = arith.mulf %234, %233 : vector<1x256xf32>
      %236 = arith.addf %232, %235 : vector<1x256xf32>
      %c23 = arith.constant 23 : index
      %237 = memref.load %arg3[%c23] : memref<98xf32, #tpu.memory_space<smem>>
      %c72 = arith.constant 72 : index
      %238 = memref.load %arg3[%c72] : memref<98xf32, #tpu.memory_space<smem>>
      %239 = vector.extract_strided_slice %20 {offsets = [0, 50], sizes = [1, 256], strides = [1, 1]} : vector<1x358xf32> to vector<1x256xf32>
      %240 = vector.broadcast %237 : f32 to vector<1x256xf32>
      %241 = arith.mulf %240, %239 : vector<1x256xf32>
      %242 = arith.addf %236, %241 : vector<1x256xf32>
      %243 = vector.extract_strided_slice %21 {offsets = [0, 50], sizes = [1, 256], strides = [1, 1]} : vector<1x358xf32> to vector<1x256xf32>
      %244 = vector.broadcast %238 : f32 to vector<1x256xf32>
      %245 = arith.mulf %244, %243 : vector<1x256xf32>
      %246 = arith.addf %242, %245 : vector<1x256xf32>
      %c30 = arith.constant 30 : index
      %247 = memref.load %arg3[%c30] : memref<98xf32, #tpu.memory_space<smem>>
      %c79 = arith.constant 79 : index
      %248 = memref.load %arg3[%c79] : memref<98xf32, #tpu.memory_space<smem>>
      %249 = vector.extract_strided_slice %20 {offsets = [0, 66], sizes = [1, 256], strides = [1, 1]} : vector<1x358xf32> to vector<1x256xf32>
      %250 = vector.broadcast %247 : f32 to vector<1x256xf32>
      %251 = arith.mulf %250, %249 : vector<1x256xf32>
      %252 = arith.addf %246, %251 : vector<1x256xf32>
      %253 = vector.extract_strided_slice %21 {offsets = [0, 66], sizes = [1, 256], strides = [1, 1]} : vector<1x358xf32> to vector<1x256xf32>
      %254 = vector.broadcast %248 : f32 to vector<1x256xf32>
      %255 = arith.mulf %254, %253 : vector<1x256xf32>
      %256 = arith.addf %252, %255 : vector<1x256xf32>
      %c37 = arith.constant 37 : index
      %257 = memref.load %arg3[%c37] : memref<98xf32, #tpu.memory_space<smem>>
      %c86 = arith.constant 86 : index
      %258 = memref.load %arg3[%c86] : memref<98xf32, #tpu.memory_space<smem>>
      %259 = vector.extract_strided_slice %20 {offsets = [0, 82], sizes = [1, 256], strides = [1, 1]} : vector<1x358xf32> to vector<1x256xf32>
      %260 = vector.broadcast %257 : f32 to vector<1x256xf32>
      %261 = arith.mulf %260, %259 : vector<1x256xf32>
      %262 = arith.addf %256, %261 : vector<1x256xf32>
      %263 = vector.extract_strided_slice %21 {offsets = [0, 82], sizes = [1, 256], strides = [1, 1]} : vector<1x358xf32> to vector<1x256xf32>
      %264 = vector.broadcast %258 : f32 to vector<1x256xf32>
      %265 = arith.mulf %264, %263 : vector<1x256xf32>
      %266 = arith.addf %262, %265 : vector<1x256xf32>
      %c44 = arith.constant 44 : index
      %267 = memref.load %arg3[%c44] : memref<98xf32, #tpu.memory_space<smem>>
      %c93 = arith.constant 93 : index
      %268 = memref.load %arg3[%c93] : memref<98xf32, #tpu.memory_space<smem>>
      %269 = vector.extract_strided_slice %20 {offsets = [0, 98], sizes = [1, 256], strides = [1, 1]} : vector<1x358xf32> to vector<1x256xf32>
      %270 = vector.broadcast %267 : f32 to vector<1x256xf32>
      %271 = arith.mulf %270, %269 : vector<1x256xf32>
      %272 = arith.addf %266, %271 : vector<1x256xf32>
      %273 = vector.extract_strided_slice %21 {offsets = [0, 98], sizes = [1, 256], strides = [1, 1]} : vector<1x358xf32> to vector<1x256xf32>
      %274 = vector.broadcast %268 : f32 to vector<1x256xf32>
      %275 = arith.mulf %274, %273 : vector<1x256xf32>
      %276 = arith.addf %272, %275 : vector<1x256xf32>
      %c-1_i32 = arith.constant -1 : i32
      %277 = vector.broadcast %c-1_i32 : i32 to vector<1x256xi32>
      %278 = arith.addi %38, %277 : vector<1x256xi32>
      %c0_i32_37 = arith.constant 0 : i32
      %279 = vector.broadcast %c0_i32_37 : i32 to vector<1x256xi32>
      %280 = arith.cmpi sge, %278, %279 : vector<1x256xi32>
      %c-1_i32_38 = arith.constant -1 : i32
      %281 = vector.broadcast %c-1_i32_38 : i32 to vector<1x256xi32>
      %282 = arith.addi %38, %281 : vector<1x256xi32>
      %c16_i32_39 = arith.constant 16 : i32
      %283 = vector.broadcast %c16_i32_39 : i32 to vector<1x256xi32>
      %284 = arith.cmpi slt, %282, %283 : vector<1x256xi32>
      %285 = arith.andi %280, %284 : vector<1x256xi1>
      %cst_40 = arith.constant 0.000000e+00 : f32
      %286 = vector.broadcast %cst_40 : f32 to vector<1x256xf32>
      %287 = arith.select %285, %276, %286 : vector<1x256xi1>, vector<1x256xf32>
      %288 = arith.addf %205, %287 : vector<1x256xf32>
      %cst_41 = arith.constant 0.000000e+00 : f32
      %289 = vector.broadcast %cst_41 : f32 to vector<1x256xf32>
      %c3 = arith.constant 3 : index
      %290 = memref.load %arg3[%c3] : memref<98xf32, #tpu.memory_space<smem>>
      %c52 = arith.constant 52 : index
      %291 = memref.load %arg3[%c52] : memref<98xf32, #tpu.memory_space<smem>>
      %292 = vector.extract_strided_slice %20 {offsets = [0, 3], sizes = [1, 256], strides = [1, 1]} : vector<1x358xf32> to vector<1x256xf32>
      %293 = vector.broadcast %290 : f32 to vector<1x256xf32>
      %294 = arith.mulf %293, %292 : vector<1x256xf32>
      %295 = arith.addf %289, %294 : vector<1x256xf32>
      %296 = vector.extract_strided_slice %21 {offsets = [0, 3], sizes = [1, 256], strides = [1, 1]} : vector<1x358xf32> to vector<1x256xf32>
      %297 = vector.broadcast %291 : f32 to vector<1x256xf32>
      %298 = arith.mulf %297, %296 : vector<1x256xf32>
      %299 = arith.addf %295, %298 : vector<1x256xf32>
      %c10 = arith.constant 10 : index
      %300 = memref.load %arg3[%c10] : memref<98xf32, #tpu.memory_space<smem>>
      %c59 = arith.constant 59 : index
      %301 = memref.load %arg3[%c59] : memref<98xf32, #tpu.memory_space<smem>>
      %302 = vector.extract_strided_slice %20 {offsets = [0, 19], sizes = [1, 256], strides = [1, 1]} : vector<1x358xf32> to vector<1x256xf32>
      %303 = vector.broadcast %300 : f32 to vector<1x256xf32>
      %304 = arith.mulf %303, %302 : vector<1x256xf32>
      %305 = arith.addf %299, %304 : vector<1x256xf32>
      %306 = vector.extract_strided_slice %21 {offsets = [0, 19], sizes = [1, 256], strides = [1, 1]} : vector<1x358xf32> to vector<1x256xf32>
      %307 = vector.broadcast %301 : f32 to vector<1x256xf32>
      %308 = arith.mulf %307, %306 : vector<1x256xf32>
      %309 = arith.addf %305, %308 : vector<1x256xf32>
      %c17 = arith.constant 17 : index
      %310 = memref.load %arg3[%c17] : memref<98xf32, #tpu.memory_space<smem>>
      %c66 = arith.constant 66 : index
      %311 = memref.load %arg3[%c66] : memref<98xf32, #tpu.memory_space<smem>>
      %312 = vector.extract_strided_slice %20 {offsets = [0, 35], sizes = [1, 256], strides = [1, 1]} : vector<1x358xf32> to vector<1x256xf32>
      %313 = vector.broadcast %310 : f32 to vector<1x256xf32>
      %314 = arith.mulf %313, %312 : vector<1x256xf32>
      %315 = arith.addf %309, %314 : vector<1x256xf32>
      %316 = vector.extract_strided_slice %21 {offsets = [0, 35], sizes = [1, 256], strides = [1, 1]} : vector<1x358xf32> to vector<1x256xf32>
      %317 = vector.broadcast %311 : f32 to vector<1x256xf32>
      %318 = arith.mulf %317, %316 : vector<1x256xf32>
      %319 = arith.addf %315, %318 : vector<1x256xf32>
      %c24 = arith.constant 24 : index
      %320 = memref.load %arg3[%c24] : memref<98xf32, #tpu.memory_space<smem>>
      %c73 = arith.constant 73 : index
      %321 = memref.load %arg3[%c73] : memref<98xf32, #tpu.memory_space<smem>>
      %322 = vector.extract_strided_slice %20 {offsets = [0, 51], sizes = [1, 256], strides = [1, 1]} : vector<1x358xf32> to vector<1x256xf32>
      %323 = vector.broadcast %320 : f32 to vector<1x256xf32>
      %324 = arith.mulf %323, %322 : vector<1x256xf32>
      %325 = arith.addf %319, %324 : vector<1x256xf32>
      %326 = vector.extract_strided_slice %21 {offsets = [0, 51], sizes = [1, 256], strides = [1, 1]} : vector<1x358xf32> to vector<1x256xf32>
      %327 = vector.broadcast %321 : f32 to vector<1x256xf32>
      %328 = arith.mulf %327, %326 : vector<1x256xf32>
      %329 = arith.addf %325, %328 : vector<1x256xf32>
      %c31 = arith.constant 31 : index
      %330 = memref.load %arg3[%c31] : memref<98xf32, #tpu.memory_space<smem>>
      %c80 = arith.constant 80 : index
      %331 = memref.load %arg3[%c80] : memref<98xf32, #tpu.memory_space<smem>>
      %332 = vector.extract_strided_slice %20 {offsets = [0, 67], sizes = [1, 256], strides = [1, 1]} : vector<1x358xf32> to vector<1x256xf32>
      %333 = vector.broadcast %330 : f32 to vector<1x256xf32>
      %334 = arith.mulf %333, %332 : vector<1x256xf32>
      %335 = arith.addf %329, %334 : vector<1x256xf32>
      %336 = vector.extract_strided_slice %21 {offsets = [0, 67], sizes = [1, 256], strides = [1, 1]} : vector<1x358xf32> to vector<1x256xf32>
      %337 = vector.broadcast %331 : f32 to vector<1x256xf32>
      %338 = arith.mulf %337, %336 : vector<1x256xf32>
      %339 = arith.addf %335, %338 : vector<1x256xf32>
      %c38 = arith.constant 38 : index
      %340 = memref.load %arg3[%c38] : memref<98xf32, #tpu.memory_space<smem>>
      %c87 = arith.constant 87 : index
      %341 = memref.load %arg3[%c87] : memref<98xf32, #tpu.memory_space<smem>>
      %342 = vector.extract_strided_slice %20 {offsets = [0, 83], sizes = [1, 256], strides = [1, 1]} : vector<1x358xf32> to vector<1x256xf32>
      %343 = vector.broadcast %340 : f32 to vector<1x256xf32>
      %344 = arith.mulf %343, %342 : vector<1x256xf32>
      %345 = arith.addf %339, %344 : vector<1x256xf32>
      %346 = vector.extract_strided_slice %21 {offsets = [0, 83], sizes = [1, 256], strides = [1, 1]} : vector<1x358xf32> to vector<1x256xf32>
      %347 = vector.broadcast %341 : f32 to vector<1x256xf32>
      %348 = arith.mulf %347, %346 : vector<1x256xf32>
      %349 = arith.addf %345, %348 : vector<1x256xf32>
      %c45 = arith.constant 45 : index
      %350 = memref.load %arg3[%c45] : memref<98xf32, #tpu.memory_space<smem>>
      %c94 = arith.constant 94 : index
      %351 = memref.load %arg3[%c94] : memref<98xf32, #tpu.memory_space<smem>>
      %352 = vector.extract_strided_slice %20 {offsets = [0, 99], sizes = [1, 256], strides = [1, 1]} : vector<1x358xf32> to vector<1x256xf32>
      %353 = vector.broadcast %350 : f32 to vector<1x256xf32>
      %354 = arith.mulf %353, %352 : vector<1x256xf32>
      %355 = arith.addf %349, %354 : vector<1x256xf32>
      %356 = vector.extract_strided_slice %21 {offsets = [0, 99], sizes = [1, 256], strides = [1, 1]} : vector<1x358xf32> to vector<1x256xf32>
      %357 = vector.broadcast %351 : f32 to vector<1x256xf32>
      %358 = arith.mulf %357, %356 : vector<1x256xf32>
      %359 = arith.addf %355, %358 : vector<1x256xf32>
      %c0_i32_42 = arith.constant 0 : i32
      %360 = vector.broadcast %c0_i32_42 : i32 to vector<1x256xi32>
      %361 = arith.addi %38, %360 : vector<1x256xi32>
      %c0_i32_43 = arith.constant 0 : i32
      %362 = vector.broadcast %c0_i32_43 : i32 to vector<1x256xi32>
      %363 = arith.cmpi sge, %361, %362 : vector<1x256xi32>
      %c0_i32_44 = arith.constant 0 : i32
      %364 = vector.broadcast %c0_i32_44 : i32 to vector<1x256xi32>
      %365 = arith.addi %38, %364 : vector<1x256xi32>
      %c16_i32_45 = arith.constant 16 : i32
      %366 = vector.broadcast %c16_i32_45 : i32 to vector<1x256xi32>
      %367 = arith.cmpi slt, %365, %366 : vector<1x256xi32>
      %368 = arith.andi %363, %367 : vector<1x256xi1>
      %cst_46 = arith.constant 0.000000e+00 : f32
      %369 = vector.broadcast %cst_46 : f32 to vector<1x256xf32>
      %370 = arith.select %368, %359, %369 : vector<1x256xi1>, vector<1x256xf32>
      %371 = arith.addf %288, %370 : vector<1x256xf32>
      %cst_47 = arith.constant 0.000000e+00 : f32
      %372 = vector.broadcast %cst_47 : f32 to vector<1x256xf32>
      %c4 = arith.constant 4 : index
      %373 = memref.load %arg3[%c4] : memref<98xf32, #tpu.memory_space<smem>>
      %c53 = arith.constant 53 : index
      %374 = memref.load %arg3[%c53] : memref<98xf32, #tpu.memory_space<smem>>
      %375 = vector.extract_strided_slice %20 {offsets = [0, 4], sizes = [1, 256], strides = [1, 1]} : vector<1x358xf32> to vector<1x256xf32>
      %376 = vector.broadcast %373 : f32 to vector<1x256xf32>
      %377 = arith.mulf %376, %375 : vector<1x256xf32>
      %378 = arith.addf %372, %377 : vector<1x256xf32>
      %379 = vector.extract_strided_slice %21 {offsets = [0, 4], sizes = [1, 256], strides = [1, 1]} : vector<1x358xf32> to vector<1x256xf32>
      %380 = vector.broadcast %374 : f32 to vector<1x256xf32>
      %381 = arith.mulf %380, %379 : vector<1x256xf32>
      %382 = arith.addf %378, %381 : vector<1x256xf32>
      %c11 = arith.constant 11 : index
      %383 = memref.load %arg3[%c11] : memref<98xf32, #tpu.memory_space<smem>>
      %c60 = arith.constant 60 : index
      %384 = memref.load %arg3[%c60] : memref<98xf32, #tpu.memory_space<smem>>
      %385 = vector.extract_strided_slice %20 {offsets = [0, 20], sizes = [1, 256], strides = [1, 1]} : vector<1x358xf32> to vector<1x256xf32>
      %386 = vector.broadcast %383 : f32 to vector<1x256xf32>
      %387 = arith.mulf %386, %385 : vector<1x256xf32>
      %388 = arith.addf %382, %387 : vector<1x256xf32>
      %389 = vector.extract_strided_slice %21 {offsets = [0, 20], sizes = [1, 256], strides = [1, 1]} : vector<1x358xf32> to vector<1x256xf32>
      %390 = vector.broadcast %384 : f32 to vector<1x256xf32>
      %391 = arith.mulf %390, %389 : vector<1x256xf32>
      %392 = arith.addf %388, %391 : vector<1x256xf32>
      %c18 = arith.constant 18 : index
      %393 = memref.load %arg3[%c18] : memref<98xf32, #tpu.memory_space<smem>>
      %c67 = arith.constant 67 : index
      %394 = memref.load %arg3[%c67] : memref<98xf32, #tpu.memory_space<smem>>
      %395 = vector.extract_strided_slice %20 {offsets = [0, 36], sizes = [1, 256], strides = [1, 1]} : vector<1x358xf32> to vector<1x256xf32>
      %396 = vector.broadcast %393 : f32 to vector<1x256xf32>
      %397 = arith.mulf %396, %395 : vector<1x256xf32>
      %398 = arith.addf %392, %397 : vector<1x256xf32>
      %399 = vector.extract_strided_slice %21 {offsets = [0, 36], sizes = [1, 256], strides = [1, 1]} : vector<1x358xf32> to vector<1x256xf32>
      %400 = vector.broadcast %394 : f32 to vector<1x256xf32>
      %401 = arith.mulf %400, %399 : vector<1x256xf32>
      %402 = arith.addf %398, %401 : vector<1x256xf32>
      %c25 = arith.constant 25 : index
      %403 = memref.load %arg3[%c25] : memref<98xf32, #tpu.memory_space<smem>>
      %c74 = arith.constant 74 : index
      %404 = memref.load %arg3[%c74] : memref<98xf32, #tpu.memory_space<smem>>
      %405 = vector.extract_strided_slice %20 {offsets = [0, 52], sizes = [1, 256], strides = [1, 1]} : vector<1x358xf32> to vector<1x256xf32>
      %406 = vector.broadcast %403 : f32 to vector<1x256xf32>
      %407 = arith.mulf %406, %405 : vector<1x256xf32>
      %408 = arith.addf %402, %407 : vector<1x256xf32>
      %409 = vector.extract_strided_slice %21 {offsets = [0, 52], sizes = [1, 256], strides = [1, 1]} : vector<1x358xf32> to vector<1x256xf32>
      %410 = vector.broadcast %404 : f32 to vector<1x256xf32>
      %411 = arith.mulf %410, %409 : vector<1x256xf32>
      %412 = arith.addf %408, %411 : vector<1x256xf32>
      %c32 = arith.constant 32 : index
      %413 = memref.load %arg3[%c32] : memref<98xf32, #tpu.memory_space<smem>>
      %c81 = arith.constant 81 : index
      %414 = memref.load %arg3[%c81] : memref<98xf32, #tpu.memory_space<smem>>
      %415 = vector.extract_strided_slice %20 {offsets = [0, 68], sizes = [1, 256], strides = [1, 1]} : vector<1x358xf32> to vector<1x256xf32>
      %416 = vector.broadcast %413 : f32 to vector<1x256xf32>
      %417 = arith.mulf %416, %415 : vector<1x256xf32>
      %418 = arith.addf %412, %417 : vector<1x256xf32>
      %419 = vector.extract_strided_slice %21 {offsets = [0, 68], sizes = [1, 256], strides = [1, 1]} : vector<1x358xf32> to vector<1x256xf32>
      %420 = vector.broadcast %414 : f32 to vector<1x256xf32>
      %421 = arith.mulf %420, %419 : vector<1x256xf32>
      %422 = arith.addf %418, %421 : vector<1x256xf32>
      %c39 = arith.constant 39 : index
      %423 = memref.load %arg3[%c39] : memref<98xf32, #tpu.memory_space<smem>>
      %c88 = arith.constant 88 : index
      %424 = memref.load %arg3[%c88] : memref<98xf32, #tpu.memory_space<smem>>
      %425 = vector.extract_strided_slice %20 {offsets = [0, 84], sizes = [1, 256], strides = [1, 1]} : vector<1x358xf32> to vector<1x256xf32>
      %426 = vector.broadcast %423 : f32 to vector<1x256xf32>
      %427 = arith.mulf %426, %425 : vector<1x256xf32>
      %428 = arith.addf %422, %427 : vector<1x256xf32>
      %429 = vector.extract_strided_slice %21 {offsets = [0, 84], sizes = [1, 256], strides = [1, 1]} : vector<1x358xf32> to vector<1x256xf32>
      %430 = vector.broadcast %424 : f32 to vector<1x256xf32>
      %431 = arith.mulf %430, %429 : vector<1x256xf32>
      %432 = arith.addf %428, %431 : vector<1x256xf32>
      %c46 = arith.constant 46 : index
      %433 = memref.load %arg3[%c46] : memref<98xf32, #tpu.memory_space<smem>>
      %c95 = arith.constant 95 : index
      %434 = memref.load %arg3[%c95] : memref<98xf32, #tpu.memory_space<smem>>
      %435 = vector.extract_strided_slice %20 {offsets = [0, 100], sizes = [1, 256], strides = [1, 1]} : vector<1x358xf32> to vector<1x256xf32>
      %436 = vector.broadcast %433 : f32 to vector<1x256xf32>
      %437 = arith.mulf %436, %435 : vector<1x256xf32>
      %438 = arith.addf %432, %437 : vector<1x256xf32>
      %439 = vector.extract_strided_slice %21 {offsets = [0, 100], sizes = [1, 256], strides = [1, 1]} : vector<1x358xf32> to vector<1x256xf32>
      %440 = vector.broadcast %434 : f32 to vector<1x256xf32>
      %441 = arith.mulf %440, %439 : vector<1x256xf32>
      %442 = arith.addf %438, %441 : vector<1x256xf32>
      %c1_i32_48 = arith.constant 1 : i32
      %443 = vector.broadcast %c1_i32_48 : i32 to vector<1x256xi32>
      %444 = arith.addi %38, %443 : vector<1x256xi32>
      %c0_i32_49 = arith.constant 0 : i32
      %445 = vector.broadcast %c0_i32_49 : i32 to vector<1x256xi32>
      %446 = arith.cmpi sge, %444, %445 : vector<1x256xi32>
      %c1_i32_50 = arith.constant 1 : i32
      %447 = vector.broadcast %c1_i32_50 : i32 to vector<1x256xi32>
      %448 = arith.addi %38, %447 : vector<1x256xi32>
      %c16_i32_51 = arith.constant 16 : i32
      %449 = vector.broadcast %c16_i32_51 : i32 to vector<1x256xi32>
      %450 = arith.cmpi slt, %448, %449 : vector<1x256xi32>
      %451 = arith.andi %446, %450 : vector<1x256xi1>
      %cst_52 = arith.constant 0.000000e+00 : f32
      %452 = vector.broadcast %cst_52 : f32 to vector<1x256xf32>
      %453 = arith.select %451, %442, %452 : vector<1x256xi1>, vector<1x256xf32>
      %454 = arith.addf %371, %453 : vector<1x256xf32>
      %cst_53 = arith.constant 0.000000e+00 : f32
      %455 = vector.broadcast %cst_53 : f32 to vector<1x256xf32>
      %c5 = arith.constant 5 : index
      %456 = memref.load %arg3[%c5] : memref<98xf32, #tpu.memory_space<smem>>
      %c54 = arith.constant 54 : index
      %457 = memref.load %arg3[%c54] : memref<98xf32, #tpu.memory_space<smem>>
      %458 = vector.extract_strided_slice %20 {offsets = [0, 5], sizes = [1, 256], strides = [1, 1]} : vector<1x358xf32> to vector<1x256xf32>
      %459 = vector.broadcast %456 : f32 to vector<1x256xf32>
      %460 = arith.mulf %459, %458 : vector<1x256xf32>
      %461 = arith.addf %455, %460 : vector<1x256xf32>
      %462 = vector.extract_strided_slice %21 {offsets = [0, 5], sizes = [1, 256], strides = [1, 1]} : vector<1x358xf32> to vector<1x256xf32>
      %463 = vector.broadcast %457 : f32 to vector<1x256xf32>
      %464 = arith.mulf %463, %462 : vector<1x256xf32>
      %465 = arith.addf %461, %464 : vector<1x256xf32>
      %c12 = arith.constant 12 : index
      %466 = memref.load %arg3[%c12] : memref<98xf32, #tpu.memory_space<smem>>
      %c61 = arith.constant 61 : index
      %467 = memref.load %arg3[%c61] : memref<98xf32, #tpu.memory_space<smem>>
      %468 = vector.extract_strided_slice %20 {offsets = [0, 21], sizes = [1, 256], strides = [1, 1]} : vector<1x358xf32> to vector<1x256xf32>
      %469 = vector.broadcast %466 : f32 to vector<1x256xf32>
      %470 = arith.mulf %469, %468 : vector<1x256xf32>
      %471 = arith.addf %465, %470 : vector<1x256xf32>
      %472 = vector.extract_strided_slice %21 {offsets = [0, 21], sizes = [1, 256], strides = [1, 1]} : vector<1x358xf32> to vector<1x256xf32>
      %473 = vector.broadcast %467 : f32 to vector<1x256xf32>
      %474 = arith.mulf %473, %472 : vector<1x256xf32>
      %475 = arith.addf %471, %474 : vector<1x256xf32>
      %c19 = arith.constant 19 : index
      %476 = memref.load %arg3[%c19] : memref<98xf32, #tpu.memory_space<smem>>
      %c68 = arith.constant 68 : index
      %477 = memref.load %arg3[%c68] : memref<98xf32, #tpu.memory_space<smem>>
      %478 = vector.extract_strided_slice %20 {offsets = [0, 37], sizes = [1, 256], strides = [1, 1]} : vector<1x358xf32> to vector<1x256xf32>
      %479 = vector.broadcast %476 : f32 to vector<1x256xf32>
      %480 = arith.mulf %479, %478 : vector<1x256xf32>
      %481 = arith.addf %475, %480 : vector<1x256xf32>
      %482 = vector.extract_strided_slice %21 {offsets = [0, 37], sizes = [1, 256], strides = [1, 1]} : vector<1x358xf32> to vector<1x256xf32>
      %483 = vector.broadcast %477 : f32 to vector<1x256xf32>
      %484 = arith.mulf %483, %482 : vector<1x256xf32>
      %485 = arith.addf %481, %484 : vector<1x256xf32>
      %c26 = arith.constant 26 : index
      %486 = memref.load %arg3[%c26] : memref<98xf32, #tpu.memory_space<smem>>
      %c75 = arith.constant 75 : index
      %487 = memref.load %arg3[%c75] : memref<98xf32, #tpu.memory_space<smem>>
      %488 = vector.extract_strided_slice %20 {offsets = [0, 53], sizes = [1, 256], strides = [1, 1]} : vector<1x358xf32> to vector<1x256xf32>
      %489 = vector.broadcast %486 : f32 to vector<1x256xf32>
      %490 = arith.mulf %489, %488 : vector<1x256xf32>
      %491 = arith.addf %485, %490 : vector<1x256xf32>
      %492 = vector.extract_strided_slice %21 {offsets = [0, 53], sizes = [1, 256], strides = [1, 1]} : vector<1x358xf32> to vector<1x256xf32>
      %493 = vector.broadcast %487 : f32 to vector<1x256xf32>
      %494 = arith.mulf %493, %492 : vector<1x256xf32>
      %495 = arith.addf %491, %494 : vector<1x256xf32>
      %c33 = arith.constant 33 : index
      %496 = memref.load %arg3[%c33] : memref<98xf32, #tpu.memory_space<smem>>
      %c82 = arith.constant 82 : index
      %497 = memref.load %arg3[%c82] : memref<98xf32, #tpu.memory_space<smem>>
      %498 = vector.extract_strided_slice %20 {offsets = [0, 69], sizes = [1, 256], strides = [1, 1]} : vector<1x358xf32> to vector<1x256xf32>
      %499 = vector.broadcast %496 : f32 to vector<1x256xf32>
      %500 = arith.mulf %499, %498 : vector<1x256xf32>
      %501 = arith.addf %495, %500 : vector<1x256xf32>
      %502 = vector.extract_strided_slice %21 {offsets = [0, 69], sizes = [1, 256], strides = [1, 1]} : vector<1x358xf32> to vector<1x256xf32>
      %503 = vector.broadcast %497 : f32 to vector<1x256xf32>
      %504 = arith.mulf %503, %502 : vector<1x256xf32>
      %505 = arith.addf %501, %504 : vector<1x256xf32>
      %c40 = arith.constant 40 : index
      %506 = memref.load %arg3[%c40] : memref<98xf32, #tpu.memory_space<smem>>
      %c89 = arith.constant 89 : index
      %507 = memref.load %arg3[%c89] : memref<98xf32, #tpu.memory_space<smem>>
      %508 = vector.extract_strided_slice %20 {offsets = [0, 85], sizes = [1, 256], strides = [1, 1]} : vector<1x358xf32> to vector<1x256xf32>
      %509 = vector.broadcast %506 : f32 to vector<1x256xf32>
      %510 = arith.mulf %509, %508 : vector<1x256xf32>
      %511 = arith.addf %505, %510 : vector<1x256xf32>
      %512 = vector.extract_strided_slice %21 {offsets = [0, 85], sizes = [1, 256], strides = [1, 1]} : vector<1x358xf32> to vector<1x256xf32>
      %513 = vector.broadcast %507 : f32 to vector<1x256xf32>
      %514 = arith.mulf %513, %512 : vector<1x256xf32>
      %515 = arith.addf %511, %514 : vector<1x256xf32>
      %c47 = arith.constant 47 : index
      %516 = memref.load %arg3[%c47] : memref<98xf32, #tpu.memory_space<smem>>
      %c96 = arith.constant 96 : index
      %517 = memref.load %arg3[%c96] : memref<98xf32, #tpu.memory_space<smem>>
      %518 = vector.extract_strided_slice %20 {offsets = [0, 101], sizes = [1, 256], strides = [1, 1]} : vector<1x358xf32> to vector<1x256xf32>
      %519 = vector.broadcast %516 : f32 to vector<1x256xf32>
      %520 = arith.mulf %519, %518 : vector<1x256xf32>
      %521 = arith.addf %515, %520 : vector<1x256xf32>
      %522 = vector.extract_strided_slice %21 {offsets = [0, 101], sizes = [1, 256], strides = [1, 1]} : vector<1x358xf32> to vector<1x256xf32>
      %523 = vector.broadcast %517 : f32 to vector<1x256xf32>
      %524 = arith.mulf %523, %522 : vector<1x256xf32>
      %525 = arith.addf %521, %524 : vector<1x256xf32>
      %c2_i32 = arith.constant 2 : i32
      %526 = vector.broadcast %c2_i32 : i32 to vector<1x256xi32>
      %527 = arith.addi %38, %526 : vector<1x256xi32>
      %c0_i32_54 = arith.constant 0 : i32
      %528 = vector.broadcast %c0_i32_54 : i32 to vector<1x256xi32>
      %529 = arith.cmpi sge, %527, %528 : vector<1x256xi32>
      %c2_i32_55 = arith.constant 2 : i32
      %530 = vector.broadcast %c2_i32_55 : i32 to vector<1x256xi32>
      %531 = arith.addi %38, %530 : vector<1x256xi32>
      %c16_i32_56 = arith.constant 16 : i32
      %532 = vector.broadcast %c16_i32_56 : i32 to vector<1x256xi32>
      %533 = arith.cmpi slt, %531, %532 : vector<1x256xi32>
      %534 = arith.andi %529, %533 : vector<1x256xi1>
      %cst_57 = arith.constant 0.000000e+00 : f32
      %535 = vector.broadcast %cst_57 : f32 to vector<1x256xf32>
      %536 = arith.select %534, %525, %535 : vector<1x256xi1>, vector<1x256xf32>
      %537 = arith.addf %454, %536 : vector<1x256xf32>
      %cst_58 = arith.constant 0.000000e+00 : f32
      %538 = vector.broadcast %cst_58 : f32 to vector<1x256xf32>
      %c6 = arith.constant 6 : index
      %539 = memref.load %arg3[%c6] : memref<98xf32, #tpu.memory_space<smem>>
      %c55 = arith.constant 55 : index
      %540 = memref.load %arg3[%c55] : memref<98xf32, #tpu.memory_space<smem>>
      %541 = vector.extract_strided_slice %20 {offsets = [0, 6], sizes = [1, 256], strides = [1, 1]} : vector<1x358xf32> to vector<1x256xf32>
      %542 = vector.broadcast %539 : f32 to vector<1x256xf32>
      %543 = arith.mulf %542, %541 : vector<1x256xf32>
      %544 = arith.addf %538, %543 : vector<1x256xf32>
      %545 = vector.extract_strided_slice %21 {offsets = [0, 6], sizes = [1, 256], strides = [1, 1]} : vector<1x358xf32> to vector<1x256xf32>
      %546 = vector.broadcast %540 : f32 to vector<1x256xf32>
      %547 = arith.mulf %546, %545 : vector<1x256xf32>
      %548 = arith.addf %544, %547 : vector<1x256xf32>
      %c13 = arith.constant 13 : index
      %549 = memref.load %arg3[%c13] : memref<98xf32, #tpu.memory_space<smem>>
      %c62 = arith.constant 62 : index
      %550 = memref.load %arg3[%c62] : memref<98xf32, #tpu.memory_space<smem>>
      %551 = vector.extract_strided_slice %20 {offsets = [0, 22], sizes = [1, 256], strides = [1, 1]} : vector<1x358xf32> to vector<1x256xf32>
      %552 = vector.broadcast %549 : f32 to vector<1x256xf32>
      %553 = arith.mulf %552, %551 : vector<1x256xf32>
      %554 = arith.addf %548, %553 : vector<1x256xf32>
      %555 = vector.extract_strided_slice %21 {offsets = [0, 22], sizes = [1, 256], strides = [1, 1]} : vector<1x358xf32> to vector<1x256xf32>
      %556 = vector.broadcast %550 : f32 to vector<1x256xf32>
      %557 = arith.mulf %556, %555 : vector<1x256xf32>
      %558 = arith.addf %554, %557 : vector<1x256xf32>
      %c20 = arith.constant 20 : index
      %559 = memref.load %arg3[%c20] : memref<98xf32, #tpu.memory_space<smem>>
      %c69 = arith.constant 69 : index
      %560 = memref.load %arg3[%c69] : memref<98xf32, #tpu.memory_space<smem>>
      %561 = vector.extract_strided_slice %20 {offsets = [0, 38], sizes = [1, 256], strides = [1, 1]} : vector<1x358xf32> to vector<1x256xf32>
      %562 = vector.broadcast %559 : f32 to vector<1x256xf32>
      %563 = arith.mulf %562, %561 : vector<1x256xf32>
      %564 = arith.addf %558, %563 : vector<1x256xf32>
      %565 = vector.extract_strided_slice %21 {offsets = [0, 38], sizes = [1, 256], strides = [1, 1]} : vector<1x358xf32> to vector<1x256xf32>
      %566 = vector.broadcast %560 : f32 to vector<1x256xf32>
      %567 = arith.mulf %566, %565 : vector<1x256xf32>
      %568 = arith.addf %564, %567 : vector<1x256xf32>
      %c27 = arith.constant 27 : index
      %569 = memref.load %arg3[%c27] : memref<98xf32, #tpu.memory_space<smem>>
      %c76 = arith.constant 76 : index
      %570 = memref.load %arg3[%c76] : memref<98xf32, #tpu.memory_space<smem>>
      %571 = vector.extract_strided_slice %20 {offsets = [0, 54], sizes = [1, 256], strides = [1, 1]} : vector<1x358xf32> to vector<1x256xf32>
      %572 = vector.broadcast %569 : f32 to vector<1x256xf32>
      %573 = arith.mulf %572, %571 : vector<1x256xf32>
      %574 = arith.addf %568, %573 : vector<1x256xf32>
      %575 = vector.extract_strided_slice %21 {offsets = [0, 54], sizes = [1, 256], strides = [1, 1]} : vector<1x358xf32> to vector<1x256xf32>
      %576 = vector.broadcast %570 : f32 to vector<1x256xf32>
      %577 = arith.mulf %576, %575 : vector<1x256xf32>
      %578 = arith.addf %574, %577 : vector<1x256xf32>
      %c34 = arith.constant 34 : index
      %579 = memref.load %arg3[%c34] : memref<98xf32, #tpu.memory_space<smem>>
      %c83 = arith.constant 83 : index
      %580 = memref.load %arg3[%c83] : memref<98xf32, #tpu.memory_space<smem>>
      %581 = vector.extract_strided_slice %20 {offsets = [0, 70], sizes = [1, 256], strides = [1, 1]} : vector<1x358xf32> to vector<1x256xf32>
      %582 = vector.broadcast %579 : f32 to vector<1x256xf32>
      %583 = arith.mulf %582, %581 : vector<1x256xf32>
      %584 = arith.addf %578, %583 : vector<1x256xf32>
      %585 = vector.extract_strided_slice %21 {offsets = [0, 70], sizes = [1, 256], strides = [1, 1]} : vector<1x358xf32> to vector<1x256xf32>
      %586 = vector.broadcast %580 : f32 to vector<1x256xf32>
      %587 = arith.mulf %586, %585 : vector<1x256xf32>
      %588 = arith.addf %584, %587 : vector<1x256xf32>
      %c41 = arith.constant 41 : index
      %589 = memref.load %arg3[%c41] : memref<98xf32, #tpu.memory_space<smem>>
      %c90 = arith.constant 90 : index
      %590 = memref.load %arg3[%c90] : memref<98xf32, #tpu.memory_space<smem>>
      %591 = vector.extract_strided_slice %20 {offsets = [0, 86], sizes = [1, 256], strides = [1, 1]} : vector<1x358xf32> to vector<1x256xf32>
      %592 = vector.broadcast %589 : f32 to vector<1x256xf32>
      %593 = arith.mulf %592, %591 : vector<1x256xf32>
      %594 = arith.addf %588, %593 : vector<1x256xf32>
      %595 = vector.extract_strided_slice %21 {offsets = [0, 86], sizes = [1, 256], strides = [1, 1]} : vector<1x358xf32> to vector<1x256xf32>
      %596 = vector.broadcast %590 : f32 to vector<1x256xf32>
      %597 = arith.mulf %596, %595 : vector<1x256xf32>
      %598 = arith.addf %594, %597 : vector<1x256xf32>
      %c48 = arith.constant 48 : index
      %599 = memref.load %arg3[%c48] : memref<98xf32, #tpu.memory_space<smem>>
      %c97 = arith.constant 97 : index
      %600 = memref.load %arg3[%c97] : memref<98xf32, #tpu.memory_space<smem>>
      %601 = vector.extract_strided_slice %20 {offsets = [0, 102], sizes = [1, 256], strides = [1, 1]} : vector<1x358xf32> to vector<1x256xf32>
      %602 = vector.broadcast %599 : f32 to vector<1x256xf32>
      %603 = arith.mulf %602, %601 : vector<1x256xf32>
      %604 = arith.addf %598, %603 : vector<1x256xf32>
      %605 = vector.extract_strided_slice %21 {offsets = [0, 102], sizes = [1, 256], strides = [1, 1]} : vector<1x358xf32> to vector<1x256xf32>
      %606 = vector.broadcast %600 : f32 to vector<1x256xf32>
      %607 = arith.mulf %606, %605 : vector<1x256xf32>
      %608 = arith.addf %604, %607 : vector<1x256xf32>
      %c3_i32 = arith.constant 3 : i32
      %609 = vector.broadcast %c3_i32 : i32 to vector<1x256xi32>
      %610 = arith.addi %38, %609 : vector<1x256xi32>
      %c0_i32_59 = arith.constant 0 : i32
      %611 = vector.broadcast %c0_i32_59 : i32 to vector<1x256xi32>
      %612 = arith.cmpi sge, %610, %611 : vector<1x256xi32>
      %c3_i32_60 = arith.constant 3 : i32
      %613 = vector.broadcast %c3_i32_60 : i32 to vector<1x256xi32>
      %614 = arith.addi %38, %613 : vector<1x256xi32>
      %c16_i32_61 = arith.constant 16 : i32
      %615 = vector.broadcast %c16_i32_61 : i32 to vector<1x256xi32>
      %616 = arith.cmpi slt, %614, %615 : vector<1x256xi32>
      %617 = arith.andi %612, %616 : vector<1x256xi1>
      %cst_62 = arith.constant 0.000000e+00 : f32
      %618 = vector.broadcast %cst_62 : f32 to vector<1x256xf32>
      %619 = arith.select %617, %608, %618 : vector<1x256xi1>, vector<1x256xf32>
      %620 = arith.addf %537, %619 : vector<1x256xf32>
      %621 = arith.negf %620 : vector<1x256xf32>
      %622 = math.exp %621 : vector<1x256xf32>
      %cst_63 = arith.constant 1.000000e+00 : f32
      %623 = vector.broadcast %cst_63 : f32 to vector<1x256xf32>
      %624 = arith.addf %623, %622 : vector<1x256xf32>
      %625 = arith.divf %623, %624 : vector<1x256xf32>
      %626 = vector.shape_cast %625 : vector<1x256xf32> to vector<1x1x256xf32>
      %c0_64 = arith.constant 0 : index
      %c0_65 = arith.constant 0 : index
      %c0_66 = arith.constant 0 : index
      %627 = vector.load %arg4[%c0_64, %c0_65, %c0_66] : memref<1x1x256xf32, #tpu.memory_space<vmem>>, vector<1x1x256xf32>
      tpu.vector_store %arg4[%c0_64, %c0_65, %c0_66], %626 {strides = array<i32>} : memref<1x1x256xf32, #tpu.memory_space<vmem>>, vector<1x1x256xf32>,
    } else {
    }
    return
  }
  func.func @transform_0(%arg0: i32, %arg1: i32) -> (i32, i32, i32) {
    %c0_i32 = arith.constant 0 : i32
    %c0_i32_0 = arith.constant 0 : i32
    return %arg0, %arg1, %c0_i32 : i32, i32, i32
  }
  func.func @transform_1(%arg0: i32, %arg1: i32) -> i32 {
    %c0_i32 = arith.constant 0 : i32
    %c0_i32_0 = arith.constant 0 : i32
    return %c0_i32 : i32
  }
  func.func @transform_2(%arg0: i32, %arg1: i32) -> (i32, i32, i32) {
    %c0_i32 = arith.constant 0 : i32
    %c0_i32_0 = arith.constant 0 : i32
    %c0_i32_1 = arith.constant 0 : i32
    return %arg0, %c0_i32, %c0_i32_0 : i32, i32, i32
  }
}

</mosaic_0001>

<bundles_post_ra>
// kernel: spatial_attention.1
= control target key start
LH: loop header
LB: loop body
LE: loop exit
PB: predicated region body
PF: predicated region fallthrough
CT: control target
= control target key end

     0   :  { %7 = vsyncpa [#allocation5], 0  ;;  %s2789_s9 = smov 0   ;;  %s2791_s10 = smov 0   ;;  %s4011_s0 = inlined_call_operand.vmem [shape: f32[2,4,256], index: 0, kind: input, shape index: {}]   ;;  %s4012_s1 = inlined_call_operand.vmem [shape: f32[98], index: 1, kind: input, shape index: {}]   ;;  %s4013_s2 = inlined_call_operand.vmem [shape: f32[2,1,256], index: 2, kind: output, shape index: {}]  }
   0x1   :  { %s2793_s11 = smov 0  }
   0x2 LB: > { %s2545_s12 = sadd.s32 4294967295, %s2756_s11   ;;  %s25_s13 = sadd.s32 1, %s2752_s10  ;;  %s2756_s11 = sphi %s2793_s11, %s13_s11   ;;  %s2752_s10 = sphi %s2791_s10, %s4087_s10   ;;  %s2748_s9 = sphi %s2789_s9, %s4086_s9  }
   0x3   : > { %p27_p0 = scmp.ge.s32.totalorder %s25_s13, 2  ;;  %p2547_p1 = scmp.ge.s32.totalorder %s2756_s11, 1 }
   0x4   : > { %p105_p2 = scmp.lt.s32.totalorder %s2756_s11, 3  ;;  %p2665_p4 = scmp.eq.s32.totalorder %s2545_s12, 0 }
   0x5   : > { %s4089_s13 = smov (%p27_p0, %s25_s13), 0  ;;  %s117_s16 = sshll.u32 %s4012_s1, 4  ;;  %s118_s16 = int_to_ptr.vmem [resolvable:$true] %s117_s16 }
   0x6   : > { %p106_p3 = pnand %p2547_p1, %p105_p2  ;;  %s2758_s17 = smov [#allocation4]  }
   0x8   : > { %p2661_p5 = pneg %p106_p3  ;;  %142 = sbr.rel (%p106_p3) target bundleno = 1468 (0x5bc), region = 28 }
   0xa   : > { %p2662_p6 = pnand %p2665_p4, %p2661_p5 }
   0xc   : > { %2664 = dma.vmem_to_smem (!%p2662_p6), %s118_s16, 16, %s2758_s17, [#allocation5]  }
   0xd   : > { %2743 = dma.done.wait (%p2665_p4), [#allocation5], 16  }
   0xe   : > { %2745 = vsyncadd (%p2665_p4), [#allocation5], 4294967280 }
   0xf   : > { %149 = sfence }
  0x10   : > { %p169_p7 = scmp.lt.s32.totalorder %s2748_s9, 1  ;;  %v4014_v0 = vlaneseq  ;;  %v4025_v1 = vmov 0  ;;  %v2759_v2 = vmov 0.0   ;;  %v2760_v3 = vmov -inf   ;;  %s2761_s22 = smov 51  }
  0x11   : > { %vm200_vm1 = vcmask 1043456   ;;  %vm218_vm2 = vcmask 1040384   ;;  %s2558_s23 = sld [smem:[#allocation4 + $0xe]]  ;;  %vm267_vm3 = vcmask 416768   ;;  %s2762_s26 = smov 96   ;;  %vm341_vm4 = vcmask 916480  }
  0x12   : > { %s4091_s9 = smov (!%p169_p7, %s2748_s9), 1  ;;  %vm2814_vm0 = vcmp.lt.s32.totalorder %v4014_v0, 256  ;;  %s2556_s24 = sld [smem:[#allocation4 + $0x7]]  ;;  %vm382_vm5 = vcmask 785408   ;;  %vm423_vm6 = vcmask 654336   ;;  %vm464_vm7 = vcmask 523264  }
  0x13   : > { %v4026_v1 = vsel %vm2814_vm0, 4294967295, %v4025_v1  ;;  %190 = vst.msk [vmem:[#allocation2] sm:$0x3] %vm2814_vm0, %v2759_v2  ;;  %s2656_s18 = sshll.u32 %s4091_s9, 3  ;;  %s2560_s25 = sld [smem:[#allocation4 + $0x15]]  ;;  %vm505_vm8 = vcmask 392192  }
  0x14   : > { %4027 = vst [vmem:[#allocation7_spill] sm:$0xff] %v4026_v1  ;;  %s177_s21 = scalar_lea.vmem %s4011_s0, %s2656_s18  ;;  %s2763_s27 = smov 112   ;;  %vm546_vm9 = vcmask 261120   ;;  %vm881_vm10 = vcmask 1039360   ;;  %vm1187_vm11 = vcmask 1031168   ;;  %vm1491_vm15 = vcmask 1022976  }
  0x15   : > { %191 = vst.msk [vmem:[#allocation3] sm:$0x3] %vm2814_vm0, %v2760_v3  ;;  %v192_v4 = vld [vmem:[%s177_s21] sm:$0xff]  ;;  %s2562_s28 = sld [smem:[#allocation4 + $0x1c]]  ;;  %s2764_s30 = smov 80  }
  0x16   : > { %195 = vst [vmem:[#allocation1] ss:$2 sm:$0xff] %v192_v4  ;;  %s2578_s29 = sld [smem:[#allocation4 + $0x24]]  ;;  %s2765_s4 = smov 64  }
  0x17   : > { %v369_v52 = vstv %s2558_s23  ;;  %s2564_s3 = sld [smem:[#allocation4 + $0x23]]  ;;  %s2766_s6 = smov 48  }
  0x18   : > { %v328_v53 = vstv %s2556_s24  ;;  %s2566_s5 = sld [smem:[#allocation4 + $0x2a]]  ;;  %s2767_s8 = smov 32  }
  0x19   : > { %v410_v58 = vstv %s2560_s25  ;;  %s2570_s7 = sld [smem:[#allocation4 + $0x8]] }
  0x1a   : > { %v193_v29 = vld [vmem:[#allocation2] sm:$0x3]  ;;  %s2572_s12 = sld [smem:[#allocation4 + $0xf]] }
  0x1b   : > { %v451_v3 = vstv %s2562_s28  ;;  %s2636_s14 = sld [smem:[#allocation4 + $0x2f]] }
  0x1c   : > { %v227_v41 = vld [vmem:[#allocation3] sm:$0x3]  ;;  %s2574_s15 = sld [smem:[#allocation4 + $0x16]] }
  0x1d   : > { %v196_v5 = vld.sshfl [vmem:[#allocation1] sm:$0xff pattern:$0x75316420]  ;;  %v197_v6 = vld.sshfl [vmem:[#allocation1 + $0x8] sm:$0xff pattern:$0x75316420] }
  0x1e   : > { %v201_v7 = vsel %vm200_vm1, %v196_v5, 0.0  ;;  %v208_v8 = vsel %vm200_vm1, %v197_v6, 0.0  ;;  %228 = vst [vmem:[#allocation1] ss:$2 sm:$0xff] %v192_v4  ;;  %v2855_v4 = vstv %s2578_s29  ;;  %s2576_s16 = sld [smem:[#allocation4 + $0x1d]] }
  0x1f   : > { %v202_v9 = vrot.slane %v201_v7, 4  ;;  %v209_v10 = vrot.slane %v208_v8, 4  ;;  %s2557_s17 = sld [smem:[#allocation4 + $0x38]] }
  0x20   : > { %s2559_s18 = sld [smem:[#allocation4 + $0x3f]] }
  0x21   : > { %v203_v11 = vadd.f32 %v202_v9, %v201_v7  ;;  %v210_v12 = vadd.f32 %v209_v10, %v208_v8  ;;  %v492_v9 = vstv %s2564_s3  ;;  %s2561_s19 = sld [smem:[#allocation4 + $0x46]] }
  0x22   : > { %s2563_s20 = sld [smem:[#allocation4 + $0x4d]] }
  0x23   : > { %v204_v13 = vrot.slane %v203_v11, 2  ;;  %v211_v14 = vrot.slane %v210_v12, 2  ;;  %s2565_s21 = sld [smem:[#allocation4 + $0x54]] }
  0x24   : > { %s2571_s23 = sld [smem:[#allocation4 + $0x39]] }
  0x25   : > { %v205_v15 = vadd.f32 %v204_v13, %v203_v11  ;;  %v212_v16 = vadd.f32 %v211_v14, %v210_v12  ;;  %v229_v17 = vld.sshfl [vmem:[#allocation1] sm:$0xff pattern:$0x75316420]  ;;  %v230_v18 = vld.sshfl [vmem:[#allocation1 + $0x8] sm:$0xff pattern:$0x75316420]  ;;  %v533_v13 = vstv %s2566_s5 }
  0x26   : > { %v233_v19 = vsel %vm200_vm1, %v229_v17, -inf  ;;  %v240_v20 = vsel %vm200_vm1, %v230_v18, -inf  ;;  %v602_v17 = vstv %s2570_s7  ;;  %s2573_s24 = sld [smem:[#allocation4 + $0x40]] }
  0x27   : > { %v206_v21 = vrot.slane %v205_v15, 1  ;;  %v213_v22 = vrot.slane %v212_v16, 1  ;;  %v234_v23 = vrot.slane %v233_v19, 4  ;;  %v241_v24 = vrot.slane %v240_v20, 4  ;;  %s2575_s25 = sld [smem:[#allocation4 + $0x47]] }
  0x28   : > { %s2577_s28 = sld [smem:[#allocation4 + $0x4e]] }
  0x29   : > { %v207_v25 = vadd.f32 %v206_v21, %v205_v15  ;;  %v214_v26 = vadd.f32 %v213_v22, %v212_v16  ;;  %v235_v27 = vmax.f32 %v233_v19, %v234_v23  ;;  %v242_v28 = vmax.f32 %v240_v20, %v241_v24  ;;  %s2579_s29 = sld [smem:[#allocation4 + $0x55]] }
  0x2a   : > { %v646_v21 = vstv %s2572_s12  ;;  %v2885_v22 = vstv %s2636_s14  ;;  %s2580_s3 = sld [smem:[#allocation4 + $0x2b]] }
  0x2b   : > { %v217_v30 = vrot.slane %v214_v26, 7  ;;  %v236_v31 = vrot.slane %v235_v27, 2  ;;  %v243_v32 = vrot.slane %v242_v28, 2  ;;  %4028 = vst [vmem:[#allocation8_spill] sm:$0xff] %v2885_v22  ;;  %s2581_s5 = sld [smem:[#allocation4 + $0x5c]] }
  0x2c   : > { %s2584_s7 = sld [smem:[#allocation4 + $0x9]] }
  0x2d   : > { %v219_v33 = vsel %vm218_vm2, %v207_v25, %v217_v30  ;;  %v237_v34 = vmax.f32 %v235_v27, %v236_v31  ;;  %v244_v35 = vmax.f32 %v242_v28, %v243_v32  ;;  %v690_v27 = vstv %s2574_s15  ;;  %s2585_s12 = sld [smem:[#allocation4 + $0x3a]] }
  0x2e   : > { %v221_v36 = vadd.f32 %v219_v33, %v193_v29  ;;  %v734_v31 = vstv %s2576_s16  ;;  %s2586_s14 = sld [smem:[#allocation4 + $0x10]] }
  0x2f   : > { %v238_v37 = vrot.slane %v237_v34, 1  ;;  %v245_v38 = vrot.slane %v244_v35, 1  ;;  %s2587_s15 = sld [smem:[#allocation4 + $0x41]] }
  0x30   : > { %226 = vst.msk [vmem:[#allocation2] sm:$0x3] %vm2814_vm0, %v221_v36  ;;  %s2588_s16 = sld [smem:[#allocation4 + $0x17]] }
  0x31   : > { %v239_v39 = vmax.f32 %v237_v34, %v238_v37  ;;  %v246_v40 = vmax.f32 %v244_v35, %v245_v38 }
  0x33   : > { %v249_v42 = vrot.slane %v246_v40, 7 }
  0x35   : > { %v250_v43 = vsel %vm218_vm2, %v239_v39, %v249_v42  ;;  %v348_v39 = vstv %s2557_s17  ;;  %s2589_s17 = sld [smem:[#allocation4 + $0x48]] }
  0x36   : > { %v252_v44 = vmax.f32 %v227_v41, %v250_v43 }
  0x37   : > { %v257_v45 = vld [vmem:[#allocation2] sm:$0x3] }
  0x38   : > { %v258_v46 = vmul.f32 0.25, %v257_v45  ;;  %253 = vst.msk [vmem:[#allocation3] sm:$0x3] %vm2814_vm0, %v252_v44 }
  0x3a   : > { %v261_v47 = vperm.slane %v258_v46, 0  ;;  %v262_v50 = vperm.slane %v258_v46, 1  ;;  %v389_v46 = vstv %s2559_s18  ;;  %s2590_s18 = sld [smem:[#allocation4 + $0x1e]] }
  0x3c   : > { %263 = vrot.lane.b32.xlu0 %v261_v47, %s2761_s22 }
  0x3f   : > { %v259_v48 = vld [vmem:[#allocation3] sm:$0x3] }
  0x40   : > { %v275_v49 = vperm.slane %v259_v48, 0  ;;  %v276_v51 = vperm.slane %v259_v48, 1 }
  0x42   : > { %277 = vrot.lane.b32.xlu1 %v275_v49, %s2761_s22 }
  0x44   : > { %265 = vrot.lane.b32.xlu0 %v262_v50, %s2761_s22 }
  0x4a   : > { %279 = vrot.lane.b32.xlu1 %v276_v51, %s2761_s22  ;;  %v430_v51 = vstv %s2561_s19  ;;  %s2567_s22 = sld [smem:[#allocation4 + $0x5b]] }
  0x4b   : > { %s2591_s19 = sld [smem:[#allocation4 + $0x4f]] }
  0xae   : > { %v264_v54 = vpop.permute.xlu0 %263 }
  0xaf   : > { %v2837_v55 = vsel %vm267_vm3, 0.0, %v264_v54 }
  0xb0   : > { %v370_v56 = vmul.f32 %v369_v52, %v2837_v55  ;;  %v329_v57 = vmul.f32 %v328_v53, %v2837_v55  ;;  %v411_v62 = vmul.f32 %v410_v58, %v2837_v55  ;;  %v452_v6 = vmul.f32 %v451_v3, %v2837_v55 }
  0xb1   : > { %v493_v10 = vmul.f32 %v492_v9, %v2837_v55  ;;  %v534_v14 = vmul.f32 %v533_v13, %v2837_v55  ;;  %v603_v18 = vmul.f32 %v602_v17, %v2837_v55  ;;  %v647_v24 = vmul.f32 %v646_v21, %v2837_v55 }
  0xb2   : > { %376 = vrot.lane.b32.xlu1 %v370_v56, %s2762_s26  ;;  %335 = vrot.lane.b32.xlu2 %v329_v57, %s2763_s27  ;;  %v691_v28 = vmul.f32 %v690_v27, %v2837_v55  ;;  %v735_v32 = vmul.f32 %v734_v31, %v2837_v55  ;;  %v779_v36 = vmul.f32 %v2855_v4, %v2837_v55 }
  0xb4   : > { %v278_v35 = vpop.permute.xlu1 %277 }
  0xb5   : > { %v2917_v40 = vsel %vm267_vm3, 0.0, %v278_v35 }
  0xb6   : > { %v266_v59 = vpop.permute.xlu0 %265  ;;  %v349_v41 = vmul.f32 %v348_v39, %v2917_v40  ;;  %v390_v48 = vmul.f32 %v389_v46, %v2917_v40 }
  0xb7   : > { %v2844_v60 = vsel %vm267_vm3, %v264_v54, %v266_v59  ;;  %v2847_v61 = vsel %vm267_vm3, %v266_v59, 0.0 }
  0xb8   : > { %v331_v63 = vmul.f32 %v328_v53, %v2847_v61  ;;  %v330_v2 = vmul.f32 %v328_v53, %v2844_v60  ;;  %v2859_v5 = vmul.f32 %v2855_v4, %v2847_v61  ;;  %v372_v7 = vmul.f32 %v369_v52, %v2847_v61 }
  0xb9   : > { %v371_v8 = vmul.f32 %v369_v52, %v2844_v60  ;;  %v413_v11 = vmul.f32 %v410_v58, %v2847_v61  ;;  %v412_v12 = vmul.f32 %v410_v58, %v2844_v60  ;;  %v454_v15 = vmul.f32 %v451_v3, %v2847_v61 }
  0xba   : > { %417 = vrot.lane.b32.xlu1 %v411_v62, %s2764_s30  ;;  %339 = vrot.lane.b32.xlu0 %v331_v63, %s2763_s27  ;;  %v453_v16 = vmul.f32 %v451_v3, %v2844_v60  ;;  %v495_v19 = vmul.f32 %v492_v9, %v2847_v61  ;;  %v494_v20 = vmul.f32 %v492_v9, %v2844_v60  ;;  %v471_v58 = vstv %s2563_s20  ;;  %s2592_s20 = sld [smem:[#allocation4 + $0x25]] }
  0xbb   : > { %337 = vrot.lane.b32.xlu2 %v330_v2, %s2763_s27  ;;  %v2889_v23 = vmul.f32 %v2885_v22, %v2847_v61  ;;  %v536_v25 = vmul.f32 %v533_v13, %v2847_v61  ;;  %v535_v26 = vmul.f32 %v533_v13, %v2844_v60  ;;  %v605_v29 = vmul.f32 %v602_v17, %v2847_v61 }
  0xbc   : > { %v604_v30 = vmul.f32 %v602_v17, %v2844_v60  ;;  %v649_v33 = vmul.f32 %v646_v21, %v2847_v61  ;;  %v648_v34 = vmul.f32 %v646_v21, %v2844_v60  ;;  %v693_v37 = vmul.f32 %v690_v27, %v2847_v61  ;;  %v280_v44 = vpop.permute.xlu1 %279 }
  0xbd   : > { %4029 = vst [vmem:[#allocation9_spill] sm:$0xff] %v2889_v23  ;;  %v692_v38 = vmul.f32 %v690_v27, %v2844_v60  ;;  %v737_v42 = vmul.f32 %v734_v31, %v2847_v61  ;;  %v736_v43 = vmul.f32 %v734_v31, %v2844_v60  ;;  %v2926_v45 = vsel %vm267_vm3, %v280_v44, 0.0 }
  0xbe   : > { %v351_v47 = vmul.f32 %v348_v39, %v2926_v45  ;;  %v780_v49 = vmul.f32 %v2855_v4, %v2844_v60  ;;  %v2938_v52 = vsel %vm267_vm3, %v278_v35, %v280_v44  ;;  %v431_v53 = vmul.f32 %v430_v51, %v2917_v40 }
  0xbf   : > { %v392_v54 = vmul.f32 %v389_v46, %v2926_v45  ;;  %v350_v56 = vmul.f32 %v348_v39, %v2938_v52  ;;  %v472_v59 = vmul.f32 %v471_v58, %v2917_v40  ;;  %v433_v62 = vmul.f32 %v430_v51, %v2926_v45 }
  0xc0   : > { %v391_v63 = vmul.f32 %v389_v46, %v2938_v52  ;;  %v512_v3 = vstv %s2565_s21  ;;  %v473_v13 = vmul.f32 %v471_v58, %v2938_v52  ;;  %v623_v17 = vstv %s2571_s23  ;;  %s2593_s21 = sld [smem:[#allocation4 + $0x56]] }
  0xc1   : > { %v513_v4 = vmul.f32 %v512_v3, %v2917_v40  ;;  %v1061_v23 = vstv %s2591_s19  ;;  %s2568_s23 = sld [smem:[#allocation4 + $0x1]] }
  0xc2   : > { %458 = vrot.lane.b32.xlu1 %v452_v6, %s2765_s4  ;;  %380 = vrot.lane.b32.xlu0 %v372_v7, %s2762_s26  ;;  %v474_v6 = vmul.f32 %v471_v58, %v2926_v45  ;;  %v432_v7 = vmul.f32 %v430_v51, %v2938_v52  ;;  %v1062_v22 = vmul.f32 %v1061_v23, %v2917_v40  ;;  %s2605_s19 = sld [smem:[#allocation4 + $0x50]] }
  0xc3   : > { %378 = vrot.lane.b32.xlu2 %v371_v8, %s2762_s26 }
  0xca   : > { %499 = vrot.lane.b32.xlu1 %v493_v10, %s2766_s6  ;;  %421 = vrot.lane.b32.xlu0 %v413_v11, %s2764_s30  ;;  %v553_v10 = vstv %s2567_s22  ;;  %s2569_s22 = sld [smem:[#allocation4 + $0x32]] }
  0xcb   : > { %419 = vrot.lane.b32.xlu2 %v412_v12, %s2764_s30  ;;  %v554_v11 = vmul.f32 %v553_v10, %v2917_v40  ;;  %v515_v12 = vmul.f32 %v512_v3, %v2926_v45 }
  0xd2   : > { %540 = vrot.lane.b32.xlu1 %v534_v14, %s2767_s8  ;;  %462 = vrot.lane.b32.xlu0 %v454_v15, %s2765_s4 }
  0xd3   : > { %460 = vrot.lane.b32.xlu2 %v453_v16, %s2765_s4 }
  0xda   : > { %609 = vrot.lane.b32.xlu1 %v603_v18, %s2763_s27  ;;  %503 = vrot.lane.b32.xlu0 %v495_v19, %s2766_s6  ;;  %v624_v18 = vmul.f32 %v623_v17, %v2917_v40  ;;  %v556_v19 = vmul.f32 %v553_v10, %v2926_v45 }
  0xdb   : > { %501 = vrot.lane.b32.xlu2 %v494_v20, %s2766_s6  ;;  %v514_v20 = vmul.f32 %v512_v3, %v2938_v52 }
  0xe2   : > { %653 = vrot.lane.b32.xlu1 %v647_v24, %s2762_s26  ;;  %544 = vrot.lane.b32.xlu0 %v536_v25, %s2767_s8 }
  0xe3   : > { %542 = vrot.lane.b32.xlu2 %v535_v26, %s2767_s8  ;;  %v667_v26 = vstv %s2573_s24  ;;  %s2594_s24 = sld [smem:[#allocation4 + $0x2c]] }
  0xe4   : > { %v668_v27 = vmul.f32 %v667_v26, %v2917_v40  ;;  %v670_v35 = vmul.f32 %v667_v26, %v2926_v45  ;;  %v669_v44 = vmul.f32 %v667_v26, %v2938_v52 }
  0xea   : > { %697 = vrot.lane.b32.xlu1 %v691_v28, %s2764_s30  ;;  %613 = vrot.lane.b32.xlu0 %v605_v29, %s2763_s27  ;;  %v626_v28 = vmul.f32 %v623_v17, %v2926_v45  ;;  %v555_v29 = vmul.f32 %v553_v10, %v2938_v52  ;;  %v843_v10 = vstv %s2581_s5  ;;  %s2598_s5 = sld [smem:[#allocation4 + $0xa]] }
  0xeb   : > { %611 = vrot.lane.b32.xlu2 %v604_v30, %s2763_s27 }
  0xf2   : > { %741 = vrot.lane.b32.xlu1 %v735_v32, %s2765_s4  ;;  %657 = vrot.lane.b32.xlu0 %v649_v33, %s2762_s26  ;;  %v711_v33 = vstv %s2575_s25  ;;  %s2595_s25 = sld [smem:[#allocation4 + $0x5d]] }
  0xf3   : > { %655 = vrot.lane.b32.xlu2 %v648_v34, %s2762_s26  ;;  %v712_v34 = vmul.f32 %v711_v33, %v2917_v40 }
  0xfa   : > { %785 = vrot.lane.b32.xlu1 %v779_v36, %s2766_s6  ;;  %701 = vrot.lane.b32.xlu0 %v693_v37, %s2764_s30  ;;  %v625_v36 = vmul.f32 %v623_v17, %v2938_v52 }
  0xfb   : > { %699 = vrot.lane.b32.xlu2 %v692_v38, %s2764_s30 }
 0x102   : > { %355 = vrot.lane.b32.xlu1 %v349_v41, %s2763_s27  ;;  %745 = vrot.lane.b32.xlu0 %v737_v42, %s2765_s4  ;;  %v755_v41 = vstv %s2577_s28  ;;  %s2768_s28 = smov 127  }
 0x103   : > { %743 = vrot.lane.b32.xlu2 %v736_v43, %s2765_s4  ;;  %v756_v42 = vmul.f32 %v755_v41, %v2917_v40  ;;  %v714_v43 = vmul.f32 %v711_v33, %v2926_v45  ;;  %v757_v3 = vmul.f32 %v755_v41, %v2938_v52 }
 0x10a   : > { %396 = vrot.lane.b32.xlu1 %v390_v48, %s2762_s26  ;;  %359 = vrot.lane.b32.xlu0 %v351_v47, %s2763_s27 }
 0x10b   : > { %787 = vrot.lane.b32.xlu2 %v780_v49, %s2766_s6  ;;  %v799_v49 = vstv %s2579_s29  ;;  %s2583_s29 = sld [smem:[#allocation4 + $0x33]] }
 0x10c   : > { %v2935_v50 = vpop.permute.xlu2 %335  ;;  %v800_v51 = vmul.f32 %v799_v49, %v2917_v40 }
 0x112   : > { %437 = vrot.lane.b32.xlu1 %v431_v53, %s2764_s30  ;;  %400 = vrot.lane.b32.xlu0 %v392_v54, %s2762_s26  ;;  %v758_v53 = vmul.f32 %v755_v41, %v2926_v45  ;;  %v713_v54 = vmul.f32 %v711_v33, %v2938_v52  ;;  %v845_v41 = vmul.f32 %v843_v10, %v2938_v52 }
 0x113   : > { %357 = vrot.lane.b32.xlu2 %v350_v56, %s2763_s27 }
 0x115   : > { %v2946_v57 = vpop.permute.xlu2 %337 }
 0x11a   : > { %478 = vrot.lane.b32.xlu1 %v472_v59, %s2765_s4  ;;  %441 = vrot.lane.b32.xlu0 %v433_v62, %s2764_s30  ;;  %v822_v62 = vstv %s2580_s3  ;;  %s2582_s3 = sld [smem:[#allocation4 + $0x2]] }
 0x11b   : > { %398 = vrot.lane.b32.xlu2 %v391_v63, %s2762_s26  ;;  %v823_v63 = vmul.f32 %v822_v62, %v2837_v55  ;;  %v825_v26 = vmul.f32 %v822_v62, %v2847_v61 }
 0x11d   : > { %v2954_v2 = vpop.permute.xlu2 %378 }
 0x122   : > { %519 = vrot.lane.b32.xlu1 %v513_v4, %s2766_s6  ;;  %482 = vrot.lane.b32.xlu0 %v474_v6, %s2765_s4 }
 0x123   : > { %439 = vrot.lane.b32.xlu2 %v432_v7, %s2764_s30 }
 0x124   : > { %v2962_v8 = vpop.permute.xlu1 %376 }
 0x125   : > { %v2964_v9 = vpop.permute.xlu2 %419 }
 0x12a   : > { %560 = vrot.lane.b32.xlu1 %v554_v11, %s2767_s8  ;;  %523 = vrot.lane.b32.xlu0 %v515_v12, %s2766_s6  ;;  %v844_v11 = vmul.f32 %v843_v10, %v2917_v40  ;;  %v802_v12 = vmul.f32 %v799_v49, %v2926_v45 }
 0x12b   : > { %480 = vrot.lane.b32.xlu2 %v473_v13, %s2765_s4  ;;  %v801_v13 = vmul.f32 %v799_v49, %v2938_v52  ;;  %v952_v49 = vstv %s2586_s14  ;;  %s2600_s14 = sld [smem:[#allocation4 + $0x11]] }
 0x12c   : > { %v2972_v14 = vpop.permute.xlu1 %417  ;;  %v2974_v15 = vpop.permute.xlu0 %339 }
 0x12d   : > { %v2976_v16 = vpop.permute.xlu2 %460 }
 0x132   : > { %630 = vrot.lane.b32.xlu1 %v624_v18, %s2763_s27  ;;  %564 = vrot.lane.b32.xlu0 %v556_v19, %s2767_s8  ;;  %v908_v19 = vstv %s2584_s7  ;;  %s2769_s7 = smov 126  }
 0x133   : > { %521 = vrot.lane.b32.xlu2 %v514_v20, %s2766_s6  ;;  %v909_v20 = vmul.f32 %v908_v19, %v2837_v55 }
 0x134   : > { %v2984_v21 = vpop.permute.xlu1 %458  ;;  %v2986_v24 = vpop.permute.xlu0 %380 }
 0x135   : > { %4030 = vst [vmem:[#allocation10_spill] sm:$0xff] %v2986_v24  ;;  %v2988_v25 = vpop.permute.xlu2 %501 }
 0x136   : > { %4031 = vst [vmem:[#allocation11_spill] sm:$0xff] %v2988_v25 }
 0x13a   : > { %674 = vrot.lane.b32.xlu1 %v668_v27, %s2762_s26  ;;  %634 = vrot.lane.b32.xlu0 %v626_v28, %s2763_s27  ;;  %v824_v27 = vmul.f32 %v822_v62, %v2844_v60 }
 0x13b   : > { %562 = vrot.lane.b32.xlu2 %v555_v29, %s2767_s8 }
 0x13c   : > { %v2996_v30 = vpop.permute.xlu1 %499  ;;  %v2998_v31 = vpop.permute.xlu0 %421 }
 0x13d   : > { %4032 = vst [vmem:[#allocation12_spill] sm:$0xff] %v2996_v30  ;;  %v3000_v32 = vpop.permute.xlu2 %542 }
 0x13e   : > { %4033 = vst [vmem:[#allocation13_spill] sm:$0xff] %v2998_v31 }
 0x13f   : > { %4034 = vst [vmem:[#allocation14_spill] sm:$0xff] %v3000_v32 }
 0x142   : > { %718 = vrot.lane.b32.xlu1 %v712_v34, %s2764_s30  ;;  %678 = vrot.lane.b32.xlu0 %v670_v35, %s2762_s26  ;;  %v929_v34 = vstv %s2585_s12  ;;  %s2599_s12 = sld [smem:[#allocation4 + $0x3b]] }
 0x143   : > { %632 = vrot.lane.b32.xlu2 %v625_v36, %s2763_s27  ;;  %v930_v35 = vmul.f32 %v929_v34, %v2917_v40  ;;  %v846_v36 = vmul.f32 %v843_v10, %v2926_v45  ;;  %v973_v10 = vstv %s2587_s15  ;;  %s2601_s15 = sld [smem:[#allocation4 + $0x42]] }
 0x144   : > { %v3008_v37 = vpop.permute.xlu1 %540  ;;  %v3010_v38 = vpop.permute.xlu0 %462 }
 0x145   : > { %4035 = vst [vmem:[#allocation15_spill] sm:$0xff] %v3008_v37  ;;  %v3012_v39 = vpop.permute.xlu2 %611  ;;  %v586_v37 = vstv %s2568_s23  ;;  %s2609_s23 = sld [smem:[#allocation4 + $0x5e]] }
 0x146   : > { %4036 = vst [vmem:[#allocation16_spill] sm:$0xff] %v3010_v38  ;;  %v593_v38 = vstv %s2569_s22  ;;  %s2608_s22 = sld [smem:[#allocation4 + $0x2d]] }
 0x14a   : > { %762 = vrot.lane.b32.xlu1 %v756_v42, %s2765_s4  ;;  %722 = vrot.lane.b32.xlu0 %v714_v43, %s2764_s30 }
 0x14b   : > { %676 = vrot.lane.b32.xlu2 %v669_v44, %s2762_s26 }
 0x14c   : > { %v3020_v46 = vpop.permute.xlu1 %609  ;;  %v3022_v47 = vpop.permute.xlu0 %503 }
 0x14d   : > { %4037 = vst [vmem:[#allocation17_spill] sm:$0xff] %v3022_v47  ;;  %v3024_v48 = vpop.permute.xlu2 %655 }
 0x152   : > { %806 = vrot.lane.b32.xlu1 %v800_v51, %s2766_s6  ;;  %766 = vrot.lane.b32.xlu0 %v758_v53, %s2765_s4  ;;  %v953_v51 = vmul.f32 %v952_v49, %v2837_v55  ;;  %v911_v53 = vmul.f32 %v908_v19, %v2847_v61 }
 0x153   : > { %720 = vrot.lane.b32.xlu2 %v713_v54, %s2764_s30  ;;  %v910_v54 = vmul.f32 %v908_v19, %v2844_v60 }
 0x154   : > { %v3032_v56 = vpop.permute.xlu1 %653  ;;  %v3034_v58 = vpop.permute.xlu0 %544 }
 0x155   : > { %4038 = vst [vmem:[#allocation18_spill] sm:$0xff] %v3034_v58  ;;  %v3036_v59 = vpop.permute.xlu2 %699 }
 0x15a   : > { %829 = vrot.lane.b32.xlu1 %v823_v63, %s2767_s8  ;;  %789 = vrot.lane.b32.xlu0 %v2859_v5, %s2766_s6 }
 0x15b   : > { %764 = vrot.lane.b32.xlu2 %v757_v3, %s2765_s4 }
 0x15c   : > { %v3044_v4 = vpop.permute.xlu1 %697  ;;  %v3046_v6 = vpop.permute.xlu0 %613 }
 0x15d   : > { %v3048_v7 = vpop.permute.xlu2 %743  ;;  %v616_v24 = vsel %vm341_vm4, %v3012_v39, %v3046_v6 }
 0x162   : > { %850 = vrot.lane.b32.xlu1 %v844_v11, %s2767_s8  ;;  %810 = vrot.lane.b32.xlu0 %v802_v12, %s2766_s6  ;;  %v974_v11 = vmul.f32 %v973_v10, %v2917_v40  ;;  %v932_v12 = vmul.f32 %v929_v34, %v2926_v45 }
 0x163   : > { %808 = vrot.lane.b32.xlu2 %v801_v13, %s2766_s6  ;;  %v931_v13 = vmul.f32 %v929_v34, %v2938_v52  ;;  %v954_v34 = vmul.f32 %v952_v49, %v2844_v60 }
 0x164   : > { %v3056_v5 = vpop.permute.xlu1 %741  ;;  %v3058_v17 = vpop.permute.xlu0 %657 }
 0x165   : > { %v3060_v18 = vpop.permute.xlu2 %787 }
 0x16a   : > { %915 = vrot.lane.b32.xlu1 %v909_v20, %s2763_s27  ;;  %833 = vrot.lane.b32.xlu0 %v825_v26, %s2767_s8 }
 0x16b   : > { %831 = vrot.lane.b32.xlu2 %v824_v27, %s2767_s8  ;;  %v996_v27 = vstv %s2588_s16  ;;  %s2602_s16 = sld [smem:[#allocation4 + $0x18]] }
 0x16c   : > { %v3068_v28 = vpop.permute.xlu1 %785  ;;  %v3070_v29 = vpop.permute.xlu0 %701  ;;  %v999_v1 = vmul.f32 %v996_v27, %v2847_v61 }
 0x16d   : > { %v3072_v33 = vpop.permute.xlu2 %357 }
 0x172   : > { %936 = vrot.lane.b32.xlu1 %v930_v35, %s2763_s27  ;;  %854 = vrot.lane.b32.xlu0 %v846_v36, %s2767_s8  ;;  %v997_v35 = vmul.f32 %v996_v27, %v2837_v55  ;;  %v955_v36 = vmul.f32 %v952_v49, %v2847_v61  ;;  %v975_v49 = vmul.f32 %v973_v10, %v2938_v52 }
 0x173   : > { %852 = vrot.lane.b32.xlu2 %v845_v41, %s2767_s8 }
 0x174   : > { %v3080_v42 = vpop.permute.xlu1 %355  ;;  %v3082_v43 = vpop.permute.xlu0 %745 }
 0x175   : > { %v3084_v44 = vpop.permute.xlu2 %398 }
 0x17a   : > { %959 = vrot.lane.b32.xlu1 %v953_v51, %s2762_s26  ;;  %919 = vrot.lane.b32.xlu0 %v911_v53, %s2763_s27 }
 0x17b   : > { %917 = vrot.lane.b32.xlu2 %v910_v54, %s2763_s27  ;;  %v1017_v54 = vstv %s2589_s17  ;;  %s2603_s17 = sld [smem:[#allocation4 + $0x49]] }
 0x17c   : > { %v3092_v62 = vpop.permute.xlu1 %396  ;;  %v3094_v63 = vpop.permute.xlu0 %359  ;;  %v1020_v58 = vmul.f32 %v1017_v54, %v2926_v45 }
 0x17d   : > { %v3096_v3 = vpop.permute.xlu2 %439 }
 0x182   : > { %980 = vrot.lane.b32.xlu1 %v974_v11, %s2762_s26  ;;  %940 = vrot.lane.b32.xlu0 %v932_v12, %s2763_s27  ;;  %v1018_v11 = vmul.f32 %v1017_v54, %v2917_v40  ;;  %v976_v12 = vmul.f32 %v973_v10, %v2926_v45  ;;  %v998_v10 = vmul.f32 %v996_v27, %v2844_v60 }
 0x183   : > { %938 = vrot.lane.b32.xlu2 %v931_v13, %s2763_s27  ;;  %v1019_v27 = vmul.f32 %v1017_v54, %v2938_v52 }
 0x184   : > { %v3104_v19 = vpop.permute.xlu1 %437  ;;  %v3106_v20 = vpop.permute.xlu0 %400 }
 0x185   : > { %4039 = vst [vmem:[#allocation19_spill] sm:$0xff] %v3106_v20  ;;  %v3108_v26 = vpop.permute.xlu2 %480 }
 0x186   : > { %4040 = vst [vmem:[#allocation20_spill] sm:$0xff] %v3108_v26 }
 0x18a   : > { %1003 = vrot.lane.b32.xlu1 %v997_v35, %s2764_s30  ;;  %963 = vrot.lane.b32.xlu0 %v955_v36, %s2762_s26 }
 0x18b   : > { %961 = vrot.lane.b32.xlu2 %v954_v34, %s2762_s26  ;;  %v1040_v34 = vstv %s2590_s18  ;;  %s2604_s18 = sld [smem:[#allocation4 + $0x1f]] }
 0x18c   : > { %v3116_v41 = vpop.permute.xlu1 %478  ;;  %v3118_v51 = vpop.permute.xlu0 %441  ;;  %v1041_v0 = vmul.f32 %v1040_v34, %v2837_v55  ;;  %v1042_v54 = vmul.f32 %v1040_v34, %v2844_v60 }
 0x18d   : > { %4041 = vst [vmem:[#allocation21_spill] sm:$0xff] %v3116_v41  ;;  %v3120_v53 = vpop.permute.xlu2 %521 }
 0x18e   : > { %4042 = vst [vmem:[#allocation22_spill] sm:$0xff] %v3118_v51  ;;  %v615_v51 = vsel %vm341_vm4, %v3020_v46, %v3012_v39 }
 0x18f   : > { %4043 = vst [vmem:[#allocation23_spill] sm:$0xff] %v3120_v53 }
 0x192   : > { %1024 = vrot.lane.b32.xlu1 %v1018_v11, %s2764_s30  ;;  %984 = vrot.lane.b32.xlu0 %v976_v12, %s2762_s26 }
 0x193   : > { %982 = vrot.lane.b32.xlu2 %v975_v49, %s2762_s26 }
 0x194   : > { %v3128_v13 = vpop.permute.xlu1 %519  ;;  %v3130_v35 = vpop.permute.xlu0 %482 }
 0x195   : > { %4044 = vst [vmem:[#allocation24_spill] sm:$0xff] %v3128_v13  ;;  %v3132_v36 = vpop.permute.xlu2 %562 }
 0x196   : > { %4045 = vst [vmem:[#allocation25_spill] sm:$0xff] %v3130_v35  ;;  %v1043_v35 = vmul.f32 %v1040_v34, %v2847_v61  ;;  %v1063_v34 = vmul.f32 %v1061_v23, %v2938_v52 }
 0x197   : > { %4046 = vst [vmem:[#allocation26_spill] sm:$0xff] %v3132_v36  ;;  %v1064_v36 = vmul.f32 %v1061_v23, %v2926_v45  ;;  %v1128_v23 = vstv %s2594_s24  ;;  %s2597_s24 = sld [smem:[#allocation4 + $0x34]] }
 0x19a   : > { %1047 = vrot.lane.b32.xlu1 %v1041_v0, %s2765_s4  ;;  %1007 = vrot.lane.b32.xlu0 %v999_v1, %s2764_s30 }
 0x19b   : > { %1005 = vrot.lane.b32.xlu2 %v998_v10, %s2764_s30 }
 0x19c   : > { %v3140_v11 = vpop.permute.xlu1 %560  ;;  %v3142_v12 = vpop.permute.xlu0 %523 }
 0x19d   : > { %4047 = vst [vmem:[#allocation27_spill] sm:$0xff] %v3140_v11  ;;  %v3144_v49 = vpop.permute.xlu2 %632 }
 0x19e   : > { %4048 = vst [vmem:[#allocation28_spill] sm:$0xff] %v3142_v12  ;;  %v1084_v12 = vstv %s2592_s20  ;;  %s2606_s20 = sld [smem:[#allocation4 + $0x26]] }
 0x19f   : > { %v1085_v47 = vmul.f32 %v1084_v12, %v2837_v55  ;;  %v1087_v53 = vmul.f32 %v1084_v12, %v2847_v61  ;;  %v1086_v30 = vmul.f32 %v1084_v12, %v2844_v60  ;;  %v1149_v12 = vstv %s2595_s25  ;;  %s2596_s25 = sld [smem:[#allocation4 + $0x3]] }
 0x1a2   : > { %1068 = vrot.lane.b32.xlu1 %v1062_v22, %s2765_s4  ;;  %1028 = vrot.lane.b32.xlu0 %v1020_v58, %s2764_s30 }
 0x1a3   : > { %1026 = vrot.lane.b32.xlu2 %v1019_v27, %s2764_s30 }
 0x1a4   : > { %v631_v0 = vpop.permute.xlu1 %630  ;;  %v3152_v1 = vpop.permute.xlu0 %564 }
 0x1a5   : > { %4049 = vst [vmem:[#allocation29_spill] sm:$0xff] %v3152_v1  ;;  %v3154_v10 = vpop.permute.xlu2 %676  ;;  %v1105_v1 = vstv %s2593_s21  ;;  %s2607_s21 = sld [smem:[#allocation4 + $0x57]] }
 0x1a6   : > { %v1106_v11 = vmul.f32 %v1105_v1, %v2917_v40 }
 0x1aa   : > { %1091 = vrot.lane.b32.xlu1 %v1085_v47, %s2766_s6  ;;  %1051 = vrot.lane.b32.xlu0 %v1043_v35, %s2765_s4  ;;  %v594_v47 = vmul.f32 %v593_v38, %v2917_v40  ;;  %v587_v35 = vmul.f32 %v586_v37, %v2837_v55 }
 0x1ab   : > { %1049 = vrot.lane.b32.xlu2 %v1042_v54, %s2765_s4 }
 0x1ac   : > { %v675_v22 = vpop.permute.xlu1 %674  ;;  %v3162_v58 = vpop.permute.xlu0 %634  ;;  %v597_v13 = vadd.f32 %v594_v47, %v587_v35 }
 0x1ad   : > { %v3164_v27 = vpop.permute.xlu2 %720 }
 0x1b2   : > { %1112 = vrot.lane.b32.xlu1 %v1106_v11, %s2766_s6  ;;  %1072 = vrot.lane.b32.xlu0 %v1064_v36, %s2765_s4  ;;  %v636_v36 = vsel %vm341_vm4, %v631_v0, %v3144_v49  ;;  %v620_v11 = vadd.f32 %v615_v51, %v597_v13  ;;  %v659_v51 = vsel %vm382_vm5, %v3032_v56, %v3024_v48 }
 0x1b3   : > { %1070 = vrot.lane.b32.xlu2 %v1063_v34, %s2765_s4  ;;  %v1129_v34 = vmul.f32 %v1128_v23, %v2837_v55  ;;  %v680_v13 = vsel %vm382_vm5, %v675_v22, %v3154_v10  ;;  %v703_v56 = vsel %vm423_vm6, %v3044_v4, %v3036_v59  ;;  %v596_v22 = vmul.f32 %v593_v38, %v2926_v45 }
 0x1b4   : > { %v719_v54 = vpop.permute.xlu1 %718  ;;  %v3174_v32 = vpop.permute.xlu0 %678  ;;  %v641_v25 = vadd.f32 %v636_v36, %v620_v11  ;;  %v1107_v11 = vmul.f32 %v1105_v1, %v2938_v52 }
 0x1b5   : > { %v3179_v31 = vpop.permute.xlu2 %764 }
 0x1b6   : > { %v664_v35 = vadd.f32 %v659_v51, %v641_v25  ;;  %v724_v25 = vsel %vm423_vm6, %v719_v54, %v3164_v27 }
 0x1b8   : > { %v685_v36 = vadd.f32 %v680_v13, %v664_v35  ;;  %v589_v35 = vmul.f32 %v586_v37, %v2847_v61 }
 0x1ba   : > { %1135 = vrot.lane.b32.xlu1 %v1129_v34, %s2767_s8  ;;  %1095 = vrot.lane.b32.xlu0 %v1087_v53, %s2766_s6  ;;  %v1150_v53 = vmul.f32 %v1149_v12, %v2917_v40  ;;  %v595_v34 = vmul.f32 %v593_v38, %v2938_v52  ;;  %v708_v51 = vadd.f32 %v703_v56, %v685_v36 }
 0x1bb   : > { %1093 = vrot.lane.b32.xlu2 %v1086_v30, %s2766_s6  ;;  %v1108_v30 = vmul.f32 %v1105_v1, %v2926_v45  ;;  %v599_v4 = vadd.f32 %v596_v22, %v589_v35  ;;  %v1130_v38 = vmul.f32 %v1128_v23, %v2844_v60  ;;  %v747_v56 = vsel %vm464_vm7, %v3056_v5, %v3048_v7 }
 0x1bc   : > { %v763_v46 = vpop.permute.xlu1 %762  ;;  %v3189_v47 = vpop.permute.xlu0 %722  ;;  %v729_v20 = vadd.f32 %v724_v25, %v708_v51 }
 0x1bd   : > { %v3196_v0 = vpop.permute.xlu2 %808  ;;  %v622_v36 = vadd.f32 %v3046_v6, %v599_v4  ;;  %v768_v22 = vsel %vm464_vm7, %v763_v46, %v3179_v31 }
 0x1be   : > { %v752_v25 = vadd.f32 %v747_v56, %v729_v20  ;;  %v704_v56 = vsel %vm423_vm6, %v3036_v59, %v3070_v29  ;;  %v748_v59 = vsel %vm464_vm7, %v3048_v7, %v3082_v43 }
 0x1c2   : > { %1156 = vrot.lane.b32.xlu1 %v1150_v53, %s2767_s8  ;;  %1116 = vrot.lane.b32.xlu0 %v1108_v30, %s2766_s6  ;;  %v588_v30 = vmul.f32 %v586_v37, %v2844_v60  ;;  %v637_v37 = vsel %vm341_vm4, %v3144_v49, %v3162_v58  ;;  %v660_v49 = vsel %vm382_vm5, %v3024_v48, %v3058_v17 }
 0x1c3   : > { %1114 = vrot.lane.b32.xlu2 %v1107_v11, %s2766_s6  ;;  %v1131_v11 = vmul.f32 %v1128_v23, %v2847_v61  ;;  %v773_v23 = vadd.f32 %v768_v22, %v752_v25 }
 0x1c4   : > { %v807_v1 = vpop.permute.xlu1 %806  ;;  %v767_v13 = vpop.permute.xlu0 %766  ;;  %v598_v54 = vadd.f32 %v595_v34, %v588_v30  ;;  %v643_v34 = vadd.f32 %v3162_v58, %v622_v36  ;;  %v681_v58 = vsel %vm382_vm5, %v3154_v10, %v3174_v32 }
 0x1c5   : > { %v3212_v53 = vpop.permute.xlu2 %831  ;;  %v812_v46 = vsel %vm505_vm8, %v807_v1, %v3196_v0 }
 0x1c6   : > { %v621_v39 = vadd.f32 %v616_v24, %v598_v54  ;;  %v791_v24 = vsel %vm505_vm8, %v3068_v28, %v3060_v18  ;;  %v666_v20 = vadd.f32 %v3058_v17, %v643_v34  ;;  %v1152_v54 = vmul.f32 %v1149_v12, %v2926_v45 }
 0x1c7   : > { %v796_v4 = vadd.f32 %v791_v24, %v773_v23  ;;  %v1151_v28 = vmul.f32 %v1149_v12, %v2938_v52 }
 0x1c8   : > { %v642_v6 = vadd.f32 %v637_v37, %v621_v39  ;;  %v687_v48 = vadd.f32 %v3174_v32, %v666_v20  ;;  %v725_v37 = vsel %vm423_vm6, %v3164_v27, %v3189_v47  ;;  %v769_v27 = vsel %vm464_vm7, %v3179_v31, %v767_v13 }
 0x1ca   : > { %1139 = vrot.lane.b32.xlu0 %v1131_v11, %s2767_s8  ;;  %v665_v30 = vadd.f32 %v660_v49, %v642_v6  ;;  %v710_v32 = vadd.f32 %v3070_v29, %v687_v48 }
 0x1cb   : > { %1137 = vrot.lane.b32.xlu2 %v1130_v38, %s2767_s8  ;;  %v817_v38 = vadd.f32 %v812_v46, %v796_v4 }
 0x1cc   : > { %v830_v51 = vpop.permute.xlu1 %829  ;;  %v790_v35 = vpop.permute.xlu0 %789  ;;  %v686_v17 = vadd.f32 %v681_v58, %v665_v30  ;;  %v731_v34 = vadd.f32 %v3189_v47, %v710_v32 }
 0x1cd   : > { %v853_v5 = vpop.permute.xlu2 %852  ;;  %v835_v11 = vsel %vm546_vm9, %v830_v51, %v3212_v53  ;;  %v792_v20 = vsel %vm505_vm8, %v3060_v18, %v790_v35 }
 0x1ce   : > { %v840_v10 = vadd.f32 %v835_v11, %v817_v38  ;;  %v709_v39 = vadd.f32 %v704_v56, %v686_v17  ;;  %v754_v29 = vadd.f32 %v3082_v43, %v731_v34 }
 0x1d0   : > { %v730_v6 = vadd.f32 %v725_v37, %v709_v39  ;;  %v775_v24 = vadd.f32 %v767_v13, %v754_v29 }
 0x1d2   : > { %1160 = vrot.lane.b32.xlu0 %v1152_v54, %s2767_s8  ;;  %v753_v23 = vadd.f32 %v748_v59, %v730_v6  ;;  %v798_v46 = vadd.f32 %v790_v35, %v775_v24 }
 0x1d3   : > { %1158 = vrot.lane.b32.xlu2 %v1151_v28, %s2767_s8 }
 0x1d4   : > { %v851_v1 = vpop.permute.xlu1 %850  ;;  %v811_v36 = vpop.permute.xlu0 %810  ;;  %v774_v58 = vadd.f32 %v769_v27, %v753_v23  ;;  %v899_v23 = vstv %s2583_s29  ;;  %s2770_s29 = smov 125  }
 0x1d5   : > { %v856_v12 = vsel %vm546_vm9, %v851_v1, %v853_v5  ;;  %v3259_v22 = vpop.permute.xlu2 %917  ;;  %v813_v30 = vsel %vm505_vm8, %v3196_v0, %v811_v36  ;;  %v819_v4 = vadd.f32 %v811_v36, %v798_v46  ;;  %v900_v24 = vmul.f32 %v899_v23, %v2917_v40 }
 0x1d6   : > { %v861_v25 = vadd.f32 %v856_v12, %v840_v10  ;;  %v797_v7 = vadd.f32 %v792_v20, %v774_v58 }
 0x1d8   : > { %875 = vrot.lane.b32.xlu1 %v861_v25, %s2768_s28  ;;  %v818_v31 = vadd.f32 %v813_v30, %v797_v7 }
 0x1dc   : > { %v916_v51 = vpop.permute.xlu1 %915  ;;  %v834_v49 = vpop.permute.xlu0 %833 }
 0x1dd   : > { %v3270_v47 = vpop.permute.xlu2 %938  ;;  %v836_v43 = vsel %vm546_vm9, %v3212_v53, %v834_v49  ;;  %v842_v54 = vadd.f32 %v834_v49, %v819_v4  ;;  %v892_v49 = vstv %s2582_s3  ;;  %v921_v30 = vsel %vm341_vm4, %v916_v51, %v3259_v22  ;;  %s2613_s3 = sld [smem:[#allocation4 + $0x3c]] }
 0x1de   : > { %v841_v48 = vadd.f32 %v836_v43, %v818_v31  ;;  %v893_v20 = vmul.f32 %v892_v49, %v2837_v55 }
 0x1e0   : > { %v903_v7 = vadd.f32 %v900_v24, %v893_v20 }
 0x1e2   : > { %v926_v31 = vadd.f32 %v921_v30, %v903_v7  ;;  %v902_v30 = vmul.f32 %v899_v23, %v2926_v45 }
 0x1e4   : > { %v937_v11 = vpop.permute.xlu1 %936  ;;  %v855_v13 = vpop.permute.xlu0 %854 }
 0x1e5   : > { %v857_v28 = vsel %vm546_vm9, %v853_v5, %v855_v13  ;;  %v863_v18 = vadd.f32 %v855_v13, %v842_v54  ;;  %v3277_v17 = vpop.permute.xlu2 %961  ;;  %v942_v4 = vsel %vm341_vm4, %v937_v11, %v3270_v47 }
 0x1e6   : > { %v862_v38 = vadd.f32 %v857_v28, %v841_v48  ;;  %v947_v48 = vadd.f32 %v942_v4, %v926_v31  ;;  %v901_v4 = vmul.f32 %v899_v23, %v2938_v52  ;;  %v895_v31 = vmul.f32 %v892_v49, %v2847_v61 }
 0x1e7   : > { %879 = vrot.lane.b32.xlu0 %v863_v18, %s2768_s28 }
 0x1e8   : > { %877 = vrot.lane.b32.xlu2 %v862_v38, %s2768_s28  ;;  %s2612_s28 = sld [smem:[#allocation4 + $0xb]] }
 0x1ec   : > { %v960_v35 = vpop.permute.xlu1 %959  ;;  %v920_v0 = vpop.permute.xlu0 %919 }
 0x1ed   : > { %v3279_v10 = vpop.permute.xlu2 %982  ;;  %v965_v54 = vsel %vm382_vm5, %v960_v35, %v3277_v17 }
 0x1ee   : > { %v970_v28 = vadd.f32 %v965_v54, %v947_v48 }
 0x1f4   : > { %v981_v1 = vpop.permute.xlu1 %980  ;;  %v941_v36 = vpop.permute.xlu0 %940 }
 0x1f5   : > { %v3281_v53 = vpop.permute.xlu2 %1005  ;;  %v986_v13 = vsel %vm382_vm5, %v981_v1, %v3279_v10 }
 0x1f6   : > { %v991_v24 = vadd.f32 %v986_v13, %v970_v28  ;;  %v905_v28 = vadd.f32 %v902_v30, %v895_v31 }
 0x1fc   : > { %v1004_v56 = vpop.permute.xlu1 %1003  ;;  %v964_v32 = vpop.permute.xlu0 %963 }
 0x1fd   : > { %v3283_v37 = vpop.permute.xlu2 %1026  ;;  %v1009_v51 = vsel %vm423_vm6, %v1004_v56, %v3281_v53  ;;  %v894_v56 = vmul.f32 %v892_v49, %v2844_v60  ;;  %v966_v30 = vsel %vm382_vm5, %v3277_v17, %v964_v32 }
 0x1fe   : > { %v1014_v20 = vadd.f32 %v1009_v51, %v991_v24  ;;  %v922_v51 = vsel %vm341_vm4, %v3259_v22, %v920_v0 }
 0x1ff   : > { %v904_v24 = vadd.f32 %v901_v4, %v894_v56 }
 0x201   : > { %v927_v49 = vadd.f32 %v922_v51, %v904_v24  ;;  %v1214_v24 = vstv %s2598_s5  ;;  %s2614_s5 = sld [smem:[#allocation4 + $0x12]] }
 0x204   : > { %v1025_v12 = vpop.permute.xlu1 %1024  ;;  %v3285_v5 = vpop.permute.xlu0 %984 }
 0x205   : > { %v3287_v39 = vpop.permute.xlu2 %1049  ;;  %v1030_v11 = vsel %vm423_vm6, %v1025_v12, %v3283_v37 }
 0x206   : > { %v1035_v1 = vadd.f32 %v1030_v11, %v1014_v20  ;;  %v928_v11 = vadd.f32 %v920_v0, %v905_v28  ;;  %v943_v20 = vsel %vm341_vm4, %v3270_v47, %v941_v36  ;;  %v987_v0 = vsel %vm382_vm5, %v3279_v10, %v3285_v5 }
 0x207   : > { %v948_v31 = vadd.f32 %v943_v20, %v927_v49 }
 0x209   : > { %v971_v47 = vadd.f32 %v966_v30, %v948_v31 }
 0x20c   : > { %v1048_v25 = vpop.permute.xlu1 %1047  ;;  %v3289_v34 = vpop.permute.xlu0 %1007 }
 0x20d   : > { %v3291_v6 = vpop.permute.xlu2 %1070  ;;  %v1053_v35 = vsel %vm464_vm7, %v1048_v25, %v3287_v39  ;;  %v1010_v17 = vsel %vm423_vm6, %v3281_v53, %v3289_v34 }
 0x20e   : > { %v1058_v48 = vadd.f32 %v1053_v35, %v1035_v1  ;;  %v949_v1 = vadd.f32 %v941_v36, %v928_v11 }
 0x214   : > { %v1069_v59 = vpop.permute.xlu1 %1068  ;;  %v3293_v29 = vpop.permute.xlu0 %1028 }
 0x215   : > { %v3295_v27 = vpop.permute.xlu2 %1093  ;;  %v1074_v54 = vsel %vm464_vm7, %v1069_v59, %v3291_v6  ;;  %v1031_v10 = vsel %vm423_vm6, %v3283_v37, %v3293_v29 }
 0x216   : > { %v1079_v23 = vadd.f32 %v1074_v54, %v1058_v48 }
 0x21c   : > { %v1092_v58 = vpop.permute.xlu1 %1091  ;;  %v3299_v46 = vpop.permute.xlu0 %1051 }
 0x21d   : > { %v3305_v43 = vpop.permute.xlu2 %1114  ;;  %v1097_v25 = vsel %vm505_vm8, %v1092_v58, %v3295_v27  ;;  %v972_v58 = vadd.f32 %v964_v32, %v949_v1  ;;  %v1054_v53 = vsel %vm464_vm7, %v3287_v39, %v3299_v46 }
 0x21e   : > { %v1102_v35 = vadd.f32 %v1097_v25, %v1079_v23 }
 0x21f   : > { %v993_v36 = vadd.f32 %v3285_v5, %v972_v58 }
 0x221   : > { %v1016_v28 = vadd.f32 %v3289_v34, %v993_v36 }
 0x224   : > { %v1113_v18 = vpop.permute.xlu1 %1112  ;;  %v1073_v38 = vpop.permute.xlu0 %1072 }
 0x225   : > { %v1138_v7 = vpop.permute.xlu2 %1137  ;;  %v1118_v59 = vsel %vm505_vm8, %v1113_v18, %v3305_v43  ;;  %v1075_v34 = vsel %vm464_vm7, %v3291_v6, %v1073_v38 }
 0x226   : > { %v1123_v41 = vadd.f32 %v1118_v59, %v1102_v35 }
 0x22c   : > { %v1136_v13 = vpop.permute.xlu1 %1135  ;;  %v1096_v12 = vpop.permute.xlu0 %1095 }
 0x22d   : > { %v1141_v22 = vsel %vm546_vm9, %v1136_v13, %v1138_v7  ;;  %v1159_v4 = vpop.permute.xlu2 %1158  ;;  %v992_v13 = vadd.f32 %v987_v0, %v971_v47  ;;  %v1098_v20 = vsel %vm505_vm8, %v3295_v27, %v1096_v12  ;;  %v1216_v47 = vmul.f32 %v1214_v24, %v2844_v60 }
 0x22e   : > { %v1146_v54 = vadd.f32 %v1141_v22, %v1123_v41  ;;  %v1037_v41 = vadd.f32 %v3293_v29, %v1016_v28  ;;  %v1215_v29 = vmul.f32 %v1214_v24, %v2837_v55  ;;  %v1235_v22 = vstv %s2599_s12  ;;  %s2616_s12 = sld [smem:[#allocation4 + $0x19]] }
 0x22f   : > { %v1015_v51 = vadd.f32 %v1010_v17, %v992_v13  ;;  %v1302_v17 = vstv %s2602_s16  ;;  %v1323_v28 = vstv %s2603_s17  ;;  %s2619_s16 = sld [smem:[#allocation4 + $0x51]] }
 0x230   : > { %v1060_v25 = vadd.f32 %v3299_v46, %v1037_v41  ;;  %v1324_v41 = vmul.f32 %v1323_v28, %v2917_v40  ;;  %s3558_s17 = sld [smem:[#allocation4 + $0x31]] }
 0x231   : > { %v1036_v5 = vadd.f32 %v1031_v10, %v1015_v51 }
 0x232   : > { %v1081_v11 = vadd.f32 %v1073_v38, %v1060_v25  ;;  %v1304_v25 = vmul.f32 %v1302_v17, %v2844_v60 }
 0x233   : > { %v1059_v23 = vadd.f32 %v1054_v53, %v1036_v5  ;;  %v1346_v53 = vstv %s2604_s18  ;;  %v1305_v5 = vmul.f32 %v1302_v17, %v2847_v61  ;;  %s2620_s18 = sld [smem:[#allocation4 + $0x27]] }
 0x234   : > { %v1157_v18 = vpop.permute.xlu1 %1156  ;;  %v1117_v56 = vpop.permute.xlu0 %1116  ;;  %v1104_v49 = vadd.f32 %v1096_v12, %v1081_v11  ;;  %v1236_v12 = vmul.f32 %v1235_v22, %v2917_v40 }
 0x235   : > { %v1162_v48 = vsel %vm546_vm9, %v1157_v18, %v1159_v4  ;;  %v1080_v59 = vadd.f32 %v1075_v34, %v1059_v23  ;;  %v1119_v39 = vsel %vm505_vm8, %v3305_v43, %v1117_v56  ;;  %v1258_v43 = vstv %s2600_s14  ;;  %s2617_s14 = sld [smem:[#allocation4 + $0x4a]] }
 0x236   : > { %v1167_v32 = vadd.f32 %v1162_v48, %v1146_v54  ;;  %v1125_v46 = vadd.f32 %v1117_v56, %v1104_v49  ;;  %v1259_v54 = vmul.f32 %v1258_v43, %v2837_v55  ;;  %v1238_v18 = vmul.f32 %v1235_v22, %v2926_v45 }
 0x237   : > { %v1103_v35 = vadd.f32 %v1098_v20, %v1080_v59  ;;  %v1237_v56 = vmul.f32 %v1235_v22, %v2938_v52  ;;  %v1261_v48 = vmul.f32 %v1258_v43, %v2847_v61  ;;  %v1260_v13 = vmul.f32 %v1258_v43, %v2844_v60 }
 0x238   : > { %1181 = vrot.lane.b32.xlu1 %v1167_v32, %s2769_s7  ;;  %v1303_v32 = vmul.f32 %v1302_v17, %v2837_v55  ;;  %v1347_v34 = vmul.f32 %v1346_v53, %v2837_v55  ;;  %v1326_v23 = vmul.f32 %v1323_v28, %v2926_v45  ;;  %v1390_v20 = vstv %s2606_s20  ;;  %s2621_s20 = sld [smem:[#allocation4 + $0x58]] }
 0x239   : > { %v1124_v1 = vadd.f32 %v1119_v39, %v1103_v35  ;;  %v1349_v59 = vmul.f32 %v1346_v53, %v2847_v61  ;;  %v1391_v49 = vmul.f32 %v1390_v20, %v2837_v55  ;;  %v1411_v39 = vstv %s2607_s21  ;;  %s2622_s21 = sld [smem:[#allocation4 + $0x2e]] }
 0x23a   : > { %v1392_v22 = vmul.f32 %v1390_v20, %v2844_v60 }
 0x23c   : > { %v1140_v37 = vpop.permute.xlu0 %1139 }
 0x23d   : > { %v1142_v6 = vsel %vm546_vm9, %v1138_v7, %v1140_v37  ;;  %v1148_v30 = vadd.f32 %v1140_v37, %v1125_v46  ;;  %v1217_v7 = vmul.f32 %v1214_v24, %v2847_v61  ;;  %v1367_v24 = vstv %s2605_s19  ;;  %s3560_s19 = sld [smem:[#allocation4]] }
 0x23e   : > { %v1147_v38 = vadd.f32 %v1142_v6, %v1124_v1  ;;  %v1325_v37 = vmul.f32 %v1323_v28, %v2938_v52  ;;  %v1368_v11 = vmul.f32 %v1367_v24, %v2917_v40  ;;  %v1370_v35 = vmul.f32 %v1367_v24, %v2926_v45 }
 0x23f   : > { %v1369_v46 = vmul.f32 %v1367_v24, %v2938_v52  ;;  %v1412_v6 = vmul.f32 %v1411_v39, %v2917_v40  ;;  %v1434_v1 = vstv %s2608_s22  ;;  %s2623_s22 = sld [smem:[#allocation4 + $0x5f]] }
 0x240   : > { %1221 = vrot.lane.b32.xlu1 %v1215_v29, %s2763_s27  ;;  %v1348_v29 = vmul.f32 %v1346_v53, %v2844_v60  ;;  %v1437_v43 = vmul.f32 %v1434_v1, %v2847_v61 }
 0x244   : > { %v1161_v31 = vpop.permute.xlu0 %1160 }
 0x245   : > { %v1163_v27 = vsel %vm546_vm9, %v1159_v4, %v1161_v31  ;;  %v1169_v58 = vadd.f32 %v1161_v31, %v1148_v30  ;;  %v1279_v4 = vstv %s2601_s15  ;;  %v1393_v30 = vmul.f32 %v1390_v20, %v2847_v61  ;;  %s2618_s15 = sld [smem:[#allocation4 + $0x20]] }
 0x246   : > { %v1168_v0 = vadd.f32 %v1163_v27, %v1147_v38  ;;  %v1280_v36 = vmul.f32 %v1279_v4, %v2917_v40  ;;  %v1282_v10 = vmul.f32 %v1279_v4, %v2926_v45  ;;  %v1281_v51 = vmul.f32 %v1279_v4, %v2938_v52 }
 0x247   : > { %1185 = vrot.lane.b32.xlu0 %v1169_v58, %s2769_s7  ;;  %v1435_v38 = vmul.f32 %v1434_v1, %v2837_v55  ;;  %v1455_v31 = vstv %s2609_s23  ;;  %v1414_v27 = vmul.f32 %v1411_v39, %v2926_v45  ;;  %v1413_v58 = vmul.f32 %v1411_v39, %v2938_v52  ;;  %s2611_s23 = sld [smem:[#allocation4 + $0x35]] }
 0x248   : > { %1183 = vrot.lane.b32.xlu2 %v1168_v0, %s2769_s7  ;;  %1242 = vrot.lane.b32.xlu1 %v1236_v12, %s2763_s27  ;;  %v1456_v0 = vmul.f32 %v1455_v31, %v2917_v40  ;;  %v3426_v12 = vpop.permute.xlu2 %877  ;;  %v1458_v4 = vmul.f32 %v1455_v31, %v2926_v45  ;;  %s2615_s7 = sld [smem:[#allocation4 + $0x43]] }
 0x249   : > { %4050 = vst [vmem:[#allocation30_spill] sm:$0xff] %v3426_v12 }
 0x24f   : > { %1225 = vrot.lane.b32.xlu0 %v1217_v7, %s2763_s27  ;;  %v1436_v7 = vmul.f32 %v1434_v1, %v2844_v60  ;;  %v1205_v1 = vstv %s2597_s24  ;;  %s2610_s24 = sld [smem:[#allocation4 + $0x4]] }
 0x250   : > { %1223 = vrot.lane.b32.xlu2 %v1216_v47, %s2763_s27  ;;  %1265 = vrot.lane.b32.xlu1 %v1259_v54, %s2762_s26  ;;  %v3432_v47 = vpop.permute.xlu1 %875 }
 0x251   : > { %4051 = vst [vmem:[#allocation31_spill] sm:$0xff] %v3432_v47 }
 0x257   : > { %1246 = vrot.lane.b32.xlu0 %v1238_v18, %s2763_s27  ;;  %v1457_v18 = vmul.f32 %v1455_v31, %v2938_v52 }
 0x258   : > { %1244 = vrot.lane.b32.xlu2 %v1237_v56, %s2763_s27  ;;  %1286 = vrot.lane.b32.xlu1 %v1280_v36, %s2762_s26 }
 0x259   : > { %v3442_v17 = vpop.permute.xlu0 %879 }
 0x25a   : > { %4054 = vst [vmem:[#allocation34_spill] sm:$0xff] %v3442_v17 }
 0x25f   : > { %1269 = vrot.lane.b32.xlu0 %v1261_v48, %s2762_s26 }
 0x260   : > { %1267 = vrot.lane.b32.xlu2 %v1260_v13, %s2762_s26  ;;  %1309 = vrot.lane.b32.xlu1 %v1303_v32, %s2764_s30 }
 0x267   : > { %1290 = vrot.lane.b32.xlu0 %v1282_v10, %s2762_s26 }
 0x268   : > { %1288 = vrot.lane.b32.xlu2 %v1281_v51, %s2762_s26  ;;  %1330 = vrot.lane.b32.xlu1 %v1324_v41, %s2764_s30 }
 0x26f   : > { %1313 = vrot.lane.b32.xlu0 %v1305_v5, %s2764_s30 }
 0x270   : > { %1311 = vrot.lane.b32.xlu2 %v1304_v25, %s2764_s30  ;;  %1353 = vrot.lane.b32.xlu1 %v1347_v34, %s2765_s4 }
 0x277   : > { %1334 = vrot.lane.b32.xlu0 %v1326_v23, %s2764_s30 }
 0x278   : > { %1332 = vrot.lane.b32.xlu2 %v1325_v37, %s2764_s30  ;;  %1374 = vrot.lane.b32.xlu1 %v1368_v11, %s2765_s4 }
 0x27f   : > { %1357 = vrot.lane.b32.xlu0 %v1349_v59, %s2765_s4 }
 0x280   : > { %1355 = vrot.lane.b32.xlu2 %v1348_v29, %s2765_s4  ;;  %1397 = vrot.lane.b32.xlu1 %v1391_v49, %s2766_s6 }
 0x287   : > { %1378 = vrot.lane.b32.xlu0 %v1370_v35, %s2765_s4 }
 0x288   : > { %1376 = vrot.lane.b32.xlu2 %v1369_v46, %s2765_s4  ;;  %1418 = vrot.lane.b32.xlu1 %v1412_v6, %s2766_s6 }
 0x28f   : > { %1401 = vrot.lane.b32.xlu0 %v1393_v30, %s2766_s6  ;;  %v1198_v30 = vstv %s2596_s25  ;;  %s2626_s25 = sld [smem:[#allocation4 + $0xc]] }
 0x290   : > { %1399 = vrot.lane.b32.xlu2 %v1392_v22, %s2766_s6  ;;  %1441 = vrot.lane.b32.xlu1 %v1435_v38, %s2767_s8  ;;  %v1206_v22 = vmul.f32 %v1205_v1, %v2917_v40  ;;  %v1199_v31 = vmul.f32 %v1198_v30, %v2837_v55 }
 0x297   : > { %1422 = vrot.lane.b32.xlu0 %v1414_v27, %s2766_s6 }
 0x298   : > { %1420 = vrot.lane.b32.xlu2 %v1413_v58, %s2766_s6  ;;  %1462 = vrot.lane.b32.xlu1 %v1456_v0, %s2767_s8  ;;  %v1209_v0 = vadd.f32 %v1206_v22, %v1199_v31  ;;  %v1208_v22 = vmul.f32 %v1205_v1, %v2926_v45 }
 0x29f   : > { %1445 = vrot.lane.b32.xlu0 %v1437_v43, %s2767_s8 }
 0x2a0   : > { %1443 = vrot.lane.b32.xlu2 %v1436_v7, %s2767_s8 }
 0x2a2   : > { %v3434_v54 = vpop.permute.xlu2 %1183 }
 0x2a3   : > { %4052 = vst [vmem:[#allocation32_spill] sm:$0xff] %v3434_v54 }
 0x2a7   : > { %1466 = vrot.lane.b32.xlu0 %v1458_v4, %s2767_s8 }
 0x2a8   : > { %1464 = vrot.lane.b32.xlu2 %v1457_v18, %s2767_s8 }
 0x2aa   : > { %v3440_v56 = vpop.permute.xlu1 %1181  ;;  %v1224_v36 = vpop.permute.xlu2 %1223 }
 0x2ab   : > { %4053 = vst [vmem:[#allocation33_spill] sm:$0xff] %v3440_v56 }
 0x2b2   : > { %v1222_v48 = vpop.permute.xlu1 %1221  ;;  %v1245_v13 = vpop.permute.xlu2 %1244 }
 0x2b3   : > { %v1227_v58 = vsel %vm341_vm4, %v1222_v48, %v1224_v36 }
 0x2b4   : > { %v1232_v7 = vadd.f32 %v1227_v58, %v1209_v0  ;;  %v1207_v58 = vmul.f32 %v1205_v1, %v2938_v52 }
 0x2b9   : > { %v3444_v32 = vpop.permute.xlu0 %1185 }
 0x2ba   : > { %4055 = vst [vmem:[#allocation35_spill] sm:$0xff] %v3444_v32  ;;  %v1243_v28 = vpop.permute.xlu1 %1242  ;;  %v3446_v10 = vpop.permute.xlu2 %1267 }
 0x2bb   : > { %v1248_v43 = vsel %vm341_vm4, %v1243_v28, %v1245_v13 }
 0x2bc   : > { %v1253_v32 = vadd.f32 %v1248_v43, %v1232_v7  ;;  %v1200_v43 = vmul.f32 %v1198_v30, %v2844_v60 }
 0x2c1   : > { %v1226_v51 = vpop.permute.xlu0 %1225 }
 0x2c2   : > { %v1266_v41 = vpop.permute.xlu1 %1265  ;;  %v3448_v53 = vpop.permute.xlu2 %1288 }
 0x2c3   : > { %v1271_v18 = vsel %vm382_vm5, %v1266_v41, %v3446_v10 }
 0x2c4   : > { %v1276_v54 = vadd.f32 %v1271_v18, %v1253_v32  ;;  %v1210_v18 = vadd.f32 %v1207_v58, %v1200_v43 }
 0x2c9   : > { %v1247_v5 = vpop.permute.xlu0 %1246 }
 0x2ca   : > { %v1287_v25 = vpop.permute.xlu1 %1286  ;;  %v3450_v34 = vpop.permute.xlu2 %1311 }
 0x2cb   : > { %v1292_v17 = vsel %vm382_vm5, %v1287_v25, %v3448_v53  ;;  %v1201_v25 = vmul.f32 %v1198_v30, %v2847_v61 }
 0x2cc   : > { %v1297_v48 = vadd.f32 %v1292_v17, %v1276_v54 }
 0x2d1   : > { %v1270_v24 = vpop.permute.xlu0 %1269 }
 0x2d2   : > { %v1310_v23 = vpop.permute.xlu1 %1309  ;;  %v3452_v37 = vpop.permute.xlu2 %1332 }
 0x2d3   : > { %v1315_v12 = vsel %vm423_vm6, %v1310_v23, %v3450_v34  ;;  %v1211_v23 = vadd.f32 %v1208_v22, %v1201_v25 }
 0x2d4   : > { %v1320_v31 = vadd.f32 %v1315_v12, %v1297_v48  ;;  %v1249_v48 = vsel %vm341_vm4, %v1245_v13, %v1247_v5 }
 0x2d9   : > { %v3454_v11 = vpop.permute.xlu0 %1290 }
 0x2da   : > { %v1331_v20 = vpop.permute.xlu1 %1330  ;;  %v3456_v59 = vpop.permute.xlu2 %1355 }
 0x2db   : > { %v1336_v28 = vsel %vm423_vm6, %v1331_v20, %v3452_v37  ;;  %v1228_v20 = vsel %vm341_vm4, %v1224_v36, %v1226_v51 }
 0x2dc   : > { %v1341_v0 = vadd.f32 %v1336_v28, %v1320_v31  ;;  %v1233_v31 = vadd.f32 %v1228_v20, %v1210_v18 }
 0x2de   : > { %v1254_v36 = vadd.f32 %v1249_v48, %v1233_v31 }
 0x2e1   : > { %v3458_v29 = vpop.permute.xlu0 %1313 }
 0x2e2   : > { %v1354_v49 = vpop.permute.xlu1 %1353  ;;  %v3460_v39 = vpop.permute.xlu2 %1376 }
 0x2e3   : > { %v1359_v41 = vsel %vm464_vm7, %v1354_v49, %v3456_v59  ;;  %v1234_v49 = vadd.f32 %v1226_v51, %v1211_v23  ;;  %v1293_v51 = vsel %vm382_vm5, %v3448_v53, %v3454_v11 }
 0x2e4   : > { %v1364_v7 = vadd.f32 %v1359_v41, %v1341_v0 }
 0x2e5   : > { %v1255_v26 = vadd.f32 %v1247_v5, %v1234_v49  ;;  %v1518_v49 = vstv %s2612_s28  ;;  %s2771_s28 = smov 124  }
 0x2e6   : > { %v1519_v31 = vmul.f32 %v1518_v49, %v2837_v55 }
 0x2e7   : > { %v1278_v58 = vadd.f32 %v1270_v24, %v1255_v26 }
 0x2e9   : > { %v3462_v35 = vpop.permute.xlu0 %1334  ;;  %v1299_v0 = vadd.f32 %v3454_v11, %v1278_v58 }
 0x2ea   : > { %v1375_v46 = vpop.permute.xlu1 %1374  ;;  %v3464_v6 = vpop.permute.xlu2 %1399  ;;  %v1337_v53 = vsel %vm423_vm6, %v3452_v37, %v3462_v35 }
 0x2eb   : > { %v1380_v54 = vsel %vm464_vm7, %v1375_v46, %v3460_v39  ;;  %v1272_v46 = vsel %vm382_vm5, %v3446_v10, %v1270_v24  ;;  %v1322_v24 = vadd.f32 %v3458_v29, %v1299_v0 }
 0x2ec   : > { %v1385_v28 = vadd.f32 %v1380_v54, %v1364_v7  ;;  %v1277_v13 = vadd.f32 %v1272_v46, %v1254_v36 }
 0x2ed   : > { %v1343_v11 = vadd.f32 %v3462_v35, %v1322_v24  ;;  %v1627_v24 = vstv %s2617_s14  ;;  %s2632_s14 = sld [smem:[#allocation4 + $0x21]] }
 0x2ee   : > { %v1298_v54 = vadd.f32 %v1293_v51, %v1277_v13  ;;  %v1562_v51 = vstv %s2614_s5  ;;  %s2629_s5 = sld [smem:[#allocation4 + $0x44]] }
 0x2ef   : > { %v1563_v13 = vmul.f32 %v1562_v51, %v2837_v55 }
 0x2f1   : > { %v3467_v38 = vpop.permute.xlu0 %1357 }
 0x2f2   : > { %v1398_v27 = vpop.permute.xlu1 %1397  ;;  %v3472_v4 = vpop.permute.xlu2 %1420 }
 0x2f3   : > { %v1403_v1 = vsel %vm505_vm8, %v1398_v27, %v3464_v6 }
 0x2f4   : > { %v1408_v22 = vadd.f32 %v1403_v1, %v1385_v28 }
 0x2f9   : > { %v1379_v56 = vpop.permute.xlu0 %1378 }
 0x2fa   : > { %v1419_v47 = vpop.permute.xlu1 %1418  ;;  %v1444_v32 = vpop.permute.xlu2 %1443 }
 0x2fb   : > { %v1424_v30 = vsel %vm505_vm8, %v1419_v47, %v3472_v4  ;;  %v1316_v47 = vsel %vm423_vm6, %v3450_v34, %v3458_v29  ;;  %v1360_v34 = vsel %vm464_vm7, %v3456_v59, %v3467_v38  ;;  %v1381_v29 = vsel %vm464_vm7, %v3460_v39, %v1379_v56 }
 0x2fc   : > { %v1429_v27 = vadd.f32 %v1424_v30, %v1408_v22  ;;  %v1321_v20 = vadd.f32 %v1316_v47, %v1298_v54  ;;  %v1564_v54 = vmul.f32 %v1562_v51, %v2844_v60 }
 0x2fe   : > { %v1342_v7 = vadd.f32 %v1337_v53, %v1321_v20  ;;  %v1628_v20 = vmul.f32 %v1627_v24, %v2917_v40 }
 0x300   : > { %v1365_v18 = vadd.f32 %v1360_v34, %v1342_v7 }
 0x301   : > { %v1402_v17 = vpop.permute.xlu0 %1401 }
 0x302   : > { %v1442_v12 = vpop.permute.xlu1 %1441  ;;  %v1465_v5 = vpop.permute.xlu2 %1464  ;;  %v1404_v35 = vsel %vm505_vm8, %v3464_v6, %v1402_v17  ;;  %v1386_v48 = vadd.f32 %v1381_v29, %v1365_v18  ;;  %v1671_v29 = vstv %s2619_s16  ;;  %v1630_v18 = vmul.f32 %v1627_v24, %v2926_v45  ;;  %s2634_s16 = sld [smem:[#allocation4 + $0x28]] }
 0x303   : > { %v1447_v41 = vsel %vm546_vm9, %v1442_v12, %v1444_v32  ;;  %v1366_v12 = vadd.f32 %v3467_v38, %v1343_v11  ;;  %v1650_v11 = vstv %s2618_s15  ;;  %s2633_s15 = sld [smem:[#allocation4 + $0x52]] }
 0x304   : > { %v1452_v10 = vadd.f32 %v1447_v41, %v1429_v27  ;;  %v1409_v30 = vadd.f32 %v1404_v35, %v1386_v48  ;;  %v1539_v41 = vstv %s2613_s3  ;;  %v1520_v27 = vmul.f32 %v1518_v49, %v2844_v60  ;;  %s2628_s3 = sld [smem:[#allocation4 + $0x13]] }
 0x305   : > { %v1387_v37 = vadd.f32 %v1379_v56, %v1366_v12  ;;  %v1542_v0 = vmul.f32 %v1539_v41, %v2926_v45  ;;  %v1541_v47 = vmul.f32 %v1539_v41, %v2938_v52  ;;  %v1651_v12 = vmul.f32 %v1650_v11, %v2837_v55 }
 0x306   : > { %v1694_v35 = vstv %s2620_s18  ;;  %v316_v48 = vstv %s3560_s19  ;;  %s2640_s18 = sld [smem:[#allocation4 + $0xd]] }
 0x307   : > { %v1410_v28 = vadd.f32 %v1402_v17, %v1387_v37  ;;  %v321_v37 = vstv %s3558_s17  ;;  %s2635_s17 = sld [smem:[#allocation4 + $0x59]] }
 0x308   : > { %s2641_s19 = sld [smem:[#allocation4 + $0x3e]] }
 0x309   : > { %v1423_v25 = vpop.permute.xlu0 %1422 }
 0x30a   : > { %v1463_v43 = vpop.permute.xlu1 %1462  ;;  %v1425_v59 = vsel %vm505_vm8, %v3472_v4, %v1423_v25  ;;  %v1431_v38 = vadd.f32 %v1423_v25, %v1410_v28  ;;  %v1540_v4 = vmul.f32 %v1539_v41, %v2917_v40  ;;  %v1583_v25 = vstv %s2615_s7  ;;  %s2630_s7 = sld [smem:[#allocation4 + $0x1a]] }
 0x30b   : > { %v1468_v26 = vsel %vm546_vm9, %v1463_v43, %v1465_v5  ;;  %v1430_v39 = vadd.f32 %v1425_v59, %v1409_v30  ;;  %v1565_v43 = vmul.f32 %v1562_v51, %v2847_v61  ;;  %v1586_v53 = vmul.f32 %v1583_v25, %v2926_v45 }
 0x30c   : > { %v1473_v23 = vadd.f32 %v1468_v26, %v1452_v10  ;;  %v1584_v10 = vmul.f32 %v1583_v25, %v2917_v40  ;;  %v1653_v28 = vmul.f32 %v1650_v11, %v2847_v61  ;;  %v322_v59 = vmul.f32 %v321_v37, %v2917_v40 }
 0x30d   : > { %v1695_v30 = vmul.f32 %v1694_v35, %v2837_v55  ;;  %v1674_v41 = vmul.f32 %v1671_v29, %v2926_v45  ;;  %v323_v51 = vmul.f32 %v321_v37, %v2938_v52 }
 0x30e   : > { %1485 = vrot.lane.b32.xlu1 %v1473_v23, %s2770_s29  ;;  %v1585_v23 = vmul.f32 %v1583_v25, %v2938_v52  ;;  %v318_v25 = vmul.f32 %v316_v48, %v2844_v60 }
 0x311   : > { %v1446_v1 = vpop.permute.xlu0 %1445 }
 0x312   : > { %v1448_v46 = vsel %vm546_vm9, %v1444_v32, %v1446_v1  ;;  %v1454_v22 = vadd.f32 %v1446_v1, %v1431_v38  ;;  %v1521_v32 = vmul.f32 %v1518_v49, %v2847_v61  ;;  %v1629_v1 = vmul.f32 %v1627_v24, %v2938_v52  ;;  %v4056_v24 = vld [vmem:[#allocation20_spill] sm:$0xff] }
 0x313   : > { %v1453_v36 = vadd.f32 %v1448_v46, %v1430_v39  ;;  %v1672_v49 = vmul.f32 %v1671_v29, %v2917_v40  ;;  %v317_v38 = vmul.f32 %v316_v48, %v2837_v55  ;;  %v342_v46 = vsel %vm341_vm4, %v2935_v50, %v2946_v57  ;;  %v4062_v48 = vld [vmem:[#allocation12_spill] sm:$0xff] }
 0x314   : > { %v383_v50 = vsel %vm382_vm5, %v2962_v8, %v2954_v2  ;;  %v424_v8 = vsel %vm423_vm6, %v2972_v14, %v2964_v9  ;;  %v362_v14 = vsel %vm341_vm4, %v3072_v33, %v3094_v63 }
 0x315   : > { %v324_v39 = vadd.f32 %v322_v59, %v317_v38  ;;  %v4064_v59 = vld [vmem:[#allocation24_spill] sm:$0xff] }
 0x316   : > { %1525 = vrot.lane.b32.xlu1 %v1519_v31, %s2763_s27  ;;  %v1652_v31 = vmul.f32 %v1650_v11, %v2844_v60 }
 0x319   : > { %v1467_v56 = vpop.permute.xlu0 %1466 }
 0x31a   : > { %v1469_v6 = vsel %vm546_vm9, %v1465_v5, %v1467_v56  ;;  %v1475_v17 = vadd.f32 %v1467_v56, %v1454_v22  ;;  %v1606_v5 = vstv %s2616_s12  ;;  %v361_v22 = vsel %vm341_vm4, %v3080_v42, %v3072_v33  ;;  %v4058_v33 = vld [vmem:[#allocation10_spill] sm:$0xff]  ;;  %s2631_s12 = sld [smem:[#allocation4 + $0x4b]] }
 0x31b   : > { %v1474_v58 = vadd.f32 %v1469_v6, %v1453_v36  ;;  %v1607_v26 = vmul.f32 %v1606_v5, %v2837_v55  ;;  %v1609_v34 = vmul.f32 %v1606_v5, %v2847_v61  ;;  %v1608_v7 = vmul.f32 %v1606_v5, %v2844_v60 }
 0x31c   : > { %1489 = vrot.lane.b32.xlu0 %v1475_v17, %s2770_s29  ;;  %v346_v36 = vadd.f32 %v342_v46, %v324_v39  ;;  %v1715_v56 = vstv %s2621_s20  ;;  %v1673_v17 = vmul.f32 %v1671_v29, %v2938_v52  ;;  %v402_v42 = vsel %vm382_vm5, %v3092_v62, %v3084_v44  ;;  %v4066_v46 = vld [vmem:[#allocation22_spill] sm:$0xff]  ;;  %s2642_s20 = sld [smem:[#allocation4 + $0x14]] }
 0x31d   : > { %1487 = vrot.lane.b32.xlu2 %v1474_v58, %s2770_s29  ;;  %v1716_v58 = vmul.f32 %v1715_v56, %v2917_v40  ;;  %v343_v62 = vsel %vm341_vm4, %v2946_v57, %v2974_v15  ;;  %v325_v5 = vadd.f32 %v323_v51, %v318_v25  ;;  %v384_v63 = vsel %vm382_vm5, %v2954_v2, %v4058_v33  ;;  %v4077_v33 = vld [vmem:[#allocation17_spill] sm:$0xff]  ;;  %s2627_s29 = sld [smem:[#allocation4 + $0x3d]] }
 0x31e   : > { %1546 = vrot.lane.b32.xlu1 %v1540_v4, %s2763_s27  ;;  %v365_v6 = vadd.f32 %v361_v22, %v346_v36  ;;  %v444_v39 = vsel %vm423_vm6, %v3096_v3, %v4066_v46 }
 0x320   : > { %v387_v4 = vadd.f32 %v383_v50, %v365_v6  ;;  %v4068_v50 = vld [vmem:[#allocation15_spill] sm:$0xff] }
 0x324   : > { %1529 = vrot.lane.b32.xlu0 %v1521_v32, %s2763_s27  ;;  %v406_v32 = vadd.f32 %v402_v42, %v387_v4  ;;  %v4069_v42 = vld [vmem:[#allocation26_spill] sm:$0xff]  ;;  %v4070_v4 = vld [vmem:[#allocation27_spill] sm:$0xff] }
 0x325   : > { %1527 = vrot.lane.b32.xlu2 %v1520_v27, %s2763_s27  ;;  %v1738_v27 = vstv %s2622_s21  ;;  %v566_v51 = vsel %vm546_vm9, %v4070_v4, %v4069_v42  ;;  %s2625_s21 = sld [smem:[#allocation4 + $0x36]] }
 0x326   : > { %1569 = vrot.lane.b32.xlu1 %v1563_v13, %s2762_s26  ;;  %v1697_v13 = vmul.f32 %v1694_v35, %v2847_v61  ;;  %v1741_v36 = vmul.f32 %v1738_v27, %v2847_v61  ;;  %v1740_v6 = vmul.f32 %v1738_v27, %v2844_v60 }
 0x32c   : > { %1550 = vrot.lane.b32.xlu0 %v1542_v0, %s2763_s27  ;;  %v1696_v0 = vmul.f32 %v1694_v35, %v2844_v60  ;;  %v4061_v35 = vld [vmem:[#allocation11_spill] sm:$0xff] }
 0x32d   : > { %1548 = vrot.lane.b32.xlu2 %v1541_v47, %s2763_s27  ;;  %v443_v47 = vsel %vm423_vm6, %v3104_v19, %v3096_v3  ;;  %v465_v19 = vsel %vm464_vm7, %v2984_v21, %v2976_v16  ;;  %v506_v2 = vsel %vm505_vm8, %v4062_v48, %v4061_v35 }
 0x32e   : > { %1590 = vrot.lane.b32.xlu1 %v1584_v10, %s2762_s26  ;;  %v1739_v10 = vmul.f32 %v1738_v27, %v2837_v55 }
 0x334   : > { %1573 = vrot.lane.b32.xlu0 %v1565_v43, %s2762_s26  ;;  %v428_v43 = vadd.f32 %v424_v8, %v406_v32 }
 0x335   : > { %1571 = vrot.lane.b32.xlu2 %v1564_v54, %s2762_s26  ;;  %v347_v54 = vadd.f32 %v343_v62, %v325_v5  ;;  %v4072_v62 = vld [vmem:[#allocation25_spill] sm:$0xff]  ;;  %v4074_v5 = vld [vmem:[#allocation31_spill] sm:$0xff] }
 0x336   : > { %1613 = vrot.lane.b32.xlu1 %v1607_v26, %s2764_s30  ;;  %v447_v57 = vadd.f32 %v443_v47, %v428_v43  ;;  %v1759_v26 = vstv %s2623_s22  ;;  %v485_v47 = vsel %vm464_vm7, %v4056_v24, %v4072_v62  ;;  %s2624_s22 = sld [smem:[#allocation4 + $0x5]] }
 0x337   : > { %v366_v15 = vadd.f32 %v362_v14, %v347_v54  ;;  %v1760_v21 = vmul.f32 %v1759_v26, %v2917_v40 }
 0x338   : > { %v469_v11 = vadd.f32 %v465_v19, %v447_v57  ;;  %v4075_v57 = vld [vmem:[#allocation32_spill] sm:$0xff] }
 0x339   : > { %v388_v29 = vadd.f32 %v384_v63, %v366_v15  ;;  %v4076_v15 = vld [vmem:[#allocation33_spill] sm:$0xff]  ;;  %v507_v63 = vsel %vm505_vm8, %v4061_v35, %v4077_v33  ;;  %v1502_v35 = vstv %s2610_s24  ;;  %s2644_s24 = sld [smem:[#allocation4 + $0x1b]] }
 0x33a   : > { %v1188_v19 = vsel %vm1187_vm11, %v4076_v15, %v4075_v57  ;;  %v1505_v15 = vmul.f32 %v1502_v35, %v2847_v61 }
 0x33c   : > { %1594 = vrot.lane.b32.xlu0 %v1586_v53, %s2762_s26  ;;  %v4057_v53 = vld [vmem:[#allocation21_spill] sm:$0xff] }
 0x33d   : > { %1592 = vrot.lane.b32.xlu2 %v1585_v23, %s2762_s26  ;;  %v484_v23 = vsel %vm464_vm7, %v4057_v53, %v4056_v24  ;;  %v1761_v24 = vmul.f32 %v1759_v26, %v2938_v52 }
 0x33e   : > { %1634 = vrot.lane.b32.xlu1 %v1628_v20, %s2764_s30  ;;  %v1718_v20 = vmul.f32 %v1715_v56, %v2926_v45 }
 0x344   : > { %1617 = vrot.lane.b32.xlu0 %v1609_v34, %s2764_s30  ;;  %v1717_v34 = vmul.f32 %v1715_v56, %v2938_v52 }
 0x345   : > { %1615 = vrot.lane.b32.xlu2 %v1608_v7, %s2764_s30  ;;  %v4059_v7 = vld [vmem:[#allocation19_spill] sm:$0xff] }
 0x346   : > { %1657 = vrot.lane.b32.xlu1 %v1651_v12, %s2765_s4  ;;  %v403_v12 = vsel %vm382_vm5, %v3084_v44, %v4059_v7  ;;  %v4078_v7 = vld [vmem:[#allocation28_spill] sm:$0xff] }
 0x347   : > { %v407_v37 = vadd.f32 %v403_v12, %v388_v29 }
 0x34c   : > { %1638 = vrot.lane.b32.xlu0 %v1630_v18, %s2764_s30  ;;  %v488_v18 = vadd.f32 %v484_v23, %v469_v11 }
 0x34d   : > { %1636 = vrot.lane.b32.xlu2 %v1629_v1, %s2764_s30  ;;  %v4060_v1 = vlaneseq }
 0x34e   : > { %1678 = vrot.lane.b32.xlu1 %v1672_v49, %s2765_s4 }
 0x34f   : > { %v288_v49 = vand.u32 127, %v4060_v1 }
 0x351   : > { %v3647_v22 = vand.u32 15, %v288_v49 }
 0x353   : > { %v572_v32 = vadd.s32 4294967293, %v3647_v22  ;;  %v1170_v27 = vadd.s32 4294967295, %v3647_v22 }
 0x354   : > { %1661 = vrot.lane.b32.xlu0 %v1653_v28, %s2765_s4  ;;  %v4063_v28 = vld [vmem:[#allocation23_spill] sm:$0xff] }
 0x355   : > { %1659 = vrot.lane.b32.xlu2 %v1652_v31, %s2765_s4  ;;  %v525_v44 = vsel %vm505_vm8, %v4064_v59, %v4063_v28  ;;  %v510_v31 = vadd.f32 %v506_v2, %v488_v18  ;;  %vm574_vm13 = vcmp.ge.s32.totalorder %v572_v32, 0  ;;  %vm1172_vm14 = vcmp.ge.s32.totalorder %v1170_v27, 0 }
 0x356   : > { %1701 = vrot.lane.b32.xlu1 %v1695_v30, %s2766_s6  ;;  %v4065_v30 = vld [vmem:[#allocation13_spill] sm:$0xff]  ;;  %v526_v12 = vsel %vm505_vm8, %v4063_v28, %v4078_v7  ;;  %v4079_v28 = vld [vmem:[#allocation18_spill] sm:$0xff] }
 0x357   : > { %v425_v38 = vsel %vm423_vm6, %v2964_v9, %v4065_v30  ;;  %v4067_v9 = vld [vmem:[#allocation14_spill] sm:$0xff] }
 0x358   : > { %v429_v56 = vadd.f32 %v425_v38, %v407_v37  ;;  %v547_v3 = vsel %vm546_vm9, %v4068_v50, %v4067_v9  ;;  %v1509_v37 = vstv %s2611_s23  ;;  %v548_v30 = vsel %vm546_vm9, %v4067_v9, %v4079_v28  ;;  %v4080_v38 = vld [vmem:[#allocation29_spill] sm:$0xff]  ;;  %v4082_v9 = vld [vmem:[#allocation35_spill] sm:$0xff]  ;;  %s2643_s23 = sld [smem:[#allocation4 + $0x45]] }
 0x359   : > { %v567_v46 = vsel %vm546_vm9, %v4069_v42, %v4080_v38 }
 0x35c   : > { %1682 = vrot.lane.b32.xlu0 %v1674_v41, %s2765_s4  ;;  %v529_v41 = vadd.f32 %v525_v44, %v510_v31  ;;  %v1510_v31 = vmul.f32 %v1509_v37, %v2917_v40 }
 0x35d   : > { %1680 = vrot.lane.b32.xlu2 %v1673_v17, %s2765_s4  ;;  %v864_v17 = vadd.s32 4294967294, %v3647_v22 }
 0x35e   : > { %1722 = vrot.lane.b32.xlu1 %v1716_v58, %s2766_s6  ;;  %v448_v58 = vadd.f32 %v444_v39, %v429_v56 }
 0x35f   : > { %vm866_vm12 = vcmp.ge.s32.totalorder %v864_v17, 0  ;;  %v1503_v17 = vmul.f32 %v1502_v35, %v2837_v55 }
 0x361   : > { %v1513_v42 = vadd.f32 %v1510_v31, %v1503_v17 }
 0x364   : > { %1705 = vrot.lane.b32.xlu0 %v1697_v13, %s2766_s6  ;;  %v551_v13 = vadd.f32 %v547_v3, %v529_v41  ;;  %v4081_v41 = vld [vmem:[#allocation34_spill] sm:$0xff]  ;;  %v1189_v3 = vsel %vm1187_vm11, %v4075_v57, %v4082_v9  ;;  %v1511_v57 = vmul.f32 %v1509_v37, %v2938_v52 }
 0x365   : > { %1703 = vrot.lane.b32.xlu2 %v1696_v0, %s2766_s6  ;;  %v4071_v0 = vld [vmem:[#allocation16_spill] sm:$0xff] }
 0x366   : > { %1745 = vrot.lane.b32.xlu1 %v1739_v10, %s2767_s8  ;;  %v466_v8 = vsel %vm464_vm7, %v2976_v16, %v4071_v0  ;;  %v4073_v10 = vld [vmem:[#allocation30_spill] sm:$0xff]  ;;  %v570_v54 = vadd.f32 %v566_v51, %v551_v13  ;;  %v1762_v16 = vmul.f32 %v1759_v26, %v2926_v45 }
 0x367   : > { %v882_v43 = vsel %vm881_vm10, %v4074_v5, %v4073_v10  ;;  %v470_v14 = vadd.f32 %v466_v8, %v448_v58 }
 0x368   : > { %v886_v23 = vsel %vm866_vm12, %v882_v43, 0.0  ;;  %v580_v11 = vsel %vm574_vm13, %v570_v54, 0.0  ;;  %v1512_v54 = vmul.f32 %v1509_v37, %v2926_v45 }
 0x369   : > { %v489_v53 = vadd.f32 %v485_v47, %v470_v14 }
 0x36b   : > { %v511_v29 = vadd.f32 %v507_v63, %v489_v53 }
 0x36c   : > { %1726 = vrot.lane.b32.xlu0 %v1718_v20, %s2766_s6  ;;  %v289_v20 = vadd.s32 128, %v288_v49 }
 0x36d   : > { %1724 = vrot.lane.b32.xlu2 %v1717_v34, %s2766_s6  ;;  %v1192_v34 = vsel %vm1172_vm14, %v1188_v19, 0.0  ;;  %v530_v48 = vadd.f32 %v526_v12, %v511_v29  ;;  %v1504_v19 = vmul.f32 %v1502_v35, %v2844_v60 }
 0x36e   : > { %1766 = vrot.lane.b32.xlu1 %v1760_v21, %s2767_s8  ;;  %v888_v21 = vadd.f32 %v886_v23, %v580_v11  ;;  %v3684_v18 = vand.u32 15, %v289_v20 }
 0x36f   : > { %v552_v56 = vadd.f32 %v548_v30, %v530_v48  ;;  %v1514_v23 = vadd.f32 %v1511_v57, %v1504_v19 }
 0x370   : > { %v1194_v1 = vadd.f32 %v1192_v34, %v888_v21  ;;  %v865_v59 = vadd.s32 4294967294, %v3684_v18  ;;  %v573_v39 = vadd.s32 4294967293, %v3684_v18 }
 0x371   : > { %v571_v58 = vadd.f32 %v567_v46, %v552_v56 }
 0x372   : > { %vm867_vm1 = vcmp.ge.s32.totalorder %v865_v59, 0  ;;  %vm575_vm3 = vcmp.ge.s32.totalorder %v573_v39, 0 }
 0x373   : > { %v581_v13 = vsel %vm575_vm3, %v571_v58, 0.0 }
 0x374   : > { %1749 = vrot.lane.b32.xlu0 %v1741_v36, %s2767_s8  ;;  %v1171_v36 = vadd.s32 4294967295, %v3684_v18 }
 0x375   : > { %1747 = vrot.lane.b32.xlu2 %v1740_v6, %s2767_s8  ;;  %v883_v6 = vsel %vm881_vm10, %v4073_v10, %v4081_v41  ;;  %vm1797_vm10 = vcmask 1014784  }
 0x376   : > { %vm1173_vm12 = vcmp.ge.s32.totalorder %v1171_v36, 0  ;;  %v887_v51 = vsel %vm867_vm1, %v883_v6, 0.0 }
 0x377   : > { %v1488_v25 = vpop.permute.xlu2 %1487  ;;  %v1193_v0 = vsel %vm1173_vm12, %v1189_v3, 0.0  ;;  %v889_v8 = vadd.f32 %v887_v51, %v581_v13 }
 0x379   : > { %v1195_v62 = vadd.f32 %v1193_v0, %v889_v8 }
 0x37c   : > { %1770 = vrot.lane.b32.xlu0 %v1762_v16, %s2767_s8  ;;  %v1515_v16 = vadd.f32 %v1512_v54, %v1505_v15 }
 0x37d   : > { %1768 = vrot.lane.b32.xlu2 %v1761_v24, %s2767_s8 }
 0x37f   : > { %v1528_v26 = vpop.permute.xlu2 %1527 }
 0x380   : > { %v1486_v49 = vpop.permute.xlu1 %1485 }
 0x381   : > { %v1492_v2 = vsel %vm1491_vm15, %v1486_v49, %v1488_v25 }
 0x382   : > { %v3688_v44 = vadd.f32 %v1492_v2, %v1194_v1 }
 0x387   : > { %v1549_v50 = vpop.permute.xlu2 %1548 }
 0x388   : > { %v1526_v4 = vpop.permute.xlu1 %1525 }
 0x389   : > { %v1531_v32 = vsel %vm341_vm4, %v1526_v4, %v1528_v26 }
 0x38a   : > { %v1536_v27 = vadd.f32 %v1531_v32, %v1513_v42 }
 0x38e   : > { %v1490_v47 = vpop.permute.xlu0 %1489 }
 0x38f   : > { %v1493_v10 = vsel %vm1491_vm15, %v1488_v25, %v1490_v47  ;;  %v1572_v5 = vpop.permute.xlu2 %1571 }
 0x390   : > { %v3708_v43 = vadd.f32 %v1493_v10, %v1195_v62  ;;  %v1547_v14 = vpop.permute.xlu1 %1546 }
 0x391   : > { %v1552_v56 = vsel %vm341_vm4, %v1547_v14, %v1549_v50 }
 0x392   : > { %v1557_v17 = vadd.f32 %v1552_v56, %v1536_v27 }
 0x396   : > { %v1530_v53 = vpop.permute.xlu0 %1529 }
 0x397   : > { %v1532_v24 = vsel %vm341_vm4, %v1528_v26, %v1530_v53  ;;  %v1538_v20 = vadd.f32 %v1530_v53, %v1515_v16  ;;  %v1593_v11 = vpop.permute.xlu2 %1592 }
 0x398   : > { %v1537_v25 = vadd.f32 %v1532_v24, %v1514_v23  ;;  %v1570_v34 = vpop.permute.xlu1 %1569 }
 0x399   : > { %v1575_v6 = vsel %vm382_vm5, %v1570_v34, %v1572_v5 }
 0x39a   : > { %v1580_v3 = vadd.f32 %v1575_v6, %v1557_v17  ;;  %v1824_v6 = vstv %s2626_s25  ;;  %s2646_s25 = sld [smem:[#allocation4 + $0x22]] }
 0x39e   : > { %v1551_v33 = vpop.permute.xlu0 %1550 }
 0x39f   : > { %v1553_v63 = vsel %vm341_vm4, %v1549_v50, %v1551_v33  ;;  %v1616_v7 = vpop.permute.xlu2 %1615  ;;  %v1559_v54 = vadd.f32 %v1551_v33, %v1538_v20 }
 0x3a0   : > { %v1558_v12 = vadd.f32 %v1553_v63, %v1537_v25  ;;  %v1591_v21 = vpop.permute.xlu1 %1590 }
 0x3a1   : > { %v1596_v9 = vsel %vm382_vm5, %v1591_v21, %v1593_v11 }
 0x3a2   : > { %v1601_v51 = vadd.f32 %v1596_v9, %v1580_v3 }
 0x3a6   : > { %v1574_v29 = vpop.permute.xlu0 %1573 }
 0x3a7   : > { %v1576_v1 = vsel %vm382_vm5, %v1572_v5, %v1574_v29  ;;  %v1637_v49 = vpop.permute.xlu2 %1636  ;;  %v1582_v19 = vadd.f32 %v1574_v29, %v1559_v54  ;;  %v1912_v54 = vstv %s2630_s7  ;;  %s2773_s7 = smov 122  }
 0x3a8   : > { %v1581_v37 = vadd.f32 %v1576_v1, %v1558_v12  ;;  %v1614_v48 = vpop.permute.xlu1 %1613 }
 0x3a9   : > { %v1619_v4 = vsel %vm423_vm6, %v1614_v48, %v1616_v7 }
 0x3aa   : > { %v1624_v13 = vadd.f32 %v1619_v4, %v1601_v51 }
 0x3ae   : > { %v1595_v2 = vpop.permute.xlu0 %1594 }
 0x3af   : > { %v1660_v59 = vpop.permute.xlu2 %1659  ;;  %v1597_v16 = vsel %vm382_vm5, %v1593_v11, %v1595_v2  ;;  %v1603_v25 = vadd.f32 %v1595_v2, %v1582_v19 }
 0x3b0   : > { %v1635_v35 = vpop.permute.xlu1 %1634  ;;  %v1602_v63 = vadd.f32 %v1597_v16, %v1581_v37  ;;  %v1933_v16 = vstv %s2631_s12  ;;  %s2554_s12 = sshll.u32 %s4091_s9, 1 }
 0x3b1   : > { %v1640_v32 = vsel %vm423_vm6, %v1635_v35, %v1637_v49 }
 0x3b2   : > { %v1645_v8 = vadd.f32 %v1640_v32, %v1624_v13  ;;  %v1845_v32 = vstv %s2627_s29  ;;  %s2649_s29 = sld [smem:[#allocation4 + $0x5a]] }
 0x3b6   : > { %v1618_v26 = vpop.permute.xlu0 %1617 }
 0x3b7   : > { %v1681_v31 = vpop.permute.xlu2 %1680  ;;  %v1620_v34 = vsel %vm423_vm6, %v1616_v7, %v1618_v26  ;;  %v1626_v48 = vadd.f32 %v1618_v26, %v1603_v25  ;;  %v1956_v25 = vstv %s2632_s14 }
 0x3b8   : > { %v1658_v28 = vpop.permute.xlu1 %1657  ;;  %v1625_v29 = vadd.f32 %v1620_v34, %v1602_v63  ;;  %v1914_v34 = vmul.f32 %v1912_v54, %v2844_v60  ;;  %v1957_v63 = vmul.f32 %v1956_v25, %v2837_v55 }
 0x3b9   : > { %v1663_v0 = vsel %vm464_vm7, %v1658_v28, %v1660_v59 }
 0x3ba   : > { %v1668_v10 = vadd.f32 %v1663_v0, %v1645_v8  ;;  %v1827_v0 = vmul.f32 %v1824_v6, %v2847_v61  ;;  %v1868_v8 = vstv %s2628_s3  ;;  %s2651_s3 = sld [smem:[#allocation4 + $0x61]] }
 0x3be   : > { %v1639_v30 = vpop.permute.xlu0 %1638 }
 0x3bf   : > { %v1704_v46 = vpop.permute.xlu2 %1703  ;;  %v1641_v20 = vsel %vm423_vm6, %v1637_v49, %v1639_v30  ;;  %v1647_v11 = vadd.f32 %v1639_v30, %v1626_v48 }
 0x3c0   : > { %v1679_v38 = vpop.permute.xlu1 %1678 }
 0x3c1   : > { %v1684_v47 = vsel %vm464_vm7, %v1679_v38, %v1681_v31  ;;  %v1646_v38 = vadd.f32 %v1641_v20, %v1625_v29  ;;  %v1959_v20 = vmul.f32 %v1956_v25, %v2847_v61  ;;  %v1958_v29 = vmul.f32 %v1956_v25, %v2844_v60 }
 0x3c2   : > { %v1689_v14 = vadd.f32 %v1684_v47, %v1668_v10  ;;  %v1848_v47 = vmul.f32 %v1845_v32, %v2926_v45  ;;  %v1889_v10 = vstv %s2629_s5  ;;  %s2638_s5 = sld [smem:[#allocation4 + $0x6]] }
 0x3c3   : > { %v1892_v19 = vmul.f32 %v1889_v10, %v2926_v45 }
 0x3c6   : > { %v1662_v39 = vpop.permute.xlu0 %1661 }
 0x3c7   : > { %v1725_v41 = vpop.permute.xlu2 %1724  ;;  %v1664_v28 = vsel %vm464_vm7, %v1660_v59, %v1662_v39  ;;  %v1670_v2 = vadd.f32 %v1662_v39, %v1647_v11  ;;  %v1825_v59 = vmul.f32 %v1824_v6, %v2837_v55 }
 0x3c8   : > { %v1702_v36 = vpop.permute.xlu1 %1701  ;;  %v1669_v37 = vadd.f32 %v1664_v28, %v1646_v38  ;;  %v2021_v28 = vstv %s2635_s17 }
 0x3c9   : > { %v1707_v5 = vsel %vm505_vm8, %v1702_v36, %v1704_v46 }
 0x3ca   : > { %v1712_v15 = vadd.f32 %v1707_v5, %v1689_v14  ;;  %v1890_v5 = vmul.f32 %v1889_v10, %v2917_v40  ;;  %v1871_v14 = vmul.f32 %v1868_v8, %v2847_v61 }
 0x3ce   : > { %v1683_v58 = vpop.permute.xlu0 %1682 }
 0x3cf   : > { %v1748_v62 = vpop.permute.xlu2 %1747  ;;  %v1685_v7 = vsel %vm464_vm7, %v1681_v31, %v1683_v58  ;;  %v1691_v56 = vadd.f32 %v1683_v58, %v1670_v2  ;;  %v2022_v2 = vmul.f32 %v2021_v28, %v2917_v40 }
 0x3d0   : > { %v1723_v42 = vpop.permute.xlu1 %1722  ;;  %v1690_v49 = vadd.f32 %v1685_v7, %v1669_v37 }
 0x3d1   : > { %v1728_v57 = vsel %vm505_vm8, %v1723_v42, %v1725_v41 }
 0x3d2   : > { %v1733_v23 = vadd.f32 %v1728_v57, %v1712_v15  ;;  %v1870_v57 = vmul.f32 %v1868_v8, %v2844_v60  ;;  %v1913_v15 = vmul.f32 %v1912_v54, %v2837_v55 }
 0x3d6   : > { %v1706_v50 = vpop.permute.xlu0 %1705 }
 0x3d7   : > { %v1769_v12 = vpop.permute.xlu2 %1768  ;;  %v1708_v26 = vsel %vm505_vm8, %v1704_v46, %v1706_v50  ;;  %v1714_v17 = vadd.f32 %v1706_v50, %v1691_v56  ;;  %v1869_v50 = vmul.f32 %v1868_v8, %v2837_v55 }
 0x3d8   : > { %v1746_v27 = vpop.permute.xlu1 %1745  ;;  %v1713_v30 = vadd.f32 %v1708_v26, %v1690_v49  ;;  %v2024_v26 = vmul.f32 %v2021_v28, %v2926_v45  ;;  %v2130_v49 = vstv %s2640_s18 }
 0x3d9   : > { %v1751_v53 = vsel %vm546_vm9, %v1746_v27, %v1748_v62  ;;  %v1847_v27 = vmul.f32 %v1845_v32, %v2938_v52 }
 0x3da   : > { %v1756_v21 = vadd.f32 %v1751_v53, %v1733_v23  ;;  %v1891_v53 = vmul.f32 %v1889_v10, %v2938_v52  ;;  %v1934_v23 = vmul.f32 %v1933_v16, %v2917_v40  ;;  %v1808_v10 = vstv %s2624_s22 }
 0x3de   : > { %v1727_v24 = vpop.permute.xlu0 %1726 }
 0x3df   : > { %v1729_v9 = vsel %vm505_vm8, %v1725_v41, %v1727_v24  ;;  %v1735_v3 = vadd.f32 %v1727_v24, %v1714_v17  ;;  %v1846_v41 = vmul.f32 %v1845_v32, %v2917_v40  ;;  %v1915_v24 = vmul.f32 %v1912_v54, %v2847_v61 }
 0x3e0   : > { %v1767_v1 = vpop.permute.xlu1 %1766  ;;  %v1734_v39 = vadd.f32 %v1729_v9, %v1713_v30  ;;  %v2133_v17 = vmul.f32 %v2130_v49, %v2847_v61  ;;  %v2132_v9 = vmul.f32 %v2130_v49, %v2844_v60  ;;  %v1809_v54 = vmul.f32 %v1808_v10, %v2837_v55 }
 0x3e1   : > { %v1772_v33 = vsel %vm546_vm9, %v1767_v1, %v1769_v12  ;;  %v1935_v1 = vmul.f32 %v1933_v16, %v2938_v52 }
 0x3e2   : > { %v1777_v35 = vadd.f32 %v1772_v33, %v1756_v21  ;;  %v1977_v21 = vstv %s2633_s15  ;;  %v2000_v33 = vstv %s2634_s16  ;;  %s181_s16 = scalar_lea.vmem %s4013_s2, %s2554_s12 }
 0x3e3   : > { %v1978_v48 = vmul.f32 %v1977_v21, %v2917_v40  ;;  %v1980_v11 = vmul.f32 %v1977_v21, %v2926_v45  ;;  %v1979_v38 = vmul.f32 %v1977_v21, %v2938_v52  ;;  %v2003_v7 = vmul.f32 %v2000_v33, %v2847_v61 }
 0x3e4   : > { %1791 = vrot.lane.b32.xlu1 %v1777_v35, %s2771_s28  ;;  %v2001_v35 = vmul.f32 %v2000_v33, %v2837_v55  ;;  %v2002_v37 = vmul.f32 %v2000_v33, %v2844_v60 }
 0x3e6   : > { %v1750_v36 = vpop.permute.xlu0 %1749 }
 0x3e7   : > { %v1752_v42 = vsel %vm546_vm9, %v1748_v62, %v1750_v36  ;;  %v1758_v31 = vadd.f32 %v1750_v36, %v1735_v3  ;;  %v1826_v62 = vmul.f32 %v1824_v6, %v2844_v60  ;;  %v4083_v36 = vld [vmem:[#allocation8_spill] sm:$0xff]  ;;  %v2023_v6 = vmul.f32 %v2021_v28, %v2938_v52 }
 0x3e8   : > { %v1757_v4 = vadd.f32 %v1752_v42, %v1734_v39  ;;  %v2045_v56 = vmul.f32 %v4083_v36, %v2837_v55  ;;  %v2046_v30 = vmul.f32 %v4083_v36, %v2844_v60 }
 0x3ec   : > { %1831 = vrot.lane.b32.xlu1 %v1825_v59, %s2763_s27  ;;  %v2151_v59 = vstv %s2641_s19 }
 0x3ed   : > { %v2154_v3 = vmul.f32 %v2151_v59, %v2926_v45  ;;  %v2153_v39 = vmul.f32 %v2151_v59, %v2938_v52 }
 0x3ee   : > { %v1771_v58 = vpop.permute.xlu0 %1770 }
 0x3ef   : > { %v1773_v46 = vsel %vm546_vm9, %v1769_v12, %v1771_v58  ;;  %v1779_v51 = vadd.f32 %v1771_v58, %v1758_v31  ;;  %v1936_v12 = vmul.f32 %v1933_v16, %v2926_v45  ;;  %v2131_v31 = vmul.f32 %v2130_v49, %v2837_v55 }
 0x3f0   : > { %v1778_v13 = vadd.f32 %v1773_v46, %v1757_v4  ;;  %v2174_v4 = vstv %s2642_s20  ;;  %v1780_v58 = vadd.s32 1, %v3647_v22 }
 0x3f1   : > { %1795 = vrot.lane.b32.xlu0 %v1779_v51, %s2771_s28  ;;  %v2177_v46 = vmul.f32 %v2174_v4, %v2847_v61 }
 0x3f2   : > { %1793 = vrot.lane.b32.xlu2 %v1778_v13, %s2771_s28  ;;  %vm1784_vm11 = vcmp.lt.s32.totalorder %v1780_v58, 16  ;;  %s2648_s28 = sld [smem:[#allocation4 + $0x29]] }
 0x3f4   : > { %1852 = vrot.lane.b32.xlu1 %v1846_v41, %s2763_s27  ;;  %v2176_v41 = vmul.f32 %v2174_v4, %v2844_v60 }
 0x3f9   : > { %1835 = vrot.lane.b32.xlu0 %v1827_v0, %s2763_s27  ;;  %v1815_v0 = vstv %s2625_s21 }
 0x3fa   : > { %1833 = vrot.lane.b32.xlu2 %v1826_v62, %s2763_s27  ;;  %v2152_v62 = vmul.f32 %v2151_v59, %v2917_v40 }
 0x3fc   : > { %1875 = vrot.lane.b32.xlu1 %v1869_v50, %s2762_s26 }
 0x401   : > { %1856 = vrot.lane.b32.xlu0 %v1848_v47, %s2763_s27  ;;  %v2195_v47 = vstv %s2643_s23 }
 0x402   : > { %1854 = vrot.lane.b32.xlu2 %v1847_v27, %s2763_s27  ;;  %v2198_v27 = vmul.f32 %v2195_v47, %v2926_v45  ;;  %v2197_v16 = vmul.f32 %v2195_v47, %v2938_v52  ;;  %v2196_v28 = vmul.f32 %v2195_v47, %v2917_v40 }
 0x404   : > { %1896 = vrot.lane.b32.xlu1 %v1890_v5, %s2762_s26  ;;  %v1816_v5 = vmul.f32 %v1815_v0, %v2917_v40 }
 0x409   : > { %1879 = vrot.lane.b32.xlu0 %v1871_v14, %s2762_s26 }
 0x40a   : > { %1877 = vrot.lane.b32.xlu2 %v1870_v57, %s2762_s26  ;;  %v1819_v57 = vadd.f32 %v1816_v5, %v1809_v54 }
 0x40c   : > { %1919 = vrot.lane.b32.xlu1 %v1913_v15, %s2764_s30 }
 0x411   : > { %1900 = vrot.lane.b32.xlu0 %v1892_v19, %s2762_s26 }
 0x412   : > { %1898 = vrot.lane.b32.xlu2 %v1891_v53, %s2762_s26 }
 0x414   : > { %1940 = vrot.lane.b32.xlu1 %v1934_v23, %s2764_s30  ;;  %v2175_v23 = vmul.f32 %v2174_v4, %v2837_v55 }
 0x419   : > { %1923 = vrot.lane.b32.xlu0 %v1915_v24, %s2764_s30  ;;  %v2218_v24 = vstv %s2644_s24 }
 0x41a   : > { %1921 = vrot.lane.b32.xlu2 %v1914_v34, %s2764_s30  ;;  %v2221_v25 = vmul.f32 %v2218_v24, %v2847_v61 }
 0x41c   : > { %1963 = vrot.lane.b32.xlu1 %v1957_v63, %s2765_s4 }
 0x421   : > { %1944 = vrot.lane.b32.xlu0 %v1936_v12, %s2764_s30 }
 0x422   : > { %1942 = vrot.lane.b32.xlu2 %v1935_v1, %s2764_s30 }
 0x424   : > { %1984 = vrot.lane.b32.xlu1 %v1978_v48, %s2765_s4 }
 0x429   : > { %1967 = vrot.lane.b32.xlu0 %v1959_v20, %s2765_s4  ;;  %v1818_v20 = vmul.f32 %v1815_v0, %v2926_v45 }
 0x42a   : > { %1965 = vrot.lane.b32.xlu2 %v1958_v29, %s2765_s4  ;;  %v2220_v29 = vmul.f32 %v2218_v24, %v2844_v60 }
 0x42c   : > { %2007 = vrot.lane.b32.xlu1 %v2001_v35, %s2766_s6  ;;  %v1817_v35 = vmul.f32 %v1815_v0, %v2938_v52 }
 0x431   : > { %1988 = vrot.lane.b32.xlu0 %v1980_v11, %s2765_s4 }
 0x432   : > { %1986 = vrot.lane.b32.xlu2 %v1979_v38, %s2765_s4  ;;  %v1811_v38 = vmul.f32 %v1808_v10, %v2847_v61 }
 0x434   : > { %2028 = vrot.lane.b32.xlu1 %v2022_v2, %s2766_s6  ;;  %v1810_v2 = vmul.f32 %v1808_v10, %v2844_v60 }
 0x439   : > { %2011 = vrot.lane.b32.xlu0 %v2003_v7, %s2766_s6  ;;  %v1821_v7 = vadd.f32 %v1818_v20, %v1811_v38 }
 0x43a   : > { %2009 = vrot.lane.b32.xlu2 %v2002_v37, %s2766_s6 }
 0x43c   : > { %2051 = vrot.lane.b32.xlu1 %v2045_v56, %s2767_s8  ;;  %v1820_v56 = vadd.f32 %v1817_v35, %v1810_v2 }
 0x441   : > { %2032 = vrot.lane.b32.xlu0 %v2024_v26, %s2766_s6 }
 0x442   : > { %2030 = vrot.lane.b32.xlu2 %v2023_v6, %s2766_s6 }
 0x444   : > { %2141 = vrot.lane.b32.xlu1 %v2133_v17, %s2763_s27 }
 0x449   : > { %2139 = vrot.lane.b32.xlu0 %v2132_v9, %s2763_s27 }
 0x44a   : > { %2053 = vrot.lane.b32.xlu2 %v2046_v30, %s2767_s8 }
 0x44c   : > { %v1794_v42 = vpop.permute.xlu2 %1793  ;;  %2162 = vrot.lane.b32.xlu1 %v2154_v3, %s2763_s27 }
 0x451   : > { %2160 = vrot.lane.b32.xlu0 %v2153_v39, %s2763_s27  ;;  %v2262_v39 = vstv %s2646_s25 }
 0x452   : > { %2137 = vrot.lane.b32.xlu2 %v2131_v31, %s2763_s27  ;;  %v2265_v31 = vmul.f32 %v2262_v39, %v2847_v61  ;;  %v2264_v0 = vmul.f32 %v2262_v39, %v2844_v60 }
 0x454   : > { %v1834_v51 = vpop.permute.xlu2 %1833  ;;  %2185 = vrot.lane.b32.xlu1 %v2177_v46, %s2762_s26 }
 0x456   : > { %v1792_v32 = vpop.permute.xlu1 %1791 }
 0x457   : > { %v1798_v13 = vsel %vm1797_vm10, %v1792_v32, %v1794_v42 }
 0x458   : > { %v1802_v8 = vsel %vm1784_vm11, %v1798_v13, 0.0 }
 0x459   : > { %v3820_v50 = vadd.f32 %v1802_v8, %v3688_v44  ;;  %2183 = vrot.lane.b32.xlu0 %v2176_v41, %s2762_s26  ;;  %v1781_v44 = vadd.s32 1, %v3684_v18 }
 0x45a   : > { %2158 = vrot.lane.b32.xlu2 %v2152_v62, %s2763_s27  ;;  %s2645_s27 = sld [smem:[#allocation4 + $0x4c]] }
 0x45b   : > { %vm1785_vm13 = vcmp.lt.s32.totalorder %v1781_v44, 16 }
 0x45c   : > { %v1855_v14 = vpop.permute.xlu2 %1854  ;;  %2206 = vrot.lane.b32.xlu1 %v2198_v27, %s2762_s26 }
 0x45e   : > { %v1832_v15 = vpop.permute.xlu1 %1831 }
 0x45f   : > { %v1837_v19 = vsel %vm341_vm4, %v1832_v15, %v1834_v51 }
 0x460   : > { %v1842_v53 = vadd.f32 %v1837_v19, %v1819_v57 }
 0x461   : > { %2204 = vrot.lane.b32.xlu0 %v2197_v16, %s2762_s26 }
 0x462   : > { %2181 = vrot.lane.b32.xlu2 %v2175_v23, %s2762_s26  ;;  %v2306_v23 = vstv %s2648_s28 }
 0x463   : > { %v1796_v34 = vpop.permute.xlu0 %1795 }
 0x464   : > { %v1799_v63 = vsel %vm1797_vm10, %v1794_v42, %v1796_v34  ;;  %v1878_v12 = vpop.permute.xlu2 %1877  ;;  %2229 = vrot.lane.b32.xlu1 %v2221_v25, %s2764_s30  ;;  %v2219_v42 = vmul.f32 %v2218_v24, %v2837_v55  ;;  %v2309_v24 = vmul.f32 %v2306_v23, %v2847_v61 }
 0x465   : > { %v1803_v21 = vsel %vm1785_vm13, %v1799_v63, 0.0 }
 0x466   : > { %v3838_v1 = vadd.f32 %v1803_v21, %v3708_v43  ;;  %v1853_v48 = vpop.permute.xlu1 %1852  ;;  %v2239_v43 = vstv %s2645_s27 }
 0x467   : > { %v1858_v33 = vsel %vm341_vm4, %v1853_v48, %v1855_v14  ;;  %v2242_v37 = vmul.f32 %v2239_v43, %v2926_v45  ;;  %v2241_v59 = vmul.f32 %v2239_v43, %v2938_v52  ;;  %v2240_v62 = vmul.f32 %v2239_v43, %v2917_v40 }
 0x468   : > { %v1863_v11 = vadd.f32 %v1858_v33, %v1842_v53  ;;  %v2263_v53 = vmul.f32 %v2262_v39, %v2837_v55  ;;  %v2308_v33 = vmul.f32 %v2306_v23, %v2844_v60 }
 0x469   : > { %2227 = vrot.lane.b32.xlu0 %v2220_v29, %s2764_s30  ;;  %v2327_v29 = vstv %s2649_s29 }
 0x46a   : > { %2202 = vrot.lane.b32.xlu2 %v2196_v28, %s2762_s26  ;;  %s2647_s26 = sld [smem:[#allocation4 + $0x53]]  ;;  %v2329_v28 = vmul.f32 %v2327_v29, %v2938_v52 }
 0x46b   : > { %v1836_v36 = vpop.permute.xlu0 %1835 }
 0x46c   : > { %v1838_v26 = vsel %vm341_vm4, %v1834_v51, %v1836_v36  ;;  %v1844_v6 = vadd.f32 %v1836_v36, %v1821_v7  ;;  %v1899_v49 = vpop.permute.xlu2 %1898  ;;  %2250 = vrot.lane.b32.xlu1 %v2242_v37, %s2764_s30 }
 0x46d   : > { %v1843_v17 = vadd.f32 %v1838_v26, %v1820_v56  ;;  %v2307_v26 = vmul.f32 %v2306_v23, %v2837_v55 }
 0x46e   : > { %v1876_v9 = vpop.permute.xlu1 %1875 }
 0x46f   : > { %v1881_v30 = vsel %vm382_vm5, %v1876_v9, %v1878_v12 }
 0x470   : > { %v1886_v3 = vadd.f32 %v1881_v30, %v1863_v11  ;;  %v2283_v47 = vstv %s2647_s26 }
 0x471   : > { %2248 = vrot.lane.b32.xlu0 %v2241_v59, %s2764_s30  ;;  %v2286_v10 = vmul.f32 %v2283_v47, %v2926_v45  ;;  %v2285_v19 = vmul.f32 %v2283_v47, %v2938_v52  ;;  %v2284_v11 = vmul.f32 %v2283_v47, %v2917_v40 }
 0x472   : > { %2225 = vrot.lane.b32.xlu2 %v2219_v42, %s2764_s30 }
 0x473   : > { %v1857_v4 = vpop.permute.xlu0 %1856 }
 0x474   : > { %v1859_v58 = vsel %vm341_vm4, %v1855_v14, %v1857_v4  ;;  %v1865_v46 = vadd.f32 %v1857_v4, %v1844_v6  ;;  %v1922_v51 = vpop.permute.xlu2 %1921  ;;  %2273 = vrot.lane.b32.xlu1 %v2265_v31, %s2765_s4 }
 0x475   : > { %v1864_v32 = vadd.f32 %v1859_v58, %v1843_v17  ;;  %v4084_v17 = vld [vmem:[#allocation9_spill] sm:$0xff] }
 0x476   : > { %v1897_v13 = vpop.permute.xlu1 %1896 }
 0x477   : > { %v1902_v41 = vsel %vm382_vm5, %v1897_v13, %v1899_v49 }
 0x478   : > { %v1907_v8 = vadd.f32 %v1902_v41, %v1886_v3 }
 0x479   : > { %2271 = vrot.lane.b32.xlu0 %v2264_v0, %s2765_s4 }
 0x47a   : > { %2246 = vrot.lane.b32.xlu2 %v2240_v62, %s2764_s30  ;;  %s2637_s30 = sld [smem:[#allocation4 + $0x60]] }
 0x47b   : > { %v1880_v27 = vpop.permute.xlu0 %1879 }
 0x47c   : > { %v1882_v5 = vsel %vm382_vm5, %v1878_v12, %v1880_v27  ;;  %v1888_v14 = vadd.f32 %v1880_v27, %v1865_v46  ;;  %v1943_v54 = vpop.permute.xlu2 %1942  ;;  %2294 = vrot.lane.b32.xlu1 %v2286_v10, %s2765_s4 }
 0x47d   : > { %v1887_v57 = vadd.f32 %v1882_v5, %v1864_v32 }
 0x47e   : > { %v1920_v15 = vpop.permute.xlu1 %1919 }
 0x47f   : > { %v1925_v44 = vsel %vm423_vm6, %v1920_v15, %v1922_v51 }
 0x480   : > { %v1930_v16 = vadd.f32 %v1925_v44, %v1907_v8 }
 0x481   : > { %2292 = vrot.lane.b32.xlu0 %v2285_v19, %s2765_s4 }
 0x482   : > { %2269 = vrot.lane.b32.xlu2 %v2263_v53, %s2765_s4 }
 0x483   : > { %v1901_v25 = vpop.permute.xlu0 %1900 }
 0x484   : > { %v1903_v34 = vsel %vm382_vm5, %v1899_v49, %v1901_v25  ;;  %v1909_v63 = vadd.f32 %v1901_v25, %v1888_v14  ;;  %v1966_v12 = vpop.permute.xlu2 %1965  ;;  %2317 = vrot.lane.b32.xlu1 %v2309_v24, %s2766_s6  ;;  %v2065_v49 = vstv %s2637_s30  ;;  %v2371_v14 = vstv %s2651_s3 }
 0x485   : > { %v1908_v21 = vadd.f32 %v1903_v34, %v1887_v57  ;;  %v2068_v9 = vmul.f32 %v2065_v49, %v2926_v45  ;;  %v2067_v58 = vmul.f32 %v2065_v49, %v2938_v52  ;;  %v2328_v57 = vmul.f32 %v2327_v29, %v2917_v40 }
 0x486   : > { %v1941_v48 = vpop.permute.xlu1 %1940  ;;  %v2373_v15 = vmul.f32 %v2371_v14, %v2938_v52 }
 0x487   : > { %v1946_v20 = vsel %vm423_vm6, %v1941_v48, %v1943_v54 }
 0x488   : > { %v1951_v35 = vadd.f32 %v1946_v20, %v1930_v16 }
 0x489   : > { %2315 = vrot.lane.b32.xlu0 %v2308_v33, %s2766_s6 }
 0x48a   : > { %2290 = vrot.lane.b32.xlu2 %v2284_v11, %s2765_s4  ;;  %s2650_s4 = sld [smem:[#allocation4 + $0x30]] }
 0x48b   : > { %v1924_v38 = vpop.permute.xlu0 %1923 }
 0x48c   : > { %v1926_v2 = vsel %vm423_vm6, %v1922_v51, %v1924_v38  ;;  %v1932_v43 = vadd.f32 %v1924_v38, %v1909_v63  ;;  %v1987_v7 = vpop.permute.xlu2 %1986  ;;  %2336 = vrot.lane.b32.xlu1 %v2329_v28, %s2766_s6  ;;  %v2330_v51 = vmul.f32 %v2327_v29, %v2926_v45  ;;  %v2372_v28 = vmul.f32 %v2371_v14, %v2917_v40 }
 0x48d   : > { %v1931_v37 = vadd.f32 %v1926_v2, %v1908_v21  ;;  %v2374_v2 = vmul.f32 %v2371_v14, %v2926_v45 }
 0x48e   : > { %v1964_v36 = vpop.permute.xlu1 %1963 }
 0x48f   : > { %v1969_v56 = vsel %vm464_vm7, %v1964_v36, %v1966_v12 }
 0x490   : > { %v1974_v6 = vadd.f32 %v1969_v56, %v1951_v35  ;;  %v2350_v32 = vstv %s2650_s4 }
 0x491   : > { %2313 = vrot.lane.b32.xlu0 %v2307_v26, %s2766_s6  ;;  %v2353_v13 = vmul.f32 %v2350_v32, %v2847_v61  ;;  %v2352_v5 = vmul.f32 %v2350_v32, %v2844_v60  ;;  %v2351_v34 = vmul.f32 %v2350_v32, %v2837_v55 }
 0x492   : > { %2055 = vrot.lane.b32.xlu2 %v4084_v17, %s2767_s8 }
 0x493   : > { %v1945_v30 = vpop.permute.xlu0 %1944 }
 0x494   : > { %v1947_v59 = vsel %vm423_vm6, %v1943_v54, %v1945_v30  ;;  %v1953_v3 = vadd.f32 %v1945_v30, %v1932_v43  ;;  %v2010_v42 = vpop.permute.xlu2 %2009  ;;  %2076 = vrot.lane.b32.xlu1 %v2068_v9, %s2767_s8 }
 0x495   : > { %v1952_v39 = vadd.f32 %v1947_v59, %v1931_v37  ;;  %v2114_v37 = vstv %s2638_s5 }
 0x496   : > { %v1985_v31 = vpop.permute.xlu1 %1984  ;;  %v2117_v56 = vmul.f32 %v2114_v37, %v2847_v61 }
 0x497   : > { %v1990_v4 = vsel %vm464_vm7, %v1985_v31, %v1987_v7 }
 0x498   : > { %v1995_v46 = vadd.f32 %v1990_v4, %v1974_v6 }
 0x499   : > { %2074 = vrot.lane.b32.xlu0 %v2067_v58, %s2767_s8 }
 0x49a   : > { %2338 = vrot.lane.b32.xlu2 %v2330_v51, %s2766_s6 }
 0x49b   : > { %v1968_v41 = vpop.permute.xlu0 %1967 }
 0x49c   : > { %v1970_v0 = vsel %vm464_vm7, %v1966_v12, %v1968_v41  ;;  %v1976_v8 = vadd.f32 %v1968_v41, %v1953_v3  ;;  %v2031_v62 = vpop.permute.xlu2 %2030  ;;  %2361 = vrot.lane.b32.xlu1 %v2353_v13, %s2767_s8  ;;  %v2066_v12 = vmul.f32 %v2065_v49, %v2917_v40 }
 0x49d   : > { %v1975_v47 = vadd.f32 %v1970_v0, %v1952_v39  ;;  %v2116_v39 = vmul.f32 %v2114_v37, %v2844_v60 }
 0x49e   : > { %v2008_v10 = vpop.permute.xlu1 %2007 }
 0x49f   : > { %v2013_v27 = vsel %vm505_vm8, %v2008_v10, %v2010_v42 }
 0x4a0   : > { %v2018_v54 = vadd.f32 %v2013_v27, %v1995_v46 }
 0x4a1   : > { %2359 = vrot.lane.b32.xlu0 %v2352_v5, %s2767_s8 }
 0x4a2   : > { %2334 = vrot.lane.b32.xlu2 %v2328_v57, %s2766_s6  ;;  %s2639_s6 = sld [smem:[#allocation4 + $0x37]] }
 0x4a3   : > { %v1989_v44 = vpop.permute.xlu0 %1988 }
 0x4a4   : > { %v1991_v19 = vsel %vm464_vm7, %v1987_v7, %v1989_v44  ;;  %v1997_v16 = vadd.f32 %v1989_v44, %v1976_v8  ;;  %v3907_v53 = vpop.permute.xlu2 %2053  ;;  %2380 = vrot.lane.b32.xlu1 %v2373_v15, %s2767_s8 }
 0x4a5   : > { %v1996_v23 = vadd.f32 %v1991_v19, %v1975_v47 }
 0x4a6   : > { %v2029_v24 = vpop.permute.xlu1 %2028 }
 0x4a7   : > { %v2034_v25 = vsel %vm505_vm8, %v2029_v24, %v2031_v62 }
 0x4a8   : > { %v2039_v63 = vadd.f32 %v2034_v25, %v2018_v54  ;;  %v2121_v43 = vstv %s2639_s6 }
 0x4a9   : > { %2357 = vrot.lane.b32.xlu0 %v2351_v34, %s2767_s8  ;;  %v2124_v7 = vmul.f32 %v2121_v43, %v2926_v45  ;;  %v2122_v3 = vmul.f32 %v2121_v43, %v2917_v40  ;;  %v2123_v45 = vmul.f32 %v2121_v43, %v2938_v52 }
 0x4aa   : > { %2072 = vrot.lane.b32.xlu2 %v2066_v12, %s2767_s8 }
 0x4ab   : > { %v2012_v21 = vpop.permute.xlu0 %2011  ;;  %v2127_v9 = vadd.f32 %v2124_v7, %v2117_v56  ;;  %v2126_v4 = vadd.f32 %v2123_v45, %v2116_v39 }
 0x4ac   : > { %v2014_v48 = vsel %vm505_vm8, %v2010_v42, %v2012_v21  ;;  %v2020_v20 = vadd.f32 %v2012_v21, %v1997_v16  ;;  %v2138_v33 = vpop.permute.xlu2 %2137  ;;  %v2115_v42 = vmul.f32 %v2114_v37, %v2837_v55 }
 0x4ad   : > { %v2019_v29 = vadd.f32 %v2014_v48, %v1996_v23 }
 0x4ae   : > { %v2052_v35 = vpop.permute.xlu1 %2051  ;;  %v2125_v31 = vadd.f32 %v2122_v3, %v2115_v42 }
 0x4af   : > { %v2057_v11 = vsel %vm546_vm9, %v2052_v35, %v3907_v53 }
 0x4b0   : > { %v3919_v38 = vadd.f32 %v2057_v11, %v2039_v63 }
 0x4b1   : > { %2378 = vrot.lane.b32.xlu0 %v2372_v28, %s2767_s8 }
 0x4b2   : > { %2382 = vrot.lane.b32.xlu2 %v2374_v2, %s2767_s8  ;;  %s2772_s8 = smov 123  }
 0x4b3   : > { %v2033_v36 = vpop.permute.xlu0 %2032 }
 0x4b4   : > { %v2035_v26 = vsel %vm505_vm8, %v2031_v62, %v2033_v36  ;;  %v3927_v6 = vadd.f32 %v2033_v36, %v2020_v20  ;;  %v2159_v49 = vpop.permute.xlu2 %2158 }
 0x4b5   : > { %v3929_v17 = vadd.f32 %v2035_v26, %v2019_v29 }
 0x4b6   : > { %v2142_v30 = vpop.permute.xlu1 %2141 }
 0x4b7   : > { %v2150_v59 = vadd.f32 %v2142_v30, %v2127_v9 }
 0x4bb   : > { %v2140_v61 = vpop.permute.xlu0 %2139 }
 0x4bc   : > { %v2143_v58 = vsel %vm341_vm4, %v2138_v33, %v2140_v61  ;;  %v2144_v46 = vsel %vm341_vm4, %v2140_v61, %v2142_v30  ;;  %v2182_v51 = vpop.permute.xlu2 %2181 }
 0x4bd   : > { %v2148_v32 = vadd.f32 %v2143_v58, %v2125_v31  ;;  %v2149_v13 = vadd.f32 %v2144_v46, %v2126_v4 }
 0x4be   : > { %v2163_v41 = vpop.permute.xlu1 %2162 }
 0x4bf   : > { %v2171_v28 = vadd.f32 %v2163_v41, %v2150_v59 }
 0x4c3   : > { %v2161_v0 = vpop.permute.xlu0 %2160 }
 0x4c4   : > { %v2164_v40 = vsel %vm341_vm4, %v2159_v49, %v2161_v0  ;;  %v2165_v52 = vsel %vm341_vm4, %v2161_v0, %v2163_v41  ;;  %v2203_v8 = vpop.permute.xlu2 %2202  ;;  %vm2103_vm4 = vcmask 1006592  }
 0x4c5   : > { %v2169_v55 = vadd.f32 %v2164_v40, %v2148_v32  ;;  %v2170_v62 = vadd.f32 %v2165_v52, %v2149_v13 }
 0x4c6   : > { %v2186_v60 = vpop.permute.xlu1 %2185 }
 0x4c7   : > { %v2194_v7 = vadd.f32 %v2186_v60, %v2171_v28 }
 0x4cb   : > { %v2184_v47 = vpop.permute.xlu0 %2183 }
 0x4cc   : > { %v2187_v10 = vsel %vm382_vm5, %v2182_v51, %v2184_v47  ;;  %v2226_v27 = vpop.permute.xlu2 %2225  ;;  %v2188_v56 = vsel %vm382_vm5, %v2184_v47, %v2186_v60 }
 0x4cd   : > { %v2192_v5 = vadd.f32 %v2187_v10, %v2169_v55  ;;  %v2193_v9 = vadd.f32 %v2188_v56, %v2170_v62 }
 0x4ce   : > { %v2207_v14 = vpop.permute.xlu1 %2206 }
 0x4cf   : > { %v2215_v36 = vadd.f32 %v2207_v14, %v2194_v7 }
 0x4d3   : > { %v2205_v54 = vpop.permute.xlu0 %2204 }
 0x4d4   : > { %v2208_v57 = vsel %vm382_vm5, %v2203_v8, %v2205_v54  ;;  %v3941_v15 = vpop.permute.xlu2 %2246  ;;  %v2209_v49 = vsel %vm382_vm5, %v2205_v54, %v2207_v14 }
 0x4d5   : > { %v2213_v44 = vadd.f32 %v2208_v57, %v2192_v5  ;;  %v2214_v42 = vadd.f32 %v2209_v49, %v2193_v9 }
 0x4d6   : > { %v2230_v19 = vpop.permute.xlu1 %2229 }
 0x4d7   : > { %v2238_v26 = vadd.f32 %v2230_v19, %v2215_v36 }
 0x4db   : > { %v2228_v16 = vpop.permute.xlu0 %2227 }
 0x4dc   : > { %v2231_v23 = vsel %vm423_vm6, %v2226_v27, %v2228_v16  ;;  %v3944_v24 = vpop.permute.xlu2 %2269  ;;  %v2232_v45 = vsel %vm423_vm6, %v2228_v16, %v2230_v19 }
 0x4dd   : > { %v3946_v25 = vadd.f32 %v2231_v23, %v2213_v44  ;;  %v2237_v58 = vadd.f32 %v2232_v45, %v2214_v42  ;;  %v2393_v45 = vadd.s32 3, %v3684_v18 }
 0x4de   : > { %v2251_v34 = vpop.permute.xlu1 %2250 }
 0x4df   : > { %v2259_v30 = vadd.f32 %v2251_v34, %v2238_v26 }
 0x4e3   : > { %v2249_v63 = vpop.permute.xlu0 %2248 }
 0x4e4   : > { %v3948_v12 = vpop.permute.xlu2 %2290  ;;  %v2253_v31 = vsel %vm423_vm6, %v2249_v63, %v2251_v34  ;;  %v2252_v23 = vsel %vm423_vm6, %v3941_v15, %v2249_v63  ;;  %vm2409_vm6 = vcmask 998400  }
 0x4e5   : > { %v2258_v41 = vadd.f32 %v2253_v31, %v2237_v58  ;;  %v2086_v58 = vadd.s32 2, %v3647_v22 }
 0x4e6   : > { %v2274_v21 = vpop.permute.xlu1 %2273 }
 0x4e7   : > { %v2282_v39 = vadd.f32 %v2274_v21, %v2259_v30 }
 0x4eb   : > { %v2272_v48 = vpop.permute.xlu0 %2271 }
 0x4ec   : > { %v2056_v20 = vpop.permute.xlu2 %2055  ;;  %v2276_v32 = vsel %vm464_vm7, %v2272_v48, %v2274_v21  ;;  %v2275_v21 = vsel %vm464_vm7, %v3944_v24, %v2272_v48 }
 0x4ed   : > { %v2064_v59 = vadd.f32 %v2056_v20, %v3927_v6  ;;  %v2058_v13 = vsel %vm546_vm9, %v3907_v53, %v2056_v20  ;;  %v2281_v52 = vadd.f32 %v2276_v32, %v2258_v41 }
 0x4ee   : > { %v2295_v33 = vpop.permute.xlu1 %2294  ;;  %v2063_v6 = vadd.f32 %v2058_v13, %v3929_v17 }
 0x4ef   : > { %v2303_v46 = vadd.f32 %v2295_v33, %v2282_v39 }
 0x4f3   : > { %v2293_v29 = vpop.permute.xlu0 %2292 }
 0x4f4   : > { %v2339_v35 = vpop.permute.xlu2 %2338  ;;  %v2297_v40 = vsel %vm464_vm7, %v2293_v29, %v2295_v33  ;;  %v2257_v33 = vadd.f32 %v2252_v23, %v3946_v25 }
 0x4f5   : > { %v2302_v47 = vadd.f32 %v2297_v40, %v2281_v52 }
 0x4f6   : > { %v2318_v11 = vpop.permute.xlu1 %2317  ;;  %v2280_v7 = vadd.f32 %v2275_v21, %v2257_v33 }
 0x4f7   : > { %v2326_v0 = vadd.f32 %v2318_v11, %v2303_v46 }
 0x4f9   : > { %v2347_v27 = vadd.f32 %v2339_v35, %v2326_v0 }
 0x4fb   : > { %v2316_v2 = vpop.permute.xlu0 %2315 }
 0x4fc   : > { %v3950_v43 = vpop.permute.xlu2 %2334  ;;  %v2320_v55 = vsel %vm505_vm8, %v2316_v2, %v2318_v11  ;;  %v2296_v11 = vsel %vm464_vm7, %v3948_v12, %v2293_v29  ;;  %v2087_v29 = vadd.s32 2, %v3684_v18  ;;  %vm2397_vm7 = vcmp.lt.s32.totalorder %v2393_v45, 16 }
 0x4fd   : > { %v2325_v14 = vadd.f32 %v2320_v55, %v2302_v47  ;;  %v2301_v15 = vadd.f32 %v2296_v11, %v2280_v7 }
 0x4fe   : > { %v3952_v37 = vpop.permute.xlu1 %2336  ;;  %vm2091_vm5 = vcmp.lt.s32.totalorder %v2087_v29, 16 }
 0x4ff   : > { %v2341_v17 = vsel %vm505_vm8, %v3952_v37, %v2339_v35  ;;  %v2340_v24 = vsel %vm505_vm8, %v3950_v43, %v3952_v37 }
 0x500   : > { %v2346_v19 = vadd.f32 %v2341_v17, %v2325_v14 }
 0x503   : > { %v2314_v3 = vpop.permute.xlu0 %2313 }
 0x504   : > { %v2073_v61 = vpop.permute.xlu2 %2072  ;;  %v2319_v36 = vsel %vm505_vm8, %v2314_v3, %v2316_v2  ;;  %vm2090_vm8 = vcmp.lt.s32.totalorder %v2086_v58, 16 }
 0x505   : > { %v2324_v56 = vadd.f32 %v2319_v36, %v2301_v15 }
 0x506   : > { %v2077_v4 = vpop.permute.xlu1 %2076 }
 0x507   : > { %v2085_v51 = vadd.f32 %v2077_v4, %v2064_v59  ;;  %v2345_v25 = vadd.f32 %v2340_v24, %v2324_v56 }
 0x509   : > { %2101 = vrot.lane.b32.xlu2 %v2085_v51, %s2772_s8  ;;  %v2392_v51 = vadd.s32 3, %v3647_v22 }
 0x50b   : > { %v2075_v8 = vpop.permute.xlu0 %2074 }
 0x50c   : > { %v2078_v62 = vsel %vm546_vm9, %v2073_v61, %v2075_v8  ;;  %v2079_v60 = vsel %vm546_vm9, %v2075_v8, %v2077_v4  ;;  %v2383_v57 = vpop.permute.xlu2 %2382 }
 0x50d   : > { %v2083_v10 = vadd.f32 %v2078_v62, %v3919_v38  ;;  %v2084_v53 = vadd.f32 %v2079_v60, %v2063_v6 }
 0x50e   : > { %v2362_v5 = vpop.permute.xlu1 %2361 }
 0x50f   : > { %v2370_v54 = vadd.f32 %v2362_v5, %v2347_v27  ;;  %2097 = vrot.lane.b32.xlu0 %v2083_v10, %s2772_s8  ;;  %2099 = vrot.lane.b32.xlu1 %v2084_v53, %s2772_s8 }
 0x511   : > { %v2391_v44 = vadd.f32 %v2383_v57, %v2370_v54 }
 0x513   : > { %v2360_v16 = vpop.permute.xlu0 %2359  ;;  %2407 = vrot.lane.b32.xlu2 %v2391_v44, %s2773_s7 }
 0x514   : > { %v2364_v38 = vsel %vm546_vm9, %v2360_v16, %v2362_v5 }
 0x515   : > { %v2369_v34 = vadd.f32 %v2364_v38, %v2346_v19 }
 0x516   : > { %v2381_v20 = vpop.permute.xlu1 %2380 }
 0x517   : > { %v2385_v35 = vsel %vm546_vm9, %v2381_v20, %v2383_v57 }
 0x518   : > { %v2390_v28 = vadd.f32 %v2385_v35, %v2369_v34 }
 0x51a   : > { %2405 = vrot.lane.b32.xlu1 %v2390_v28, %s2773_s7 }
 0x51b   : > { %v2358_v63 = vpop.permute.xlu0 %2357 }
 0x51c   : > { %v2363_v48 = vsel %vm546_vm9, %v2358_v63, %v2360_v16 }
 0x51d   : > { %v2368_v26 = vadd.f32 %v2363_v48, %v2345_v25 }
 0x523   : > { %v2379_v49 = vpop.permute.xlu0 %2378 }
 0x524   : > { %v2384_v9 = vsel %vm546_vm9, %v2379_v49, %v2381_v20  ;;  %vm2396_vm9 = vcmp.lt.s32.totalorder %v2392_v51, 16 }
 0x525   : > { %v2389_v12 = vadd.f32 %v2384_v9, %v2368_v26 }
 0x527   : > { %2403 = vrot.lane.b32.xlu0 %v2389_v12, %s2773_s7 }
 0x563   : > { %v2102_v2 = vpop.permute.xlu2 %2101 }
 0x56d   : > { %v2408_v37 = vpop.permute.xlu2 %2407 }
 0x581   : > { %v2100_v30 = vpop.permute.xlu1 %2099  ;;  %v2098_v4 = vpop.permute.xlu0 %2097 }
 0x582   : > { %v2105_v3 = vsel %vm2103_vm4, %v2100_v30, %v2102_v2  ;;  %v2104_v18 = vsel %vm2103_vm4, %v2098_v4, %v2100_v30 }
 0x583   : > { %v2109_v43 = vsel %vm2091_vm5, %v2105_v3, 0.0  ;;  %v2108_v32 = vsel %vm2090_vm8, %v2104_v18, 0.0 }
 0x584   : > { %v2111_v39 = vadd.f32 %v2109_v43, %v3838_v1  ;;  %v2110_v40 = vadd.f32 %v2108_v32, %v3820_v50 }
 0x58c   : > { %v2406_v42 = vpop.permute.xlu1 %2405 }
 0x58d   : > { %v2411_v59 = vsel %vm2409_vm6, %v2406_v42, %v2408_v37 }
 0x58e   : > { %v2415_v31 = vsel %vm2397_vm7, %v2411_v59, 0.0 }
 0x58f   : > { %v2417_v61 = vadd.f32 %v2415_v31, %v2111_v39 }
 0x591   : > { %v2653_v46 = vmul.f32 -1.442695, %v2417_v61 }
 0x593   : > { %2707 = vpow2.f32 %v2653_v46 }
 0x599   : > { %v2708_v13 = vpop.eup %2707  ;;  %v2404_v41 = vpop.permute.xlu0 %2403 }
 0x59a   : > { %v2425_v0 = vadd.f32 1.0, %v2708_v13  ;;  %v2410_v1 = vsel %vm2409_vm6, %v2404_v41, %v2406_v42 }
 0x59b   : > { %v2414_v52 = vsel %vm2396_vm9, %v2410_v1, 0.0 }
 0x59c   : > { %2709 = vrcp.f32 %v2425_v0  ;;  %v2416_v6 = vadd.f32 %v2414_v52, %v2110_v40  ;;  %v2452_v5 = vand.u32 2147483648, %v2425_v0  ;;  %vm2446_vm15 = vweird.f32 %v2425_v0 }
 0x59d   : > { %v2450_v14 = vand.u32 2147483647, %v2425_v0 }
 0x59e   : > { %v2652_v8 = vmul.f32 -1.442695, %v2416_v6  ;;  %v2453_v57 = vor.u32 1.1754944e-38, %v2452_v5 }
 0x59f   : > { %vm2451_vm3 = vcmp.eq.f32.partialorder %v2450_v14, 8.507059e+37 }
 0x5a0   : > { %2711 = vpow2.f32 %v2652_v8 }
 0x5a2   : > { %v2710_v55 = vpop.eup %2709 }
 0x5a3   : > { %v2442_v62 = vmul.f32 %v2710_v55, %v2425_v0  ;;  %vm2447_vm14 = vweird.f32 %v2710_v55 }
 0x5a4   : > { %vm2448_vm1 = vmor %vm2446_vm15, %vm2447_vm14 }
 0x5a5   : > { %v2443_v60 = vsub.f32 1.0, %v2442_v62 }
 0x5a6   : > { %v2712_v22 = vpop.eup %2711 }
 0x5a7   : > { %v2424_v47 = vadd.f32 1.0, %v2712_v22  ;;  %v2444_v10 = vmul.f32 %v2710_v55, %v2443_v60 }
 0x5a9   : > { %2713 = vrcp.f32 %v2424_v47  ;;  %v2445_v53 = vadd.f32 %v2710_v55, %v2444_v10  ;;  %v2437_v44 = vand.u32 2147483648, %v2424_v47  ;;  %v2435_v16 = vand.u32 2147483647, %v2424_v47 }
 0x5aa   : > { %vm2431_vm10 = vweird.f32 %v2424_v47 }
 0x5ab   : > { %v2449_v54 = vsel %vm2448_vm1, %v2710_v55, %v2445_v53  ;;  %v2438_v34 = vor.u32 1.1754944e-38, %v2437_v44  ;;  %vm2436_vm13 = vcmp.eq.f32.partialorder %v2435_v16, 8.507059e+37 }
 0x5ac   : > { %v2454_v23 = vsel %vm2451_vm3, %v2453_v57, %v2449_v54 }
 0x5ad   : > { %v2458_v21 = vrot.slane %v2454_v23, 7 }
 0x5af   : > { %v2714_v27 = vpop.eup %2713 }
 0x5b0   : > { %v2427_v50 = vmul.f32 %v2714_v27, %v2424_v47  ;;  %vm2432_vm12 = vweird.f32 %v2714_v27 }
 0x5b1   : > { %vm2433_vm11 = vmor %vm2431_vm10, %vm2432_vm12 }
 0x5b2   : > { %v2428_v17 = vsub.f32 1.0, %v2427_v50 }
 0x5b4   : > { %v2429_v19 = vmul.f32 %v2714_v27, %v2428_v17 }
 0x5b6   : > { %v2430_v38 = vadd.f32 %v2714_v27, %v2429_v19 }
 0x5b8   : > { %v2434_v20 = vsel %vm2433_vm11, %v2714_v27, %v2430_v38 }
 0x5b9   : > { %v2439_v33 = vsel %vm2436_vm13, %v2438_v34, %v2434_v20 }
 0x5ba   : > { %v2459_v35 = vsel %vm218_vm2, %v2439_v33, %v2458_v21 }
 0x5bb   : > { %2461 = vst.msk [vmem:[%s181_s16] sm:$0x3] %vm2814_vm0, %v2459_v35 }
 0x5bc PF: > { %s13_s11 = sadd.s32 1, %s2756_s11   ;;  %s4086_s9 = smov %s2752_s10 }
 0x5bd   : > { %p10_p8 = scmp.ge.s32.totalorder %s13_s11, 4   ;;  %s4087_s10 = smov %s4089_s13 }
 0x5bf   :  { %12 = sbr.rel (!%p10_p8) target bundleno = 2 (0x2), region = 71 }
 0x5c4   :  { %2481 = vsyncpa [#allocation5], 1 }
 0x5c5   :  { %2483 = vsyncpa [#allocation5 + $0x1], 1 }

</bundles_post_ra>
